<compile_context>
chip_gen: v7x
topology: tpu7x:2x2x1
jax: 0.10.0
libtpu: 0.0.40
codegen_flags: <defaults>
</compile_context>

<pallas_src>
import functools

import numpy as np
import jax
import jax.numpy as jnp
from jax.experimental import pallas as pl
from jax.experimental.pallas import tpu as pltpu

K_FACTOR = 1.148698354997035
SIGMA = 1.6
NUM_SCALES = 5  # [x, g1, g2, g3, g4]


# ----------------------------------------------------------------------------
# Gaussian kernel recipe (matches torchvision.transforms.functional.gaussian_blur)
# ----------------------------------------------------------------------------
def cal_k_size(sigma):
    ks = int(6 * sigma + 1)
    if ks % 2 == 0:
        ks -= 1
    return ks


def _gaussian_taps(ks, sigma):
    half = (ks - 1) * 0.5
    x = np.linspace(-half, half, ks)
    pdf = np.exp(-0.5 * (x / float(sigma)) ** 2)
    return pdf / pdf.sum()


def _reflect_blur_matrix(n, sigma):
    """(n, n) matrix M such that M @ v == 1D Gaussian blur of v with 'reflect'
    padding (torchvision semantics) folded into the boundary rows."""
    ks = cal_k_size(sigma)
    p = ks // 2
    assert p < n, (f"reflect padding requires pad ({p}) < spatial dim ({n}); "
                   f"sigma={sigma} is too large for this image size")
    taps = _gaussian_taps(ks, sigma)
    m = np.zeros((n, n), dtype=np.float64)
    for i in range(n):
        for j in range(ks):
            src = i + j - p
            if src < 0:
                src = -src          # reflect (no edge repeat)
            elif src >= n:
                src = 2 * n - 2 - src
            m[i, src] += taps[j]
    return m.astype(np.float32)


# ----------------------------------------------------------------------------
# Fused Pallas kernel: x -> [x, G1 x, G2 G1 x, G3 G2 G1 x, G4 ... x]
# ----------------------------------------------------------------------------
def _sift_gaussion_kernel(x_ref, mh_ref, mwt_ref, o_ref, *, num_blurs,
                          num_channels):
    # x_ref:   (1, C, H, W)                input image block
    # mh_ref:  (num_blurs, H, H)           vertical blur matrices   (M_h @ img)
    # mwt_ref: (num_blurs, W, W)           transposed horizontal    (img @ M_w^T)
    # o_ref:   (1, num_blurs + 1, C, H, W) stacked scales
    for c in range(num_channels):
        img = x_ref[0, c]                  # (H, W), stays in VMEM/vregs
        o_ref[0, 0, c] = img
        cur = img
        for i in range(num_blurs):
            hpass = jnp.dot(cur, mwt_ref[i],
                            preferred_element_type=jnp.float32,
                            precision=jax.lax.Precision.HIGHEST)
            cur = jnp.dot(mh_ref[i], hpass,
                          preferred_element_type=jnp.float32,
                          precision=jax.lax.Precision.HIGHEST)
            o_ref[0, i + 1, c] = cur


def sift_gaussion(x, k=K_FACTOR, sigma=SIGMA):
    """x: (N, C, H, W) float32 -> (N, 5, C, H, W), matching the PyTorch module:
    torch.cat([x, g1, g2, g3, g4] each unsqueezed at dim 1)."""
    N, C, H, W = x.shape
    num_blurs = NUM_SCALES - 1
    sigmas = [float(sigma) * float(k) ** i for i in range(num_blurs)]

    # Banded-Toeplitz blur matrices with reflect padding baked in (trace-time
    # numpy constants -> jit constants; DMA'd once, resident across the grid).
    mh = jnp.asarray(np.stack([_reflect_blur_matrix(H, s) for s in sigmas]))
    mwt = jnp.asarray(np.stack([_reflect_blur_matrix(W, s).T for s in sigmas]))

    kern = functools.partial(_sift_gaussion_kernel,
                             num_blurs=num_blurs, num_channels=C)
    return pl.pallas_call(
        kern,
        out_shape=jax.ShapeDtypeStruct((N, NUM_SCALES, C, H, W), x.dtype),
        grid=(N,),
        in_specs=[
            pl.BlockSpec((1, C, H, W), lambda n: (n, 0, 0, 0)),
            pl.BlockSpec((num_blurs, H, H), lambda n: (0, 0, 0)),
            pl.BlockSpec((num_blurs, W, W), lambda n: (0, 0, 0)),
        ],
        out_specs=pl.BlockSpec((1, NUM_SCALES, C, H, W),
                               lambda n: (n, 0, 0, 0, 0)),
        compiler_params=pltpu.CompilerParams(
            dimension_semantics=("parallel",)),
    )(x, mh, mwt)


# ----------------------------------------------------------------------------
# Pure-JAX reference (separable blur with jnp.pad reflect) for a sanity check
# ----------------------------------------------------------------------------
def _reference(x, k=K_FACTOR, sigma=SIGMA):
    def blur(img, s):
        ks = cal_k_size(s)
        p = ks // 2
        taps = [float(t) for t in _gaussian_taps(ks, s)]
        H, W = img.shape[-2:]
        xp = jnp.pad(img, ((0, 0), (0, 0), (p, p), (p, p)), mode="reflect")
        acc = taps[0] * xp[..., :, 0:W]
        for j in range(1, ks):
            acc = acc + taps[j] * xp[..., :, j:j + W]
        out = taps[0] * acc[..., 0:H, :]
        for i in range(1, ks):
            out = out + taps[i] * acc[..., i:i + H, :]
        return out

    g = [x]
    for i in range(NUM_SCALES - 1):
        g.append(blur(g[-1], float(sigma) * float(k) ** i))
    return jnp.stack(g, axis=1)


# ----------------------------------------------------------------------------
if __name__ == "__main__":
    key = jax.random.PRNGKey(0)
    # Grayscale image batch (the SIFT pipeline feeds (N, 1, H, W) into this
    # module); 128x128 keeps the last dim lane-dense and pad(7) < 128.
    x = jax.random.uniform(key, (2, 1, 128, 128), dtype=jnp.float32)

    out = jax.jit(sift_gaussion)(x)
    jax.block_until_ready(out)
    assert out.shape == (2, NUM_SCALES, 1, 128, 128), out.shape

    ref = _reference(x)
    err = float(jnp.max(jnp.abs(out - ref)))
    assert err < 5e-3, f"max abs error vs reference: {err}"

    print("KERNEL_OK")
</pallas_src>

<mosaic_0001>
module attributes {stable_mosaic.version = 11 : i64} {
  func.func @_sift_gaussion_kernel(%arg0: i32, %arg1: memref<1x1x128x128xf32, #tpu.memory_space<vmem>>, %arg2: memref<4x128x128xf32, #tpu.memory_space<vmem>>, %arg3: memref<4x128x128xf32, #tpu.memory_space<vmem>>, %arg4: memref<1x5x1x128x128xf32, #tpu.memory_space<vmem>>) attributes {dimension_semantics = [#tpu.dimension_semantics<parallel>], iteration_bounds = array<i64: 2>, scalar_prefetch = 0 : i64, scratch_operands = 0 : i64, tpu.core_type = #tpu.core_type<tc>, window_params = [{transform_indices = @transform_0, window_bounds = array<i64: 1, 1, 128, 128>}, {pipeline_mode = #tpu.pipeline_mode<synchronous>, transform_indices = @transform_1, window_bounds = array<i64: 4, 128, 128>}, {pipeline_mode = #tpu.pipeline_mode<synchronous>, transform_indices = @transform_2, window_bounds = array<i64: 4, 128, 128>}, {transform_indices = @transform_3, window_bounds = array<i64: 1, 5, 1, 128, 128>}]} {
    %c0 = arith.constant 0 : index
    %c0_0 = arith.constant 0 : index
    %c0_1 = arith.constant 0 : index
    %c0_2 = arith.constant 0 : index
    %0 = vector.load %arg1[%c0, %c0_0, %c0_1, %c0_2] : memref<1x1x128x128xf32, #tpu.memory_space<vmem>>, vector<1x1x128x128xf32>
    %1 = vector.shape_cast %0 : vector<1x1x128x128xf32> to vector<128x128xf32>
    %c0_3 = arith.constant 0 : index
    %c0_4 = arith.constant 0 : index
    %c0_5 = arith.constant 0 : index
    %c0_6 = arith.constant 0 : index
    %c0_7 = arith.constant 0 : index
    %2 = vector.load %arg4[%c0_3, %c0_4, %c0_5, %c0_6, %c0_7] : memref<1x5x1x128x128xf32, #tpu.memory_space<vmem>>, vector<1x1x1x128x128xf32>
    %3 = vector.shape_cast %2 : vector<1x1x1x128x128xf32> to vector<128x128xf32>
    %4 = vector.shape_cast %1 : vector<128x128xf32> to vector<1x1x1x128x128xf32>
    tpu.vector_store %arg4[%c0_3, %c0_4, %c0_5, %c0_6, %c0_7], %4 {strides = array<i32>} : memref<1x5x1x128x128xf32, #tpu.memory_space<vmem>>, vector<1x1x1x128x128xf32>,
    %c0_8 = arith.constant 0 : index
    %c0_9 = arith.constant 0 : index
    %c0_10 = arith.constant 0 : index
    %5 = vector.load %arg3[%c0_8, %c0_9, %c0_10] : memref<4x128x128xf32, #tpu.memory_space<vmem>>, vector<1x128x128xf32>
    %6 = vector.shape_cast %5 : vector<1x128x128xf32> to vector<128x128xf32>
    %cst = arith.constant dense<0.000000e+00> : vector<128x128xf32>
    %7 = tpu.matmul %1, %6, %cst {dimension_numbers = #tpu.dot_dimension_numbers<[1], [0], [0], [1], [0, 0, 1, 1], [], []>, precision = #tpu.contract_precision<fp32>} : vector<128x128xf32>, vector<128x128xf32>, vector<128x128xf32> -> vector<128x128xf32>
    %c0_11 = arith.constant 0 : index
    %c0_12 = arith.constant 0 : index
    %c0_13 = arith.constant 0 : index
    %8 = vector.load %arg2[%c0_11, %c0_12, %c0_13] : memref<4x128x128xf32, #tpu.memory_space<vmem>>, vector<1x128x128xf32>
    %9 = vector.shape_cast %8 : vector<1x128x128xf32> to vector<128x128xf32>
    %cst_14 = arith.constant dense<0.000000e+00> : vector<128x128xf32>
    %10 = tpu.matmul %9, %7, %cst_14 {dimension_numbers = #tpu.dot_dimension_numbers<[1], [0], [0], [1], [0, 0, 1, 1], [], []>, precision = #tpu.contract_precision<fp32>} : vector<128x128xf32>, vector<128x128xf32>, vector<128x128xf32> -> vector<128x128xf32>
    %c0_15 = arith.constant 0 : index
    %c1 = arith.constant 1 : index
    %c0_16 = arith.constant 0 : index
    %c0_17 = arith.constant 0 : index
    %c0_18 = arith.constant 0 : index
    %11 = vector.load %arg4[%c0_15, %c1, %c0_16, %c0_17, %c0_18] : memref<1x5x1x128x128xf32, #tpu.memory_space<vmem>>, vector<1x1x1x128x128xf32>
    %12 = vector.shape_cast %11 : vector<1x1x1x128x128xf32> to vector<128x128xf32>
    %13 = vector.shape_cast %10 : vector<128x128xf32> to vector<1x1x1x128x128xf32>
    tpu.vector_store %arg4[%c0_15, %c1, %c0_16, %c0_17, %c0_18], %13 {strides = array<i32>} : memref<1x5x1x128x128xf32, #tpu.memory_space<vmem>>, vector<1x1x1x128x128xf32>,
    %c1_19 = arith.constant 1 : index
    %c0_20 = arith.constant 0 : index
    %c0_21 = arith.constant 0 : index
    %14 = vector.load %arg3[%c1_19, %c0_20, %c0_21] : memref<4x128x128xf32, #tpu.memory_space<vmem>>, vector<1x128x128xf32>
    %15 = vector.shape_cast %14 : vector<1x128x128xf32> to vector<128x128xf32>
    %cst_22 = arith.constant dense<0.000000e+00> : vector<128x128xf32>
    %16 = tpu.matmul %10, %15, %cst_22 {dimension_numbers = #tpu.dot_dimension_numbers<[1], [0], [0], [1], [0, 0, 1, 1], [], []>, precision = #tpu.contract_precision<fp32>} : vector<128x128xf32>, vector<128x128xf32>, vector<128x128xf32> -> vector<128x128xf32>
    %c1_23 = arith.constant 1 : index
    %c0_24 = arith.constant 0 : index
    %c0_25 = arith.constant 0 : index
    %17 = vector.load %arg2[%c1_23, %c0_24, %c0_25] : memref<4x128x128xf32, #tpu.memory_space<vmem>>, vector<1x128x128xf32>
    %18 = vector.shape_cast %17 : vector<1x128x128xf32> to vector<128x128xf32>
    %cst_26 = arith.constant dense<0.000000e+00> : vector<128x128xf32>
    %19 = tpu.matmul %18, %16, %cst_26 {dimension_numbers = #tpu.dot_dimension_numbers<[1], [0], [0], [1], [0, 0, 1, 1], [], []>, precision = #tpu.contract_precision<fp32>} : vector<128x128xf32>, vector<128x128xf32>, vector<128x128xf32> -> vector<128x128xf32>
    %c0_27 = arith.constant 0 : index
    %c2 = arith.constant 2 : index
    %c0_28 = arith.constant 0 : index
    %c0_29 = arith.constant 0 : index
    %c0_30 = arith.constant 0 : index
    %20 = vector.load %arg4[%c0_27, %c2, %c0_28, %c0_29, %c0_30] : memref<1x5x1x128x128xf32, #tpu.memory_space<vmem>>, vector<1x1x1x128x128xf32>
    %21 = vector.shape_cast %20 : vector<1x1x1x128x128xf32> to vector<128x128xf32>
    %22 = vector.shape_cast %19 : vector<128x128xf32> to vector<1x1x1x128x128xf32>
    tpu.vector_store %arg4[%c0_27, %c2, %c0_28, %c0_29, %c0_30], %22 {strides = array<i32>} : memref<1x5x1x128x128xf32, #tpu.memory_space<vmem>>, vector<1x1x1x128x128xf32>,
    %c2_31 = arith.constant 2 : index
    %c0_32 = arith.constant 0 : index
    %c0_33 = arith.constant 0 : index
    %23 = vector.load %arg3[%c2_31, %c0_32, %c0_33] : memref<4x128x128xf32, #tpu.memory_space<vmem>>, vector<1x128x128xf32>
    %24 = vector.shape_cast %23 : vector<1x128x128xf32> to vector<128x128xf32>
    %cst_34 = arith.constant dense<0.000000e+00> : vector<128x128xf32>
    %25 = tpu.matmul %19, %24, %cst_34 {dimension_numbers = #tpu.dot_dimension_numbers<[1], [0], [0], [1], [0, 0, 1, 1], [], []>, precision = #tpu.contract_precision<fp32>} : vector<128x128xf32>, vector<128x128xf32>, vector<128x128xf32> -> vector<128x128xf32>
    %c2_35 = arith.constant 2 : index
    %c0_36 = arith.constant 0 : index
    %c0_37 = arith.constant 0 : index
    %26 = vector.load %arg2[%c2_35, %c0_36, %c0_37] : memref<4x128x128xf32, #tpu.memory_space<vmem>>, vector<1x128x128xf32>
    %27 = vector.shape_cast %26 : vector<1x128x128xf32> to vector<128x128xf32>
    %cst_38 = arith.constant dense<0.000000e+00> : vector<128x128xf32>
    %28 = tpu.matmul %27, %25, %cst_38 {dimension_numbers = #tpu.dot_dimension_numbers<[1], [0], [0], [1], [0, 0, 1, 1], [], []>, precision = #tpu.contract_precision<fp32>} : vector<128x128xf32>, vector<128x128xf32>, vector<128x128xf32> -> vector<128x128xf32>
    %c0_39 = arith.constant 0 : index
    %c3 = arith.constant 3 : index
    %c0_40 = arith.constant 0 : index
    %c0_41 = arith.constant 0 : index
    %c0_42 = arith.constant 0 : index
    %29 = vector.load %arg4[%c0_39, %c3, %c0_40, %c0_41, %c0_42] : memref<1x5x1x128x128xf32, #tpu.memory_space<vmem>>, vector<1x1x1x128x128xf32>
    %30 = vector.shape_cast %29 : vector<1x1x1x128x128xf32> to vector<128x128xf32>
    %31 = vector.shape_cast %28 : vector<128x128xf32> to vector<1x1x1x128x128xf32>
    tpu.vector_store %arg4[%c0_39, %c3, %c0_40, %c0_41, %c0_42], %31 {strides = array<i32>} : memref<1x5x1x128x128xf32, #tpu.memory_space<vmem>>, vector<1x1x1x128x128xf32>,
    %c3_43 = arith.constant 3 : index
    %c0_44 = arith.constant 0 : index
    %c0_45 = arith.constant 0 : index
    %32 = vector.load %arg3[%c3_43, %c0_44, %c0_45] : memref<4x128x128xf32, #tpu.memory_space<vmem>>, vector<1x128x128xf32>
    %33 = vector.shape_cast %32 : vector<1x128x128xf32> to vector<128x128xf32>
    %cst_46 = arith.constant dense<0.000000e+00> : vector<128x128xf32>
    %34 = tpu.matmul %28, %33, %cst_46 {dimension_numbers = #tpu.dot_dimension_numbers<[1], [0], [0], [1], [0, 0, 1, 1], [], []>, precision = #tpu.contract_precision<fp32>} : vector<128x128xf32>, vector<128x128xf32>, vector<128x128xf32> -> vector<128x128xf32>
    %c3_47 = arith.constant 3 : index
    %c0_48 = arith.constant 0 : index
    %c0_49 = arith.constant 0 : index
    %35 = vector.load %arg2[%c3_47, %c0_48, %c0_49] : memref<4x128x128xf32, #tpu.memory_space<vmem>>, vector<1x128x128xf32>
    %36 = vector.shape_cast %35 : vector<1x128x128xf32> to vector<128x128xf32>
    %cst_50 = arith.constant dense<0.000000e+00> : vector<128x128xf32>
    %37 = tpu.matmul %36, %34, %cst_50 {dimension_numbers = #tpu.dot_dimension_numbers<[1], [0], [0], [1], [0, 0, 1, 1], [], []>, precision = #tpu.contract_precision<fp32>} : vector<128x128xf32>, vector<128x128xf32>, vector<128x128xf32> -> vector<128x128xf32>
    %c0_51 = arith.constant 0 : index
    %c4 = arith.constant 4 : index
    %c0_52 = arith.constant 0 : index
    %c0_53 = arith.constant 0 : index
    %c0_54 = arith.constant 0 : index
    %38 = vector.load %arg4[%c0_51, %c4, %c0_52, %c0_53, %c0_54] : memref<1x5x1x128x128xf32, #tpu.memory_space<vmem>>, vector<1x1x1x128x128xf32>
    %39 = vector.shape_cast %38 : vector<1x1x1x128x128xf32> to vector<128x128xf32>
    %40 = vector.shape_cast %37 : vector<128x128xf32> to vector<1x1x1x128x128xf32>
    tpu.vector_store %arg4[%c0_51, %c4, %c0_52, %c0_53, %c0_54], %40 {strides = array<i32>} : memref<1x5x1x128x128xf32, #tpu.memory_space<vmem>>, vector<1x1x1x128x128xf32>,
    return
  }
  func.func @transform_0(%arg0: i32) -> (i32, i32, i32, i32) {
    %c0_i32 = arith.constant 0 : i32
    %c0_i32_0 = arith.constant 0 : i32
    %c0_i32_1 = arith.constant 0 : i32
    %c0_i32_2 = arith.constant 0 : i32
    return %arg0, %c0_i32, %c0_i32_0, %c0_i32_1 : i32, i32, i32, i32
  }
  func.func @transform_1(%arg0: i32) -> (i32, i32, i32) {
    %c0_i32 = arith.constant 0 : i32
    %c0_i32_0 = arith.constant 0 : i32
    %c0_i32_1 = arith.constant 0 : i32
    %c0_i32_2 = arith.constant 0 : i32
    return %c0_i32, %c0_i32_0, %c0_i32_1 : i32, i32, i32
  }
  func.func @transform_2(%arg0: i32) -> (i32, i32, i32) {
    %c0_i32 = arith.constant 0 : i32
    %c0_i32_0 = arith.constant 0 : i32
    %c0_i32_1 = arith.constant 0 : i32
    %c0_i32_2 = arith.constant 0 : i32
    return %c0_i32, %c0_i32_0, %c0_i32_1 : i32, i32, i32
  }
  func.func @transform_3(%arg0: i32) -> (i32, i32, i32, i32, i32) {
    %c0_i32 = arith.constant 0 : i32
    %c0_i32_0 = arith.constant 0 : i32
    %c0_i32_1 = arith.constant 0 : i32
    %c0_i32_2 = arith.constant 0 : i32
    %c0_i32_3 = arith.constant 0 : i32
    return %arg0, %c0_i32, %c0_i32_0, %c0_i32_1, %c0_i32_2 : i32, i32, i32, i32, i32
  }
}

</mosaic_0001>

<bundles_post_ra>
// kernel: sift_gaussion.1
= control target key start
LH: loop header
LB: loop body
LE: loop exit
PB: predicated region body
PF: predicated region fallthrough
CT: control target
= control target key end

     0   :  { %8 = vsyncpa [#allocation3], 0  ;;  %s21901_s0 = inlined_call_operand.hbm [shape: f32[2,1,128,128], index: 0, kind: input, shape index: {}]   ;;  %s21902_s1 = inlined_call_operand.hbm [shape: f32[4,128,128], index: 1, kind: input, shape index: {}]   ;;  %s21903_s2 = inlined_call_operand.hbm [shape: f32[4,128,128], index: 2, kind: input, shape index: {}]   ;;  %s21904_s3 = inlined_call_operand.hbm [shape: f32[2,5,1,128,128], index: 3, kind: output, shape index: {}]  }
   0x1   :  { %10 = vsyncpa [#allocation3 + $0x1], 0 }
   0x2   :  { %11 = vsyncpa [#allocation6], 0 }
   0x3   :  { %12 = vsyncpa [#allocation4], 0 }
   0x4   :  { %14 = vsyncpa [#allocation4 + $0x1], 0  ;;  %s17585_s12 = smov 0   ;;  %s17587_s13 = smov 0  }
   0x5   :  { %s17589_s14 = smov 0   ;;  %s17591_s15 = smov 0  }
   0x6 LB: > { %s17606_s16 = sadd.s32 4294967295, %s17555_s15   ;;  %s10846_s17 = sadd.s32 4294967294, %s17555_s15   ;;  %s17555_s15 = sphi %s17591_s15, %s22637_s15   ;;  %s17551_s14 = sphi %s17589_s14, %s22636_s14   ;;  %s17547_s13 = sphi %s17587_s13, %s22635_s13   ;;  %s17543_s12 = sphi %s17585_s12, %s22634_s12  }
   0x7   : > { %p40_p0 = scmp.ne.s32.totalorder %s17547_s13, %s17543_s12  ;;  %p21905_p1 = scmp.eq.s32.totalorder %s17606_s16, 0 }
   0x8   : > { %p112_p3 = scmp.eq.s32.totalorder %s10846_s17, 1  ;;  %p10847_p5 = scmp.ge.s32.totalorder %s17555_s15, 1 }
   0x9   : > { %p17615_p4 = por %p21905_p1, %p40_p0  ;;  %p119_p7 = scmp.lt.s32.totalorder %s17555_s15, 3 }
   0xa   : > { %p17620_p6 = por %p112_p3, %p40_p0  ;;  %s17557_s21 = smov [#allocation5]  }
   0xb   : > { %s22199_s18 = scalar_select %p17615_p4, 1, 0 }
   0xc   : > { %s22200_s19 = scalar_select %p17620_p6, 1, 0 }
   0xd   : > { %p17625_p8 = pnand %p10847_p5, %p119_p7  ;;  %s131_s22 = sshll.u32 %s17557_s21, 4  ;;  %s17629_s22 = int_to_ptr.vmem [resolvable:$true] %s131_s22 }
   0xe   : > { %s17558_s24 = smov [#allocation7]   ;;  %s17399_s28 = scalar_lea.hbm %s21902_s1, 8192 }
   0xf   : > { %p17340_p9 = pneg %p17625_p8  ;;  %s144_s25 = sshll.u32 %s17558_s24, 4  ;;  %s17640_s25 = int_to_ptr.vmem [resolvable:$true] %s144_s25 }
  0x10   : > { %p17400_p12 = scmp.ne.s32.totalorder %s21902_s1, %s17399_s28  ;;  %p17406_p5 = scmp.lt.u32.totalorder %s17399_s28, %s21902_s1 }
  0x11   : > { %p17636_p11 = pnand %p17340_p9, %p21905_p1 }
  0x13   : > { %p17401_p13 = pneg %p17636_p11 }
  0x15   : > { %p17402_p0 = pnand %p17401_p13, %p17400_p12 }
  0x17   : > { %p17403_p3 = pneg %p17402_p0 }
  0x19   : > { %p17408_p7 = pnand %p17406_p5, %p17403_p3 }
  0x1b   : > { %17411 = shalt.err (!%p17408_p7)
}
  0x1c   : > { %s17412_s6 = scalar_lea.vmem %s17629_s22, 8192  ;;  %p17420_p2 = scmp.lt.s32.totalorder %s17629_s22, %s17629_s22 }
  0x1d   : > { %p17413_p9 = scmp.ne.s32.totalorder %s17629_s22, %s17412_s6  ;;  %p17421_p12 = scmp.lt.s32.totalorder %s17412_s6, %s17412_s6 }
  0x1f   : > { %p17415_p10 = pnand %p17413_p9, %p17401_p13  ;;  %p17422_p0 = por %p17421_p12, %p17420_p2 }
  0x21   : > { %p17416_p1 = pneg %p17415_p10 }
  0x23   : > { %p17423_p6 = pnand %p17422_p0, %p17416_p1 }
  0x25   : > { %17426 = shalt.err (!%p17423_p6)
}
  0x26   : > { %s17559_s7 = smov 128   ;;  %s17560_s8 = smov 8  }
  0x27   : > { %17343 = dma.hbm_to_vmem [thread:$0]  (!%p17636_p11), %s21902_s1, 8192, %s17629_s22, [#allocation6], %s17559_s7, %s17559_s7, %s17560_s8  }
  0x28   : > { %s17427_s21 = scalar_lea.hbm %s21903_s2, 8192 }
  0x29   : > { %p17428_p1 = scmp.ne.s32.totalorder %s21903_s2, %s17427_s21  ;;  %p17434_p10 = scmp.lt.u32.totalorder %s17427_s21, %s21903_s2 }
  0x2b   : > { %p17430_p2 = pnand %p17428_p1, %p17401_p13 }
  0x2d   : > { %p17431_p6 = pneg %p17430_p2 }
  0x2f   : > { %p17436_p3 = pnand %p17434_p10, %p17431_p6 }
  0x31   : > { %17439 = shalt.err (!%p17436_p3)
}
  0x32   : > { %s17440_s22 = scalar_lea.vmem %s17640_s25, 8192  ;;  %p17448_p12 = scmp.lt.s32.totalorder %s17640_s25, %s17640_s25 }
  0x33   : > { %p17441_p5 = scmp.ne.s32.totalorder %s17640_s25, %s17440_s22  ;;  %p17449_p0 = scmp.lt.s32.totalorder %s17440_s22, %s17440_s22 }
  0x35   : > { %p17443_p7 = pnand %p17441_p5, %p17401_p13  ;;  %p17450_p1 = por %p17449_p0, %p17448_p12 }
  0x37   : > { %p17444_p9 = pneg %p17443_p7 }
  0x39   : > { %p17451_p2 = pnand %p17450_p1, %p17444_p9 }
  0x3b   : > { %17454 = shalt.err (!%p17451_p2)
}
  0x3c   : > { %17346 = dma.hbm_to_vmem [thread:$0]  (!%p17636_p11), %s21903_s2, 8192, %s17640_s25, [#allocation6], %s17559_s7, %s17559_s7, %s17560_s8  }
  0x3d   : > { %s17701_s23 = sadd.s32 1, %s17555_s15   ;;  %s27_s4 = sadd.s32 1, %s17551_s14 }
  0x3e   : > { %s24_s5 = ssub.s32 %s17555_s15, %s17701_s23  ;;  %p34_p13 = scmp.ne.s32.totalorder %s17551_s14, %s17547_s13 }
  0x3f   : > { %p25_p6 = scmp.eq.s32.totalorder %s24_s5, 0  ;;  %p35_p10 = scmp.eq.s32.totalorder %s17555_s15, 0 }
  0x40   : > { %p22203_p3 = scmp.eq.s32.totalorder %s17606_s16, 1  ;;  %p17357_p7 = scmp.lt.s32.totalorder %s17555_s15, 2 }
  0x41   : > { %s17717_s9 = scalar_select %p25_p6, %s17551_s14, %s27_s4  }
  0x42   : > { %p17711_p5 = por %p22203_p3, %p34_p13  ;;  %p36_p9 = por %p35_p10, %p34_p13 }
  0x43   : > { %s158_s10 = sand.u32 1, %s17551_s14   ;;  %s10925_s25 = sshll.u32 %s17555_s15, 11 }
  0x44   : > { %s22204_s6 = scalar_select %p17711_p5, 1, 0 }
  0x45   : > { %s10851_s11 = sshll.u32 %s158_s10, 7  ;;  %s17724_s24 = scalar_lea.hbm %s21901_s0, %s10925_s25 }
  0x46   : > { %s162_s26 = scalar_lea.vmem [#allocation2], %s10851_s11  ;;  %p17728_p11 = pnand %p17357_p7, %p36_p9 }
  0x47   : > { %s169_s27 = sshll.u32 %s162_s26, 4  ;;  %s17732_s22 = scalar_lea.sflag [#allocation3], %s158_s10  ;;  %s17726_s27 = int_to_ptr.vmem [resolvable:$true] %s169_s27 }
  0x48   : > { %s17455_s29 = scalar_lea.hbm %s17724_s24, 2048  ;;  %p17457_p0 = pneg %p17728_p11 }
  0x49   : > { %p17456_p12 = scmp.ne.s32.totalorder %s17724_s24, %s17455_s29  ;;  %s17460_s5 = scalar_lea.hbm %s21901_s0, 4096 }
  0x4a   : > { %p17461_p13 = scmp.lt.u32.totalorder %s17724_s24, %s21901_s0  ;;  %p17462_p6 = scmp.lt.u32.totalorder %s17460_s5, %s17455_s29 }
  0x4b   : > { %p17458_p1 = pnand %p17457_p0, %p17456_p12  ;;  %p17464_p3 = scmp.lt.u32.totalorder %s17455_s29, %s17724_s24 }
  0x4c   : > { %p17463_p10 = por %p17462_p6, %p17461_p13 }
  0x4d   : > { %p17459_p2 = pneg %p17458_p1 }
  0x4e   : > { %p17465_p7 = por %p17464_p3, %p17463_p10 }
  0x50   : > { %p17466_p9 = pnand %p17465_p7, %p17459_p2 }
  0x52   : > { %17469 = shalt.err (!%p17466_p9)
}
  0x53   : > { %s17470_s10 = scalar_lea.vmem %s17726_s27, 2048  ;;  %s17561_s17 = smov [#allocation2]  }
  0x54   : > { %p17471_p12 = scmp.ne.s32.totalorder %s17726_s27, %s17470_s10  ;;  %s17475_s21 = sshll.u32 %s17561_s17, 4  ;;  %s17476_s21 = int_to_ptr.vmem [resolvable:$false] %s17475_s21 }
  0x55   : > { %s17477_s26 = scalar_lea.vmem %s17476_s21, 4096  ;;  %p17478_p4 = scmp.lt.s32.totalorder %s17726_s27, %s17476_s21 }
  0x56   : > { %p17473_p1 = pnand %p17471_p12, %p17457_p0  ;;  %p17479_p13 = scmp.lt.s32.totalorder %s17477_s26, %s17470_s10 }
  0x58   : > { %p17474_p5 = pneg %p17473_p1  ;;  %p17480_p6 = por %p17479_p13, %p17478_p4 }
  0x5a   : > { %p17481_p10 = pnand %p17480_p6, %p17474_p5 }
  0x5c   : > { %17484 = shalt.err (!%p17481_p10)
}
  0x5d   : > { %17350 = dma.hbm_to_vmem [thread:$0]  (!%p17728_p11), %s17724_s24, 2048, %s17726_s27, %s17732_s22, %s17559_s7, %s17559_s7, %s17560_s8  }
  0x5e   : > { %181 = sbr.rel (%p17625_p8) target bundleno = 3353 (0xd19), region = 32 }
  0x65   : > { %s17766_s29 = sand.u32 1, %s17547_s13   ;;  %p22206_p4 = scmp.ne.s32.totalorder %s22199_s18, 0 }
  0x66   : > { %s10855_s30 = sshll.u32 %s17766_s29, 7  ;;  %s184_s4 = scalar_lea.sflag [#allocation3], %s17766_s29 }
  0x67   : > { %s17770_s5 = scalar_lea.vmem [#allocation2], %s10855_s30 }
  0x68   : > { %17530 = dma.done.wait (%p22206_p4), %s184_s4, 2048  }
  0x69   : > { %17532 = vsyncadd (%p22206_p4), %s184_s4, 4294965248  ;;  %p22207_p5 = scmp.eq.s32.totalorder %s17606_s16, 0 }
  0x6b   : > { %17534 = dma.done.wait (%p22207_p5), [#allocation6], 16384   ;;  %p22208_p8 = pmov %p22207_p5 }
  0x6c   : > { %v17780_v0 = vld [vmem:[#allocation7] sm:$0xff]  ;;  %v17782_v1 = vld [vmem:[#allocation7 + $0x8] sm:$0xff]  ;;  %v17784_v2 = vld [vmem:[#allocation7 + $0x10] sm:$0xff]  ;;  %s17326_s20 = smul.u32 640, %s17766_s29  ;;  %p22631_p0 = scmp.ne.s32.totalorder %s22204_s6, 0 }
  0x6d   : > { %17536 = vsyncadd (%p22208_p8), [#allocation6], 4294950912  ;;  %v267_v3 = vand.u32 4294901760, %v17780_v0  ;;  %v270_v4 = vand.u32 4294901760, %v17782_v1  ;;  %v17789_v5 = vld [vmem:[#allocation7 + $0x18] sm:$0xff]  ;;  %v273_v6 = vand.u32 4294901760, %v17784_v2 }
  0x6e   : > { %v17792_v7 = vld [vmem:[#allocation7 + $0x20] sm:$0xff]  ;;  %v17794_v8 = vld [vmem:[#allocation7 + $0x28] sm:$0xff]  ;;  %v276_v9 = vand.u32 4294901760, %v17789_v5  ;;  %v17807_v14 = vld [vmem:[#allocation7 + $0x30] sm:$0xff]  ;;  %s17819_s18 = scalar_lea.vmem [#allocation8], %s17326_s20  ;;  %s17327_s7 = smul.u32 10240, %s17606_s16 }
  0x6f   : > { %v17797_v10 = vpack.c.bf16 %v270_v4, %v267_v3  ;;  %v279_v11 = vand.u32 4294901760, %v17792_v7  ;;  %v282_v12 = vand.u32 4294901760, %v17794_v8  ;;  %v17809_v15 = vld [vmem:[#allocation7 + $0x38] sm:$0xff]  ;;  %v17812_v16 = vld [vmem:[#allocation7 + $0x40] sm:$0xff]  ;;  %v219_v18 = vld [vmem:[%s17770_s5 + $0x8] sm:$0xff]  ;;  %v285_v25 = vand.u32 4294901760, %v17807_v14 }
  0x70   : > { %v17805_v13 = vpack.c.bf16 %v276_v9, %v273_v6  ;;  %v218_v17 = vld [vmem:[%s17770_s5] sm:$0xff]  ;;  %v17817_v19 = vld [vmem:[#allocation7 + $0x48] sm:$0xff]  ;;  %235 = vst [vmem:[%s17819_s18 + $0x8] sm:$0xff] %v219_v18  ;;  %v17826_v21 = vld [vmem:[%s17770_s5 + $0x10] sm:$0xff]  ;;  %v21917_v26 = vand.u32 4294901760, %v17809_v15  ;;  %v17861_v31 = vand.u32 4294901760, %v219_v18  ;;  %v17919_v45 = vsub.f32 %v17780_v0, %v267_v3  ;;  %s21853_s28 = scalar_lea.hbm %s21904_s3, %s17327_s7 }
  0x71   : > { %22209 = vst [vmem:[#allocation12_spill] sm:$0xff] %v17797_v10  ;;  %15151 = vmatprep.subr.bf16.mxu0 %v17797_v10  ;;  %234 = vst [vmem:[%s17819_s18] sm:$0xff] %v218_v17  ;;  %v17822_v20 = vand.u32 4294901760, %v218_v17  ;;  %v17829_v22 = vld [vmem:[%s17770_s5 + $0x18] sm:$0xff]  ;;  %v17832_v23 = vld [vmem:[%s17770_s5 + $0x20] sm:$0xff]  ;;  %v17839_v24 = vpack.c.bf16 %v282_v12, %v279_v11  ;;  %v21915_v38 = vand.u32 4294901760, %v17812_v16  ;;  %v21911_v43 = vand.u32 4294901760, %v17817_v19 }
  0x72   : > { %22210 = vst [vmem:[#allocation13_spill] sm:$0xff] %v17805_v13  ;;  %15153 = vmatpush3.bf16.msra.mxu0 %v17797_v10  ;;  %236 = vst [vmem:[%s17819_s18 + $0x10] sm:$0xff] %v17826_v21  ;;  %v17850_v27 = vld [vmem:[%s17770_s5 + $0x28] sm:$0xff]  ;;  %v17853_v28 = vld [vmem:[%s17770_s5 + $0x30] sm:$0xff]  ;;  %v17913_v42 = vpack.c.bf16 %v21917_v26, %v285_v25  ;;  %v17922_v46 = vsub.f32 %v17782_v1, %v270_v4  ;;  %v17934_v49 = vsub.f32 %v219_v18, %v17861_v31  ;;  %s10754_s8 = sshll.u32 %s17819_s18, 4  ;;  %s10741_s16 = scalar_lea.sflag [#allocation4], %s17766_s29  ;;  %s21855_s8 = int_to_ptr.vmem [resolvable:$true] %s10754_s8 }
  0x73   : > { %15155 = vmatprep.subr.bf16.mxu0 %v17805_v13  ;;  %22211 = vst [vmem:[#allocation14_spill] sm:$0xff] %v17839_v24  ;;  %237 = vst [vmem:[%s17819_s18 + $0x18] sm:$0xff] %v17829_v22  ;;  %v17856_v29 = vld [vmem:[%s17770_s5 + $0x38] sm:$0xff]  ;;  %v17859_v30 = vsub.f32 %v218_v17, %v17822_v20  ;;  %v17870_v32 = vld [vmem:[%s17770_s5 + $0x40] sm:$0xff]  ;;  %v17937_v50 = vand.u32 4294901760, %v17826_v21  ;;  %v17940_v51 = vand.u32 4294901760, %v17829_v22  ;;  %v17945_v52 = vsub.f32 %v17784_v2, %v273_v6 }
  0x74   : > { %238 = vst [vmem:[%s17819_s18 + $0x20] sm:$0xff] %v17832_v23  ;;  %239 = vst [vmem:[%s17819_s18 + $0x28] sm:$0xff] %v17850_v27  ;;  %v17873_v33 = vld [vmem:[%s17770_s5 + $0x48] sm:$0xff]  ;;  %v17876_v34 = vld [vmem:[%s17770_s5 + $0x50] sm:$0xff]  ;;  %v17956_v56 = vpack.c.bf16 %v21911_v43, %v21915_v38  ;;  %v21912_v60 = vand.u32 4294901760, %v17919_v45  ;;  %v17967_v61 = vsub.f32 %v17789_v5, %v276_v9  ;;  %v21913_v63 = vand.u32 4294901760, %v17934_v49 }
  0x75   : > { %22212 = vst [vmem:[#allocation15_spill] sm:$0xff] %v17859_v30  ;;  %240 = vst [vmem:[%s17819_s18 + $0x30] sm:$0xff] %v17853_v28  ;;  %v17885_v35 = vld [vmem:[%s17770_s5 + $0x58] sm:$0xff]  ;;  %v17888_v36 = vld [vmem:[%s17770_s5 + $0x60] sm:$0xff]  ;;  %v21908_v39 = vand.u32 4294901760, %v17859_v30  ;;  %v21914_v0 = vand.u32 4294901760, %v17922_v46  ;;  %v17975_v1 = vsub.f32 %v17826_v21, %v17937_v50  ;;  %v17979_v2 = vsub.f32 %v17829_v22, %v17940_v51 }
  0x76   : > { %241 = vst [vmem:[%s17819_s18 + $0x38] sm:$0xff] %v17856_v29  ;;  %242 = vst [vmem:[%s17819_s18 + $0x40] sm:$0xff] %v17870_v32  ;;  %v17891_v37 = vld [vmem:[%s17770_s5 + $0x68] sm:$0xff]  ;;  %15157 = vmatpush3.bf16.msra.mxu0 %v17805_v13  ;;  %v17903_v40 = vld [vmem:[%s17770_s5 + $0x70] sm:$0xff]  ;;  %v21916_v4 = vand.u32 4294901760, %v17945_v52  ;;  %v17987_v9 = vand.u32 4294901760, %v17832_v23  ;;  %v511_v22 = vsub.f32 %v17919_v45, %v21912_v60  ;;  %v18020_v60 = vsub.f32 %v17792_v7, %v279_v11 }
  0x77   : > { %243 = vst [vmem:[%s17819_s18 + $0x48] sm:$0xff] %v17873_v33  ;;  %244 = vst [vmem:[%s17819_s18 + $0x50] sm:$0xff] %v17876_v34  ;;  %v17906_v41 = vld [vmem:[%s17770_s5 + $0x78] sm:$0xff]  ;;  %15159 = vmatprep.subr.bf16.mxu0 %v17839_v24  ;;  %v17916_v44 = vld [vmem:[#allocation7 + $0x50] sm:$0xff]  ;;  %v350_v48 = vsub.f32 %v17859_v30, %v21908_v39  ;;  %v17990_v17 = vand.u32 4294901760, %v17850_v27  ;;  %v518_v39 = vsub.f32 %v17922_v46, %v21914_v0  ;;  %s17485_s22 = scalar_lea.vmem %s21855_s8, 10240 }
  0x78   : > { %245 = vst [vmem:[%s17819_s18 + $0x58] sm:$0xff] %v17885_v35  ;;  %246 = vst [vmem:[%s17819_s18 + $0x60] sm:$0xff] %v17888_v36  ;;  %v17928_v47 = vld [vmem:[#allocation7 + $0x58] sm:$0xff]  ;;  %v21910_v53 = vand.u32 4294901760, %v17916_v44  ;;  %v17949_v54 = vld [vmem:[#allocation7 + $0x60] sm:$0xff]  ;;  %v525_v43 = vsub.f32 %v17945_v52, %v21916_v4  ;;  %v18030_v0 = vsub.f32 %v17832_v23, %v17987_v9  ;;  %v18037_v4 = vand.u32 4294901760, %v17853_v28  ;;  %p17486_p11 = scmp.ne.s32.totalorder %s21855_s8, %s17485_s22 }
  0x79   : > { %247 = vst [vmem:[%s17819_s18 + $0x68] sm:$0xff] %v17891_v37  ;;  %22213 = vst [vmem:[#allocation16_spill] sm:$0xff] %v17913_v42  ;;  %v351_v55 = vand.u32 4294901760, %v350_v48  ;;  %v21909_v57 = vand.u32 4294901760, %v17928_v47  ;;  %v17959_v58 = vld [vmem:[#allocation7 + $0x68] sm:$0xff]  ;;  %v17961_v59 = vld [vmem:[#allocation7 + $0x70] sm:$0xff]  ;;  %v18034_v38 = vsub.f32 %v17850_v27, %v17990_v17 }
  0x7a   : > { %248 = vst [vmem:[%s17819_s18 + $0x70] sm:$0xff] %v17903_v40  ;;  %249 = vst [vmem:[%s17819_s18 + $0x78] sm:$0xff] %v17906_v41  ;;  %15161 = vmatpush3.bf16.msra.mxu0 %v17839_v24  ;;  %v17969_v62 = vld [vmem:[#allocation7 + $0x78] sm:$0xff]  ;;  %v21919_v3 = vand.u32 4294901760, %v17949_v54  ;;  %v21918_v5 = vand.u32 4294901760, %v17959_v58  ;;  %v21921_v6 = vand.u32 4294901760, %v17961_v59  ;;  %p17487_p2 = pnand %p17486_p11, %p22631_p0 }
  0x7b   : > { %22214 = vst [vmem:[#allocation17_spill] sm:$0xff] %v17934_v49  ;;  %15163 = vmatprep.subr.bf16.mxu0 %v17913_v42  ;;  %22215 = vst [vmem:[#allocation18_spill] sm:$0xff] %v17956_v56  ;;  %12494 = vmatprep.mubr.f32.mxu0 %v351_v55  ;;  %v17997_v18 = vpack.c.bf16 %v21909_v57, %v21910_v53  ;;  %v21920_v21 = vand.u32 4294901760, %v17969_v62  ;;  %v21924_v48 = vand.u32 4294901760, %v17967_v61  ;;  %v21922_v57 = vand.u32 4294901760, %v17975_v1  ;;  %s17562_s11 = smov [#allocation8]  }
  0x7c   : > { %22216 = vst [vmem:[#allocation19_spill] sm:$0xff] %v17975_v1  ;;  %22217 = vst [vmem:[#allocation20_spill] sm:$0xff] %v17979_v2  ;;  %v18007_v55 = vsub.f32 %v17934_v49, %v21913_v63  ;;  %v21923_v53 = vand.u32 4294901760, %v17979_v2  ;;  %v18025_v63 = vsub.f32 %v17794_v8, %v282_v12  ;;  %v18044_v7 = vpack.c.bf16 %v21918_v5, %v21919_v3  ;;  %p17488_p3 = pneg %p17487_p2  ;;  %s17489_s25 = sshll.u32 %s17562_s11, 4  ;;  %s17490_s25 = int_to_ptr.vmem [resolvable:$false] %s17489_s25 }
  0x7d   : > { %22218 = vst [vmem:[#allocation21_spill] sm:$0xff] %v17997_v18  ;;  %22219 = vst [vmem:[#allocation22_spill] sm:$0xff] %v18030_v0  ;;  %v18050_v8 = vpack.c.bf16 %v21920_v21, %v21921_v6  ;;  %v512_v11 = vand.u32 4294901760, %v511_v22  ;;  %v532_v12 = vsub.f32 %v17967_v61, %v21924_v48  ;;  %v519_v27 = vand.u32 4294901760, %v518_v39  ;;  %s17491_s10 = scalar_lea.vmem %s17490_s25, 20480  ;;  %p17492_p7 = scmp.lt.s32.totalorder %s21855_s8, %s17490_s25 }
  0x7e   : > { %15165 = vmatpush3.bf16.msra.mxu0 %v17913_v42  ;;  %22220 = vst [vmem:[#allocation23_spill] sm:$0xff] %v18034_v38  ;;  %22221 = vst [vmem:[#allocation24_spill] sm:$0xff] %v18044_v7  ;;  %v361_v23 = vand.u32 4294901760, %v18007_v55  ;;  %v370_v26 = vsub.f32 %v17975_v1, %v21922_v57  ;;  %v18062_v5 = vsub.f32 %v17979_v2, %v21923_v53  ;;  %v526_v3 = vand.u32 4294901760, %v525_v43  ;;  %p17493_p9 = scmp.lt.s32.totalorder %s17491_s10, %s17485_s22 }
  0x7f   : > { %15167 = vmatprep.subr.bf16.mxu0 %v17956_v56  ;;  %22222 = vst [vmem:[#allocation25_spill] sm:$0xff] %v18050_v8  ;;  %v18067_v6 = vand.u32 4294901760, %v17856_v29  ;;  %v18074_v57 = vsub.f32 %v17853_v28, %v18037_v4  ;;  %v18079_v43 = vsub.f32 %v17807_v14, %v285_v25  ;;  %v533_v53 = vand.u32 4294901760, %v532_v12 }
  0x80   : > { %v22224_v48 = vand.u32 4294901760, %v17809_v15  ;;  %v18088_v39 = vand.u32 4294901760, %v17870_v32  ;;  %v18091_v55 = vand.u32 4294901760, %v17873_v33  ;;  %v15182_v28 = vpack.c.bf16 %v519_v27, %v512_v11  ;;  %p17494_p12 = por %p17493_p9, %p17492_p7 }
  0x81   : > { %22223 = vst [vmem:[#allocation26_spill] sm:$0xff] %v18074_v57  ;;  %v371_v21 = vand.u32 4294901760, %v370_v26  ;;  %v22226_v25 = vand.u32 4294901760, %v17817_v19  ;;  %v22228_v42 = vand.u32 4294901760, %v18025_v63  ;;  %v18112_v11 = vsub.f32 %v17856_v29, %v18067_v6 }
  0x82   : > { %15169 = vmatpush3.bf16.msra.mxu0 %v17956_v56  ;;  %v18085_v22 = vsub.f32 %v17809_v15, %v22224_v48  ;;  %v381_v15 = vand.u32 4294901760, %v18062_v5  ;;  %v22227_v48 = vand.u32 4294901760, %v18020_v60  ;;  %v22231_v5 = vand.u32 4294901760, %v18034_v38  ;;  %p17495_p1 = pnand %p17494_p12, %p17488_p3 }
  0x83   : > { %15171 = vmatprep.subr.bf16.mxu0 %v17997_v18  ;;  %v18101_v12 = vsub.f32 %v17817_v19, %v22226_v25  ;;  %v546_v26 = vsub.f32 %v18025_v63, %v22228_v42  ;;  %22229 = vst [vmem:[#allocation27_spill] sm:$0xff] %v18112_v11  ;;  %v15186_v42 = vpack.c.bf16 %v533_v53, %v526_v3  ;;  %v18138_v27 = vand.u32 4294901760, %v17876_v34 }
  0x84   : > { %v539_v56 = vsub.f32 %v18020_v60, %v22227_v48  ;;  %v18129_v48 = vsub.f32 %v17870_v32, %v18088_v39  ;;  %v22234_v25 = vand.u32 4294901760, %v17916_v44  ;;  %v22236_v24 = vand.u32 4294901760, %v18074_v57 }
  0x85   : > { %v547_v29 = vand.u32 4294901760, %v546_v26  ;;  %v22238_v26 = vand.u32 4294901760, %v18085_v22  ;;  %v22240_v32 = vand.u32 4294901760, %v18101_v12 }
  0x86   : > { %15173 = vmatpush3.bf16.msra.mxu0 %v17997_v18  ;;  %v22225_v18 = vand.u32 4294901760, %v17812_v16  ;;  %22232 = vst [vmem:[#allocation28_spill] sm:$0xff] %v18129_v48  ;;  %v18143_v53 = vsub.f32 %v17916_v44, %v22234_v25  ;;  %v540_v3 = vand.u32 4294901760, %v539_v56  ;;  %v22237_v44 = vand.u32 4294901760, %v18079_v43 }
  0x87   : > { %15175 = vmatprep.subr.bf16.mxu0 %v18044_v7  ;;  %v560_v25 = vsub.f32 %v18085_v22, %v22238_v26 }
  0x88   : > { %v18096_v14 = vsub.f32 %v17812_v16, %v22225_v18  ;;  %v22230_v16 = vand.u32 4294901760, %v18030_v0  ;;  %v18121_v18 = vsub.f32 %v18034_v38, %v22231_v5  ;;  %v22235_v38 = vand.u32 4294901760, %v17928_v47 }
  0x89   : > { %v553_v56 = vsub.f32 %v18079_v43, %v22237_v44  ;;  %v574_v44 = vsub.f32 %v18101_v12, %v22240_v32  ;;  %v580_v26 = vand.u32 4294901760, %v18143_v53 }
  0x8a   : > { %15177 = vmatpush3.bf16.msra.mxu0 %v18044_v7  ;;  %v390_v19 = vsub.f32 %v18030_v0, %v22230_v16  ;;  %v18133_v16 = vsub.f32 %v17873_v33, %v18091_v55  ;;  %v18149_v33 = vsub.f32 %v17928_v47, %v22235_v38  ;;  %v401_v5 = vand.u32 4294901760, %v18121_v18 }
  0x8b   : > { %15179 = vmatprep.subr.bf16.mxu0 %v18050_v8  ;;  %v410_v0 = vsub.f32 %v18074_v57, %v22236_v24  ;;  %v22239_v18 = vand.u32 4294901760, %v18096_v14  ;;  %v15190_v38 = vpack.c.bf16 %v547_v29, %v540_v3  ;;  %v22242_v47 = vand.u32 4294901760, %v18112_v11 }
  0x8c   : > { %22233 = vst [vmem:[#allocation29_spill] sm:$0xff] %v18133_v16  ;;  %v391_v7 = vand.u32 4294901760, %v390_v19  ;;  %v18165_v19 = vand.u32 4294901760, %v17885_v35  ;;  %v587_v2 = vand.u32 4294901760, %v18149_v33  ;;  %v554_v13 = vand.u32 4294901760, %v553_v56 }
  0x8d   : > { %v567_v24 = vsub.f32 %v18096_v14, %v22239_v18  ;;  %v420_v57 = vsub.f32 %v18112_v11, %v22242_v47  ;;  %v18183_v18 = vand.u32 4294901760, %v17888_v36  ;;  %v411_v32 = vand.u32 4294901760, %v410_v0 }
  0x8e   : > { %15181 = vmatpush3.bf16.msra.mxu0 %v18050_v8  ;;  %v18175_v8 = vsub.f32 %v17876_v34, %v18138_v27  ;;  %v22244_v34 = vand.u32 4294901760, %v17949_v54  ;;  %v561_v3 = vand.u32 4294901760, %v560_v25  ;;  %v22246_v47 = vand.u32 4294901760, %v18129_v48 }
  0x8f   : > { %15183 = vmatprep.subr.bf16.mxu0 %v15182_v28  ;;  %22243 = vst [vmem:[#allocation31_spill] sm:$0xff] %v18183_v18  ;;  %v575_v56 = vand.u32 4294901760, %v574_v44  ;;  %v421_v25 = vand.u32 4294901760, %v420_v57  ;;  %v18218_v44 = vand.u32 4294901760, %v17903_v40  ;;  %v22248_v57 = vand.u32 4294901760, %v17961_v59 }
  0x90   : > { %22241 = vst [vmem:[#allocation30_spill] sm:$0xff] %v18175_v8  ;;  %v18188_v1 = vsub.f32 %v17949_v54, %v22244_v34  ;;  %v430_v11 = vsub.f32 %v18129_v48, %v22246_v47  ;;  %v568_v54 = vand.u32 4294901760, %v567_v24  ;;  %v18210_v47 = vsub.f32 %v17888_v36, %v18183_v18 }
  0x91   : > { %12495 = vmatmul.mubr.f32.vlgmr.msra.gmra.mrb[0].mxu0 %v361_v23  ;;  %v22245_v23 = vand.u32 4294901760, %v17959_v58  ;;  %v15194_v36 = vpack.c.bf16 %v561_v3, %v554_v13  ;;  %v22250_v10 = vand.u32 4294901760, %v18175_v8 }
  0x92   : > { %15185 = vmatpush3.bf16.msra.mxu0 %v15182_v28  ;;  %12497 = vmatprep.mubr.f32.mxu0 %v371_v21  ;;  %v22247_v21 = vand.u32 4294901760, %v18133_v16  ;;  %v18203_v28 = vsub.f32 %v17885_v35, %v18165_v19  ;;  %v594_v35 = vand.u32 4294901760, %v18188_v1  ;;  %v431_v34 = vand.u32 4294901760, %v430_v11 }
  0x93   : > { %v18193_v29 = vsub.f32 %v17959_v58, %v22245_v23  ;;  %15187 = vmatprep.subr.bf16.mxu0 %v15186_v42  ;;  %v581_v58 = vsub.f32 %v18143_v53, %v580_v26  ;;  %v588_v23 = vsub.f32 %v18149_v33, %v587_v2  ;;  %v15198_v49 = vpack.c.bf16 %v575_v56, %v568_v54 }
  0x94   : > { %v440_v0 = vsub.f32 %v18133_v16, %v22247_v21  ;;  %v18213_v21 = vand.u32 4294901760, %v17891_v37  ;;  %v21967_v16 = vand.u32 4294901760, %v18203_v28  ;;  %v450_v30 = vsub.f32 %v18175_v8, %v22250_v10 }
  0x95   : > { %12498 = vmatmul.mubr.f32.gmra.mrb[2].mxu0 %v381_v15  ;;  %v601_v24 = vand.u32 4294901760, %v18193_v29  ;;  %v18223_v15 = vsub.f32 %v17961_v59, %v22248_v57  ;;  %v582_v18 = vand.u32 4294901760, %v581_v58  ;;  %v589_v59 = vand.u32 4294901760, %v588_v23 }
  0x96   : > { %15189 = vmatpush3.bf16.msra.mxu0 %v15186_v42  ;;  %12500 = vmatprep.mubr.f32.mxu0 %v391_v7  ;;  %v22249_v42 = vand.u32 4294901760, %v17969_v62  ;;  %v441_v48 = vand.u32 4294901760, %v440_v0  ;;  %v18237_v13 = vsub.f32 %v17891_v37, %v18213_v21  ;;  %v18240_v11 = vand.u32 4294901760, %v17906_v41 }
  0x97   : > { %15191 = vmatprep.subr.bf16.mxu0 %v15190_v38  ;;  %v602_v3 = vsub.f32 %v18193_v29, %v601_v24  ;;  %v18246_v10 = vsub.f32 %v17903_v40, %v18218_v44  ;;  %v22251_v37 = vand.u32 4294901760, %v17919_v45  ;;  %v22252_v54 = vand.u32 4294901760, %v17922_v46 }
  0x98   : > { %v18229_v7 = vsub.f32 %v17969_v62, %v22249_v42  ;;  %v595_v62 = vsub.f32 %v18188_v1, %v594_v35  ;;  %v22257_v40 = vand.u32 4294901760, %v18020_v60  ;;  %v22258_v23 = vand.u32 4294901760, %v18025_v63 }
  0x99   : > { %12501 = vmatmul.mubr.f32.gmra.mrb[4].mxu0 %v401_v5  ;;  %v608_v5 = vand.u32 4294901760, %v18223_v15  ;;  %v18254_v56 = vpack.c.bf16 %v22252_v54, %v22251_v37  ;;  %v460_v57 = vsub.f32 %v18203_v28, %v21967_v16  ;;  %v22260_v8 = vand.u32 4294901760, %v18079_v43 }
  0x9a   : > { %15193 = vmatpush3.bf16.msra.mxu0 %v15190_v38  ;;  %12503 = vmatprep.mubr.f32.mxu0 %v411_v32  ;;  %v615_v0 = vand.u32 4294901760, %v18229_v7  ;;  %v22254_v38 = vand.u32 4294901760, %v17945_v52  ;;  %v22255_v32 = vand.u32 4294901760, %v17967_v61  ;;  %v18266_v42 = vpack.c.bf16 %v22258_v23, %v22257_v40 }
  0x9b   : > { %15195 = vmatprep.subr.bf16.mxu0 %v15194_v36  ;;  %22253 = vst [vmem:[#allocation32_spill] sm:$0xff] %v18254_v56  ;;  %v22261_v37 = vand.u32 4294901760, %v18085_v22  ;;  %v22262_v56 = vand.u32 4294901760, %v18096_v14  ;;  %v479_v40 = vand.u32 4294901760, %v18237_v13  ;;  %v18288_v23 = vsub.f32 %v17906_v41, %v18240_v11 }
  0x9c   : > { %v18260_v58 = vpack.c.bf16 %v22255_v32, %v22254_v38  ;;  %22259 = vst [vmem:[#allocation34_spill] sm:$0xff] %v18266_v42  ;;  %v22263_v38 = vand.u32 4294901760, %v18101_v12  ;;  %v18290_v16 = vpack.c.bf16 %v601_v24, %v594_v35  ;;  %v18292_v42 = vpack.c.bf16 %v615_v0, %v608_v5 }
  0x9d   : > { %v18275_v54 = vpack.c.bf16 %v22261_v37, %v22260_v8  ;;  %12504 = vmatmul.mubr.f32.gmra.mrb[6].mxu0 %v421_v25  ;;  %v451_v8 = vand.u32 4294901760, %v450_v30  ;;  %v15202_v37 = vpack.c.bf16 %v589_v59, %v582_v18  ;;  %v596_v25 = vand.u32 4294901760, %v595_v62 }
  0x9e   : > { %22256 = vst [vmem:[#allocation33_spill] sm:$0xff] %v18260_v58  ;;  %v18281_v32 = vpack.c.bf16 %v22263_v38, %v22262_v56  ;;  %v18283_v58 = vpack.c.bf16 %v587_v2, %v580_v26  ;;  %15197 = vmatpush3.bf16.msra.mxu0 %v15194_v36  ;;  %12506 = vmatprep.mubr.f32.mxu0 %v431_v34  ;;  %v22264_v56 = vand.u32 4294901760, %v18210_v47  ;;  %v489_v26 = vand.u32 4294901760, %v18246_v10 }
  0x9f   : > { %15199 = vmatprep.subr.bf16.mxu0 %v15198_v49  ;;  %v603_v38 = vand.u32 4294901760, %v602_v3  ;;  %v609_v41 = vsub.f32 %v18223_v15, %v608_v5  ;;  %v616_v35 = vsub.f32 %v18229_v7, %v615_v0  ;;  %v461_v24 = vand.u32 4294901760, %v460_v57 }
  0xa0   : > { %v470_v2 = vsub.f32 %v18210_v47, %v22264_v56  ;;  %v480_v30 = vsub.f32 %v18237_v13, %v479_v40  ;;  %v499_v18 = vand.u32 4294901760, %v18288_v23  ;;  %v490_v36 = vsub.f32 %v18246_v10, %v489_v26 }
  0xa1   : > { %12507 = vmatmul.mubr.f32.gmra.mrb[8].mxu0 %v441_v48  ;;  %v15206_v59 = vpack.c.bf16 %v603_v38, %v596_v25  ;;  %v610_v62 = vand.u32 4294901760, %v609_v41  ;;  %v617_v3 = vand.u32 4294901760, %v616_v35  ;;  %v15222_v56 = vpack.c.bf16 %v18025_v63, %v18020_v60  ;;  %v22277_v25 = vld [vmem:[#allocation27_spill] sm:$0xff]  ;;  %v22278_v38 = vld [vmem:[#allocation28_spill] sm:$0xff]  ;;  %v22279_v41 = vld [vmem:[#allocation18_spill] sm:$0xff] }
  0xa2   : > { %15201 = vmatpush3.bf16.msra.mxu0 %v15198_v49  ;;  %12509 = vmatprep.mubr.f32.mxu0 %v451_v8  ;;  %v471_v34 = vand.u32 4294901760, %v470_v2  ;;  %v481_v48 = vand.u32 4294901760, %v480_v30  ;;  %v500_v57 = vsub.f32 %v18288_v23, %v499_v18  ;;  %v491_v5 = vand.u32 4294901760, %v490_v36  ;;  %v22276_v2 = vld [vmem:[#allocation16_spill] sm:$0xff]  ;;  %v22280_v35 = vld [vmem:[#allocation29_spill] sm:$0xff] }
  0xa3   : > { %15203 = vmatprep.subr.bf16.mxu0 %v15202_v37  ;;  %v15210_v49 = vpack.c.bf16 %v617_v3, %v610_v62  ;;  %v15214_v8 = vpack.c.bf16 %v17922_v46, %v17919_v45  ;;  %v15226_v45 = vpack.c.bf16 %v18085_v22, %v18079_v43  ;;  %v15230_v46 = vpack.c.bf16 %v18101_v12, %v18096_v14  ;;  %v22266_v22 = vld [vmem:[#allocation15_spill] sm:$0xff]  ;;  %v22268_v43 = vld [vmem:[#allocation17_spill] sm:$0xff]  ;;  %v22286_v62 = vld [vmem:[#allocation32_spill] sm:$0xff] }
  0xa4   : > { %v501_v0 = vand.u32 4294901760, %v500_v57  ;;  %v15238_v60 = vpack.c.bf16 %v18193_v29, %v18188_v1  ;;  %v15242_v63 = vpack.c.bf16 %v18229_v7, %v18223_v15  ;;  %v22267_v1 = vld [vmem:[#allocation12_spill] sm:$0xff]  ;;  %v22269_v14 = vld [vmem:[#allocation19_spill] sm:$0xff]  ;;  %v22270_v12 = vld [vmem:[#allocation13_spill] sm:$0xff]  ;;  %v22287_v3 = vand.u32 4294901760, %v22268_v43 }
  0xa5   : > { %12510 = vmatmul.mubr.f32.gmra.mrb[10].mxu0 %v461_v24  ;;  %v22273_v29 = vld [vmem:[#allocation14_spill] sm:$0xff]  ;;  %v22274_v15 = vld [vmem:[#allocation23_spill] sm:$0xff]  ;;  %v22282_v30 = vld [vmem:[#allocation21_spill] sm:$0xff] }
  0xa6   : > { %15205 = vmatpush3.bf16.msra.mxu0 %v15202_v37  ;;  %12512 = vmatprep.mubr.f32.mxu0 %v471_v34  ;;  %v15218_v37 = vpack.c.bf16 %v17967_v61, %v17945_v52  ;;  %v15234_v52 = vpack.c.bf16 %v18149_v33, %v18143_v53  ;;  %v22265_v61 = vld [vmem:[#allocation31_spill] sm:$0xff]  ;;  %v22271_v53 = vld [vmem:[#allocation20_spill] sm:$0xff]  ;;  %v22272_v33 = vld [vmem:[#allocation22_spill] sm:$0xff] }
  0xa7   : > { %15207 = vmatprep.subr.bf16.mxu0 %v15206_v59  ;;  %v22275_v7 = vld [vmem:[#allocation26_spill] sm:$0xff]  ;;  %v22283_v34 = vld [vmem:[#allocation24_spill] sm:$0xff]  ;;  %v22284_v36 = vld [vmem:[#allocation25_spill] sm:$0xff] }
  0xa8   : > { %v22281_v24 = vld [vmem:[#allocation30_spill] sm:$0xff]  ;;  %v22289_v57 = vld [vmem:[#allocation33_spill] sm:$0xff] }
  0xa9   : > { %12513 = vmatmul.mubr.f32.gmra.mrb[12].mxu0 %v481_v48  ;;  %v22288_v48 = vand.u32 4294901760, %v22269_v14 }
  0xaa   : > { %15209 = vmatpush3.bf16.msra.mxu0 %v15206_v59  ;;  %12515 = vmatprep.mubr.f32.mxu0 %v491_v5  ;;  %v22285_v59 = vand.u32 4294901760, %v22266_v22  ;;  %v22290_v5 = vand.u32 4294901760, %v22271_v53 }
  0xab   : > { %15211 = vmatprep.subr.bf16.mxu0 %v15210_v49 }
  0xad   : > { %12516 = vmatmul.mubr.f32.gmra.mrb[14].mxu0 %v501_v0  ;;  %v22292_v0 = vld [vmem:[#allocation34_spill] sm:$0xff] }
  0xae   : > { %15213 = vmatpush3.bf16.msra.mxu0 %v15210_v49  ;;  %12550 = vmatprep.mubr.f32.mxu0 %v17822_v20  ;;  %v22291_v49 = vand.u32 4294901760, %v22272_v33 }
  0xaf   : > { %15215 = vmatprep.subr.bf16.mxu0 %v15214_v8 }
  0xb1   : > { %12551 = vmatmul.mubr.f32.vlgmr.msra.gmra.mrb[0].mxu0 %v17861_v31 }
  0xb2   : > { %15217 = vmatpush3.bf16.msra.mxu0 %v15214_v8  ;;  %12553 = vmatprep.mubr.f32.mxu0 %v17937_v50  ;;  %v22293_v8 = vand.u32 4294901760, %v22274_v15 }
  0xb3   : > { %15219 = vmatprep.subr.bf16.mxu0 %v15218_v37 }
  0xb5   : > { %12554 = vmatmul.mubr.f32.gmra.mrb[2].mxu0 %v17940_v51 }
  0xb6   : > { %15221 = vmatpush3.bf16.msra.mxu0 %v15218_v37  ;;  %12556 = vmatprep.mubr.f32.mxu0 %v17987_v9  ;;  %v22294_v37 = vand.u32 4294901760, %v22275_v7 }
  0xb7   : > { %15223 = vmatprep.subr.bf16.mxu0 %v15222_v56 }
  0xb9   : > { %12557 = vmatmul.mubr.f32.gmra.mrb[4].mxu0 %v17990_v17 }
  0xba   : > { %15225 = vmatpush3.bf16.msra.mxu0 %v15222_v56  ;;  %12559 = vmatprep.mubr.f32.mxu0 %v18037_v4  ;;  %v22295_v56 = vand.u32 4294901760, %v22277_v25 }
  0xbb   : > { %15227 = vmatprep.subr.bf16.mxu0 %v15226_v45 }
  0xbd   : > { %12560 = vmatmul.mubr.f32.gmra.mrb[6].mxu0 %v18067_v6 }
  0xbe   : > { %15229 = vmatpush3.bf16.msra.mxu0 %v15226_v45  ;;  %12562 = vmatprep.mubr.f32.mxu0 %v18088_v39  ;;  %v22296_v45 = vand.u32 4294901760, %v22278_v38 }
  0xbf   : > { %15231 = vmatprep.subr.bf16.mxu0 %v15230_v46 }
  0xc1   : > { %12563 = vmatmul.mubr.f32.gmra.mrb[8].mxu0 %v18091_v55 }
  0xc2   : > { %15233 = vmatpush3.bf16.msra.mxu0 %v15230_v46  ;;  %12565 = vmatprep.mubr.f32.mxu0 %v18138_v27  ;;  %v22297_v46 = vand.u32 4294901760, %v22280_v35 }
  0xc3   : > { %15235 = vmatprep.subr.bf16.mxu0 %v15234_v52 }
  0xc5   : > { %12566 = vmatmul.mubr.f32.gmra.mrb[10].mxu0 %v18165_v19 }
  0xc6   : > { %15237 = vmatpush3.bf16.msra.mxu0 %v15234_v52  ;;  %12568 = vmatprep.mubr.f32.mxu0 %v22265_v61  ;;  %v22298_v52 = vand.u32 4294901760, %v22281_v24 }
  0xc7   : > { %15239 = vmatprep.subr.bf16.mxu0 %v15238_v60 }
  0xc9   : > { %12569 = vmatmul.mubr.f32.gmra.mrb[12].mxu0 %v18213_v21 }
  0xca   : > { %15241 = vmatpush3.bf16.msra.mxu0 %v15238_v60  ;;  %12571 = vmatprep.mubr.f32.mxu0 %v18218_v44  ;;  %v22299_v60 = vand.u32 4294901760, %v18203_v28 }
  0xcb   : > { %15243 = vmatprep.subr.bf16.mxu0 %v15242_v63 }
  0xcd   : > { %12572 = vmatmul.mubr.f32.gmra.mrb[14].mxu0 %v18240_v11 }
  0xce   : > { %15245 = vmatpush3.bf16.msra.mxu0 %v15242_v63  ;;  %12606 = vmatprep.mubr.f32.mxu0 %v22266_v22 }
  0xcf   : > { %15247 = vmatprep.subr.bf16.mxu0 %v22267_v1 }
  0xd1   : > { %12607 = vmatmul.mubr.f32.vlgmr.msra.gmra.mrb[0].mxu0 %v22268_v43 }
  0xd2   : > { %15249 = vmatpush3.bf16.msra.mxu0 %v22267_v1  ;;  %12609 = vmatprep.mubr.f32.mxu0 %v22269_v14 }
  0xd3   : > { %15251 = vmatprep.subr.bf16.mxu0 %v22270_v12 }
  0xd5   : > { %12610 = vmatmul.mubr.f32.gmra.mrb[2].mxu0 %v22271_v53 }
  0xd6   : > { %15253 = vmatpush3.bf16.msra.mxu0 %v22270_v12  ;;  %12612 = vmatprep.mubr.f32.mxu0 %v22272_v33 }
  0xd7   : > { %15255 = vmatprep.subr.bf16.mxu0 %v22273_v29 }
  0xd9   : > { %12613 = vmatmul.mubr.f32.gmra.mrb[4].mxu0 %v22274_v15 }
  0xda   : > { %15257 = vmatpush3.bf16.msra.mxu0 %v22273_v29  ;;  %12615 = vmatprep.mubr.f32.mxu0 %v22275_v7 }
  0xdb   : > { %15259 = vmatprep.subr.bf16.mxu0 %v22276_v2 }
  0xdd   : > { %12616 = vmatmul.mubr.f32.gmra.mrb[6].mxu0 %v22277_v25 }
  0xde   : > { %15261 = vmatpush3.bf16.msra.mxu0 %v22276_v2  ;;  %12618 = vmatprep.mubr.f32.mxu0 %v22278_v38 }
  0xdf   : > { %15263 = vmatprep.subr.bf16.mxu0 %v22279_v41 }
  0xe1   : > { %12619 = vmatmul.mubr.f32.gmra.mrb[8].mxu0 %v22280_v35 }
  0xe2   : > { %15265 = vmatpush3.bf16.msra.mxu0 %v22279_v41  ;;  %12621 = vmatprep.mubr.f32.mxu0 %v22281_v24 }
  0xe3   : > { %15267 = vmatprep.subr.bf16.mxu0 %v22282_v30 }
  0xe5   : > { %12622 = vmatmul.mubr.f32.gmra.mrb[10].mxu0 %v18203_v28 }
  0xe6   : > { %15269 = vmatpush3.bf16.msra.mxu0 %v22282_v30  ;;  %12624 = vmatprep.mubr.f32.mxu0 %v18210_v47 }
  0xe7   : > { %15271 = vmatprep.subr.bf16.mxu0 %v22283_v34 }
  0xe9   : > { %12625 = vmatmul.mubr.f32.gmra.mrb[12].mxu0 %v18237_v13 }
  0xea   : > { %15273 = vmatpush3.bf16.msra.mxu0 %v22283_v34  ;;  %12627 = vmatprep.mubr.f32.mxu0 %v18246_v10 }
  0xeb   : > { %15275 = vmatprep.subr.bf16.mxu0 %v22284_v36 }
  0xed   : > { %12628 = vmatmul.mubr.f32.gmra.mrb[14].mxu0 %v18288_v23 }
  0xee   : > { %15277 = vmatpush3.bf16.msra.mxu0 %v22284_v36  ;;  %12662 = vmatprep.mubr.f32.mxu0 %v22285_v59 }
  0xef   : > { %15279 = vmatprep.subr.bf16.mxu0 %v22286_v62 }
  0xf1   : > { %12663 = vmatmul.mubr.f32.vlgmr.msra.gmra.mrb[0].mxu0 %v22287_v3 }
  0xf2   : > { %15281 = vmatpush3.bf16.msra.mxu0 %v22286_v62  ;;  %12665 = vmatprep.mubr.f32.mxu0 %v22288_v48 }
  0xf3   : > { %15283 = vmatprep.subr.bf16.mxu0 %v22289_v57 }
  0xf5   : > { %12666 = vmatmul.mubr.f32.gmra.mrb[2].mxu0 %v22290_v5 }
  0xf6   : > { %15285 = vmatpush3.bf16.msra.mxu0 %v22289_v57  ;;  %12668 = vmatprep.mubr.f32.mxu0 %v22291_v49 }
  0xf7   : > { %15287 = vmatprep.subr.bf16.mxu0 %v22292_v0 }
  0xf9   : > { %12669 = vmatmul.mubr.f32.gmra.mrb[4].mxu0 %v22293_v8 }
  0xfa   : > { %15289 = vmatpush3.bf16.msra.mxu0 %v22292_v0  ;;  %12671 = vmatprep.mubr.f32.mxu0 %v22294_v37 }
  0xfb   : > { %15291 = vmatprep.subr.bf16.mxu0 %v18275_v54 }
  0xfd   : > { %12672 = vmatmul.mubr.f32.gmra.mrb[6].mxu0 %v22295_v56 }
  0xfe   : > { %15293 = vmatpush3.bf16.msra.mxu0 %v18275_v54  ;;  %12674 = vmatprep.mubr.f32.mxu0 %v22296_v45  ;;  %v22300_v54 = vand.u32 4294901760, %v18210_v47 }
  0xff   : > { %15295 = vmatprep.subr.bf16.mxu0 %v18281_v32 }
 0x101   : > { %12675 = vmatmul.mubr.f32.gmra.mrb[8].mxu0 %v22297_v46 }
 0x102   : > { %15297 = vmatpush3.bf16.msra.mxu0 %v18281_v32  ;;  %12677 = vmatprep.mubr.f32.mxu0 %v22298_v52  ;;  %v1556_v32 = vld [vmem:[#allocation5 + $0x20] sm:$0xff] }
 0x103   : > { %15299 = vmatprep.subr.bf16.mxu0 %v18283_v58  ;;  %v18504_v14 = vand.u32 4294901760, %v1556_v32 }
 0x105   : > { %12678 = vmatmul.mubr.f32.gmra.mrb[10].mxu0 %v22299_v60  ;;  %v18527_v8 = vsub.f32 %v1556_v32, %v18504_v14 }
 0x106   : > { %15301 = vmatpush3.bf16.msra.mxu0 %v18283_v58  ;;  %12680 = vmatprep.mubr.f32.mxu0 %v22300_v54 }
 0x107   : > { %15303 = vmatprep.subr.bf16.mxu0 %v18290_v16 }
 0x109   : > { %12681 = vmatmul.mubr.f32.gmra.mrb[12].mxu0 %v479_v40 }
 0x10a   : > { %15305 = vmatpush3.bf16.msra.mxu0 %v18290_v16  ;;  %12683 = vmatprep.mubr.f32.mxu0 %v489_v26 }
 0x10b   : > { %15307 = vmatprep.subr.bf16.mxu0 %v18292_v42 }
 0x10d   : > { %12684 = vmatmul.mubr.f32.gmra.mrb[14].mxu0 %v499_v18 }
 0x10e   : > { %15309 = vmatpush3.bf16.msra.mxu0 %v18292_v42  ;;  %12718 = vmatprep.mubr.f32.mxu0 %v17822_v20 }
 0x10f   : > { %15311 = vmatprep.subr.bf16.mxu0 %v22267_v1 }
 0x111   : > { %12719 = vmatmul.mubr.f32.vlgmr.msra.gmra.mrb[0].mxu0 %v17861_v31 }
 0x112   : > { %15313 = vmatpush3.bf16.msra.mxu0 %v22267_v1  ;;  %12721 = vmatprep.mubr.f32.mxu0 %v17937_v50 }
 0x113   : > { %15315 = vmatprep.subr.bf16.mxu0 %v22270_v12 }
 0x115   : > { %12722 = vmatmul.mubr.f32.gmra.mrb[2].mxu0 %v17940_v51 }
 0x116   : > { %15317 = vmatpush3.bf16.msra.mxu0 %v22270_v12  ;;  %12724 = vmatprep.mubr.f32.mxu0 %v17987_v9  ;;  %v1557_v12 = vld [vmem:[#allocation5 + $0x28] sm:$0xff] }
 0x117   : > { %15319 = vmatprep.subr.bf16.mxu0 %v22273_v29  ;;  %v18515_v59 = vand.u32 4294901760, %v1557_v12 }
 0x119   : > { %12725 = vmatmul.mubr.f32.gmra.mrb[4].mxu0 %v17990_v17 }
 0x11a   : > { %15321 = vmatpush3.bf16.msra.mxu0 %v22273_v29  ;;  %12727 = vmatprep.mubr.f32.mxu0 %v18037_v4 }
 0x11b   : > { %15323 = vmatprep.subr.bf16.mxu0 %v22276_v2 }
 0x11d   : > { %12728 = vmatmul.mubr.f32.gmra.mrb[6].mxu0 %v18067_v6 }
 0x11e   : > { %15325 = vmatpush3.bf16.msra.mxu0 %v22276_v2  ;;  %12730 = vmatprep.mubr.f32.mxu0 %v18088_v39 }
 0x11f   : > { %15327 = vmatprep.subr.bf16.mxu0 %v22279_v41 }
 0x121   : > { %12731 = vmatmul.mubr.f32.gmra.mrb[8].mxu0 %v18091_v55 }
 0x122   : > { %15329 = vmatpush3.bf16.msra.mxu0 %v22279_v41  ;;  %12733 = vmatprep.mubr.f32.mxu0 %v18138_v27 }
 0x123   : > { %15331 = vmatprep.subr.bf16.mxu0 %v22282_v30 }
 0x125   : > { %12734 = vmatmul.mubr.f32.gmra.mrb[10].mxu0 %v18165_v19 }
 0x126   : > { %15333 = vmatpush3.bf16.msra.mxu0 %v22282_v30  ;;  %12736 = vmatprep.mubr.f32.mxu0 %v22265_v61 }
 0x127   : > { %15335 = vmatprep.subr.bf16.mxu0 %v22283_v34 }
 0x129   : > { %12737 = vmatmul.mubr.f32.gmra.mrb[12].mxu0 %v18213_v21 }
 0x12a   : > { %15337 = vmatpush3.bf16.msra.mxu0 %v22283_v34  ;;  %12739 = vmatprep.mubr.f32.mxu0 %v18218_v44 }
 0x12b   : > { %15339 = vmatprep.subr.bf16.mxu0 %v22284_v36 }
 0x12d   : > { %12740 = vmatmul.mubr.f32.gmra.mrb[14].mxu0 %v18240_v11 }
 0x12e   : > { %15341 = vmatpush3.bf16.msra.mxu0 %v22284_v36  ;;  %12774 = vmatprep.mubr.f32.mxu0 %v17822_v20  ;;  %v1552_v20 = vld [vmem:[#allocation5] sm:$0xff] }
 0x131   : > { %12775 = vmatmul.mubr.f32.vlgmr.msra.gmra.mrb[0].mxu0 %v17861_v31  ;;  %v18470_v31 = vand.u32 4294901760, %v1552_v20 }
 0x132   : > { %12777 = vmatprep.mubr.f32.mxu0 %v17937_v50 }
 0x133   : > { %v18473_v50 = vsub.f32 %v1552_v20, %v18470_v31 }
 0x135   : > { %12778 = vmatmul.mubr.f32.gmra.mrb[2].mxu0 %v17940_v51  ;;  %v21972_v51 = vand.u32 4294901760, %v18473_v50 }
 0x136   : > { %12780 = vmatprep.mubr.f32.mxu0 %v17987_v9  ;;  %v1553_v9 = vld [vmem:[#allocation5 + $0x8] sm:$0xff] }
 0x139   : > { %12781 = vmatmul.mubr.f32.gmra.mrb[4].mxu0 %v17990_v17  ;;  %v18479_v17 = vand.u32 4294901760, %v1553_v9 }
 0x13a   : > { %12783 = vmatprep.mubr.f32.mxu0 %v18037_v4  ;;  %v1652_v4 = vsub.f32 %v18473_v50, %v21972_v51  ;;  %v1560_v51 = vld [vmem:[#allocation5 + $0x40] sm:$0xff] }
 0x13d   : > { %12784 = vmatmul.mubr.f32.gmra.mrb[6].mxu0 %v18067_v6  ;;  %v1653_v6 = vand.u32 4294901760, %v1652_v4 }
 0x13e   : > { %12786 = vmatprep.mubr.f32.mxu0 %v18088_v39  ;;  %v1554_v39 = vld [vmem:[#allocation5 + $0x10] sm:$0xff] }
 0x13f   : > { %12830 = vmatprep.mubr.f32.mxu1 %v1653_v6  ;;  %v18484_v16 = vand.u32 4294901760, %v1554_v39 }
 0x141   : > { %12787 = vmatmul.mubr.f32.gmra.mrb[8].mxu0 %v18091_v55  ;;  %v18482_v55 = vsub.f32 %v1553_v9, %v18479_v17  ;;  %v18490_v13 = vsub.f32 %v1554_v39, %v18484_v16 }
 0x142   : > { %12789 = vmatprep.mubr.f32.mxu0 %v18138_v27  ;;  %v1555_v27 = vld [vmem:[#allocation5 + $0x18] sm:$0xff] }
 0x143   : > { %v18487_v28 = vand.u32 4294901760, %v1555_v27  ;;  %v21970_v22 = vand.u32 4294901760, %v18490_v13 }
 0x145   : > { %12790 = vmatmul.mubr.f32.gmra.mrb[10].mxu0 %v18165_v19  ;;  %v21971_v19 = vand.u32 4294901760, %v18482_v55  ;;  %v18498_v42 = vsub.f32 %v1555_v27, %v18487_v28  ;;  %v18524_v0 = vsub.f32 %v18490_v13, %v21970_v22 }
 0x146   : > { %12792 = vmatprep.mubr.f32.mxu0 %v22265_v61 }
 0x147   : > { %v18495_v58 = vsub.f32 %v18482_v55, %v21971_v19  ;;  %v21969_v7 = vand.u32 4294901760, %v18498_v42 }
 0x149   : > { %12793 = vmatmul.mubr.f32.gmra.mrb[12].mxu0 %v18213_v21 }
 0x14a   : > { %12795 = vmatprep.mubr.f32.mxu0 %v18218_v44 }
 0x14d   : > { %12796 = vmatmul.mubr.f32.gmra.mrb[14].mxu0 %v18240_v11 }
 0x204   : > { %v12776_v47 = vpop.f32.mrb[0].mxu0 }
 0x205   : > { %v1572_v21 = vand.u32 4294901760, %v12776_v47  ;;  %v1458_v44 = vpop.f32.mrb[1].mxu0 }
 0x206   : > { %v1569_v11 = vand.u32 4294901760, %v1458_v44 }
 0x207   : > { %v1818_v10 = vsub.f32 %v12776_v47, %v1572_v21 }
 0x208   : > { %v18500_v40 = vpack.c.bf16 %v1572_v21, %v1569_v11  ;;  %v1811_v23 = vsub.f32 %v1458_v44, %v1569_v11  ;;  %v12779_v26 = vpop.f32.mrb[2].mxu0  ;;  %v18542_v11 = vsub.f32 %v18498_v42, %v21969_v7 }
 0x209   : > { %v1819_v18 = vand.u32 4294901760, %v1818_v10  ;;  %v1578_v61 = vand.u32 4294901760, %v12779_v26  ;;  %v1470_v63 = vpop.f32.mrb[3].mxu0 }
 0x20a   : > { %v1812_v1 = vand.u32 4294901760, %v1811_v23  ;;  %v1575_v43 = vand.u32 4294901760, %v1470_v63  ;;  %15343 = vmatprep.subr.bf16.mxu1 %v18500_v40  ;;  %v18506_v53 = vpack.c.bf16 %v1818_v10, %v1811_v23 }
 0x20b   : > { %v1820_v33 = vsub.f32 %v1818_v10, %v1819_v18  ;;  %v1832_v29 = vsub.f32 %v12779_v26, %v1578_v61  ;;  %15345 = vmatpush3.bf16.msra.mxu1 %v18500_v40  ;;  %v18545_v10 = vsub.f32 %v1557_v12, %v18515_v59 }
 0x20c   : > { %v1813_v2 = vsub.f32 %v1811_v23, %v1812_v1  ;;  %v18511_v25 = vpack.c.bf16 %v1578_v61, %v1575_v43  ;;  %v1825_v38 = vsub.f32 %v1470_v63, %v1575_v43  ;;  %v12782_v41 = vpop.f32.mrb[4].mxu0  ;;  %v18513_v35 = vpack.c.bf16 %v1819_v18, %v1812_v1 }
 0x20d   : > { %v1833_v24 = vand.u32 4294901760, %v1832_v29  ;;  %v1584_v30 = vand.u32 4294901760, %v12782_v41  ;;  %v1482_v34 = vpop.f32.mrb[5].mxu0  ;;  %v1821_v36 = vand.u32 4294901760, %v1820_v33 }
 0x20e   : > { %22301 = vst [vmem:[#allocation31_spill] sm:$0xff] %v18513_v35  ;;  %v1826_v62 = vand.u32 4294901760, %v1825_v38  ;;  %v1581_v3 = vand.u32 4294901760, %v1482_v34  ;;  %15347 = vmatprep.subr.bf16.mxu1 %v18511_v25  ;;  %v1814_v48 = vand.u32 4294901760, %v1813_v2  ;;  %v18518_v57 = vpack.c.bf16 %v1832_v29, %v1825_v38 }
 0x20f   : > { %v1834_v5 = vsub.f32 %v1832_v29, %v1833_v24  ;;  %v1846_v49 = vsub.f32 %v12782_v41, %v1584_v30  ;;  %15349 = vmatpush3.bf16.msra.mxu1 %v18511_v25 }
 0x210   : > { %v1827_v37 = vsub.f32 %v1825_v38, %v1826_v62  ;;  %v18529_v56 = vpack.c.bf16 %v1584_v30, %v1581_v3  ;;  %v1839_v45 = vsub.f32 %v1482_v34, %v1581_v3  ;;  %v12785_v46 = vpop.f32.mrb[6].mxu0  ;;  %v18531_v52 = vpack.c.bf16 %v1821_v36, %v1814_v48 }
 0x211   : > { %v1847_v60 = vand.u32 4294901760, %v1846_v49  ;;  %v1590_v54 = vand.u32 4294901760, %v12785_v46  ;;  %v1494_v20 = vpop.f32.mrb[7].mxu0  ;;  %v1835_v4 = vand.u32 4294901760, %v1834_v5  ;;  %v18533_v6 = vpack.c.bf16 %v1833_v24, %v1826_v62 }
 0x212   : > { %v1840_v9 = vand.u32 4294901760, %v1839_v45  ;;  %v1587_v39 = vand.u32 4294901760, %v1494_v20  ;;  %15351 = vmatprep.subr.bf16.mxu1 %v18529_v56  ;;  %v1828_v27 = vand.u32 4294901760, %v1827_v37  ;;  %v18536_v47 = vpack.c.bf16 %v1846_v49, %v1839_v45  ;;  %v1558_v37 = vld [vmem:[#allocation5 + $0x30] sm:$0xff] }
 0x213   : > { %22302 = vst [vmem:[#allocation15_spill] sm:$0xff] %v18533_v6  ;;  %v1848_v21 = vsub.f32 %v1846_v49, %v1847_v60  ;;  %v1860_v44 = vsub.f32 %v12785_v46, %v1590_v54  ;;  %15353 = vmatpush3.bf16.msra.mxu1 %v18529_v56 }
 0x214   : > { %v1841_v32 = vsub.f32 %v1839_v45, %v1840_v9  ;;  %v18547_v23 = vpack.c.bf16 %v1590_v54, %v1587_v39  ;;  %v1853_v26 = vsub.f32 %v1494_v20, %v1587_v39  ;;  %v12788_v18 = vpop.f32.mrb[8].mxu0  ;;  %v18549_v61 = vpack.c.bf16 %v1835_v4, %v1828_v27 }
 0x215   : > { %v1861_v63 = vand.u32 4294901760, %v1860_v44  ;;  %v1596_v1 = vand.u32 4294901760, %v12788_v18  ;;  %v1506_v43 = vpop.f32.mrb[9].mxu0  ;;  %v1849_v33 = vand.u32 4294901760, %v1848_v21  ;;  %v18551_v29 = vpack.c.bf16 %v1847_v60, %v1840_v9 }
 0x216   : > { %v1854_v2 = vand.u32 4294901760, %v1853_v26  ;;  %v1593_v38 = vand.u32 4294901760, %v1506_v43  ;;  %15355 = vmatprep.subr.bf16.mxu1 %v18547_v23  ;;  %v1842_v41 = vand.u32 4294901760, %v1841_v32  ;;  %v18554_v12 = vpack.c.bf16 %v1860_v44, %v1853_v26 }
 0x217   : > { %22303 = vst [vmem:[#allocation12_spill] sm:$0xff] %v18551_v29  ;;  %v1862_v24 = vsub.f32 %v1860_v44, %v1861_v63  ;;  %v1874_v30 = vsub.f32 %v12788_v18, %v1596_v1  ;;  %15357 = vmatpush3.bf16.msra.mxu1 %v18547_v23 }
 0x218   : > { %v1855_v62 = vsub.f32 %v1853_v26, %v1854_v2  ;;  %v18559_v3 = vpack.c.bf16 %v1596_v1, %v1593_v38  ;;  %v1867_v48 = vsub.f32 %v1506_v43, %v1593_v38  ;;  %v12791_v5 = vpop.f32.mrb[10].mxu0  ;;  %v18561_v49 = vpack.c.bf16 %v1849_v33, %v1842_v41 }
 0x219   : > { %v1875_v45 = vand.u32 4294901760, %v1874_v30  ;;  %v1602_v46 = vand.u32 4294901760, %v12791_v5  ;;  %v1518_v60 = vpop.f32.mrb[11].mxu0  ;;  %v1863_v54 = vand.u32 4294901760, %v1862_v24  ;;  %v18563_v20 = vpack.c.bf16 %v1861_v63, %v1854_v2  ;;  %v1559_v2 = vld [vmem:[#allocation5 + $0x38] sm:$0xff] }
 0x21a   : > { %v1868_v4 = vand.u32 4294901760, %v1867_v48  ;;  %v1599_v9 = vand.u32 4294901760, %v1518_v60  ;;  %15359 = vmatprep.subr.bf16.mxu1 %v18559_v3  ;;  %v1856_v39 = vand.u32 4294901760, %v1855_v62  ;;  %v18566_v27 = vpack.c.bf16 %v1874_v30, %v1867_v48 }
 0x21b   : > { %22304 = vst [vmem:[#allocation17_spill] sm:$0xff] %v18563_v20  ;;  %v1876_v21 = vsub.f32 %v1874_v30, %v1875_v45  ;;  %v1888_v44 = vsub.f32 %v12791_v5, %v1602_v46  ;;  %15361 = vmatpush3.bf16.msra.mxu1 %v18559_v3  ;;  %v18570_v26 = vand.u32 4294901760, %v1558_v37  ;;  %v22312_v20 = vand.u32 4294901760, %v18545_v10 }
 0x21c   : > { %v1869_v18 = vsub.f32 %v1867_v48, %v1868_v4  ;;  %v18572_v1 = vpack.c.bf16 %v1602_v46, %v1599_v9  ;;  %v1881_v63 = vsub.f32 %v1518_v60, %v1599_v9  ;;  %v12794_v43 = vpop.f32.mrb[12].mxu0  ;;  %v18574_v33 = vpack.c.bf16 %v1863_v54, %v1856_v39 }
 0x21d   : > { %v1889_v38 = vand.u32 4294901760, %v1888_v44  ;;  %v1608_v41 = vand.u32 4294901760, %v12794_v43  ;;  %v1530_v24 = vpop.f32.mrb[13].mxu0  ;;  %v1877_v62 = vand.u32 4294901760, %v1876_v21  ;;  %v18576_v30 = vpack.c.bf16 %v1875_v45, %v1868_v4 }
 0x21e   : > { %v1882_v5 = vand.u32 4294901760, %v1881_v63  ;;  %v1605_v7 = vand.u32 4294901760, %v1530_v24  ;;  %15363 = vmatprep.subr.bf16.mxu1 %v18572_v1  ;;  %v1870_v22 = vand.u32 4294901760, %v1869_v18  ;;  %v18579_v19 = vpack.c.bf16 %v1888_v44, %v1881_v63 }
 0x21f   : > { %22305 = vst [vmem:[#allocation19_spill] sm:$0xff] %v18576_v30  ;;  %v1890_v48 = vsub.f32 %v1888_v44, %v1889_v38  ;;  %v1902_v46 = vsub.f32 %v12794_v43, %v1608_v41  ;;  %15365 = vmatpush3.bf16.msra.mxu1 %v18572_v1  ;;  %v18583_v60 = vsub.f32 %v1558_v37, %v18570_v26  ;;  %v18585_v54 = vand.u32 4294901760, %v1559_v2 }
 0x220   : > { %v1883_v9 = vsub.f32 %v1881_v63, %v1882_v5  ;;  %v18587_v39 = vpack.c.bf16 %v1608_v41, %v1605_v7  ;;  %v1895_v45 = vsub.f32 %v1530_v24, %v1605_v7  ;;  %v12797_v4 = vpop.f32.mrb[14].mxu0  ;;  %v18589_v21 = vpack.c.bf16 %v1877_v62, %v1870_v22  ;;  %v1561_v24 = vld [vmem:[#allocation5 + $0x48] sm:$0xff] }
 0x221   : > { %v1903_v18 = vand.u32 4294901760, %v1902_v46  ;;  %v1614_v34 = vand.u32 4294901760, %v12797_v4  ;;  %v1542_v15 = vpop.f32.mrb[15].mxu0  ;;  %v1891_v44 = vand.u32 4294901760, %v1890_v48  ;;  %v18591_v43 = vpack.c.bf16 %v1889_v38, %v1882_v5 }
 0x222   : > { %22306 = vst [vmem:[#allocation13_spill] sm:$0xff] %v18587_v39  ;;  %v1896_v32 = vand.u32 4294901760, %v1895_v45  ;;  %v1611_v36 = vand.u32 4294901760, %v1542_v15  ;;  %15367 = vmatprep.subr.bf16.mxu1 %v18587_v39  ;;  %v1884_v37 = vand.u32 4294901760, %v1883_v9  ;;  %v18594_v30 = vpack.c.bf16 %v1902_v46, %v1895_v45 }
 0x223   : > { %22307 = vst [vmem:[#allocation20_spill] sm:$0xff] %v18591_v43  ;;  %v1904_v63 = vsub.f32 %v1902_v46, %v1903_v18  ;;  %v1916_v41 = vsub.f32 %v12797_v4, %v1614_v34  ;;  %15369 = vmatpush3.bf16.msra.mxu1 %v18587_v39  ;;  %v18598_v22 = vsub.f32 %v1559_v2, %v18585_v54  ;;  %v18600_v7 = vand.u32 4294901760, %v1560_v51  ;;  %v1562_v43 = vld [vmem:[#allocation5 + $0x50] sm:$0xff] }
 0x224   : > { %v1897_v62 = vsub.f32 %v1895_v45, %v1896_v32  ;;  %v18602_v38 = vpack.c.bf16 %v1614_v34, %v1611_v36  ;;  %v1909_v5 = vsub.f32 %v1542_v15, %v1611_v36  ;;  %v18604_v48 = vpack.c.bf16 %v1891_v44, %v1884_v37 }
 0x225   : > { %v1917_v9 = vand.u32 4294901760, %v1916_v41  ;;  %v1905_v46 = vand.u32 4294901760, %v1904_v63  ;;  %v18607_v4 = vpack.c.bf16 %v1903_v18, %v1896_v32  ;;  %v18610_v2 = vand.u32 4294901760, %v1561_v24  ;;  %v1563_v18 = vld [vmem:[#allocation5 + $0x58] sm:$0xff]  ;;  %v1564_v63 = vld [vmem:[#allocation5 + $0x60] sm:$0xff] }
 0x226   : > { %22308 = vst [vmem:[#allocation22_spill] sm:$0xff] %v18602_v38  ;;  %v1910_v29 = vand.u32 4294901760, %v1909_v5  ;;  %15371 = vmatprep.subr.bf16.mxu1 %v18602_v38  ;;  %v1898_v6 = vand.u32 4294901760, %v1897_v62  ;;  %v18612_v35 = vpack.c.bf16 %v1916_v41, %v1909_v5  ;;  %v22310_v15 = vand.u32 4294901760, %v18527_v8 }
 0x227   : > { %22309 = vst [vmem:[#allocation14_spill] sm:$0xff] %v18607_v4  ;;  %v1918_v34 = vsub.f32 %v1916_v41, %v1917_v9  ;;  %15373 = vmatpush3.bf16.msra.mxu1 %v18602_v38  ;;  %v18619_v45 = vsub.f32 %v1560_v51, %v18600_v7  ;;  %v18621_v32 = vand.u32 4294901760, %v1562_v43  ;;  %v1683_v41 = vand.u32 4294901760, %v18542_v11  ;;  %v1566_v51 = vld [vmem:[#allocation5 + $0x70] sm:$0xff] }
 0x228   : > { %v1692_v36 = vsub.f32 %v18527_v8, %v22310_v15  ;;  %v1911_v44 = vsub.f32 %v1909_v5, %v1910_v29  ;;  %15375 = vmatprep.subr.bf16.mxu1 %v18531_v52  ;;  %v18624_v37 = vpack.c.bf16 %v1905_v46, %v1898_v6  ;;  %v18626_v62 = vpack.c.bf16 %v1917_v9, %v1910_v29 }
 0x229   : > { %v1702_v15 = vsub.f32 %v18545_v10, %v22312_v20  ;;  %v1919_v4 = vand.u32 4294901760, %v1918_v34  ;;  %v22313_v38 = vand.u32 4294901760, %v18495_v58  ;;  %v22314_v5 = vand.u32 4294901760, %v18583_v60 }
 0x22a   : > { %22311 = vst [vmem:[#allocation23_spill] sm:$0xff] %v18626_v62  ;;  %v18639_v46 = vsub.f32 %v1561_v24, %v18610_v2  ;;  %v18641_v29 = vand.u32 4294901760, %v1563_v18  ;;  %v1912_v11 = vand.u32 4294901760, %v1911_v44  ;;  %v22315_v20 = vand.u32 4294901760, %v18524_v0 }
 0x22b   : > { %12831 = vmatmul.mubr.f32.vlgmr.msra.gmra.mrb[0].mxu1 %v22313_v38  ;;  %v1712_v6 = vsub.f32 %v18583_v60, %v22314_v5  ;;  %v1693_v9 = vand.u32 4294901760, %v1692_v36  ;;  %v21983_v34 = vand.u32 4294901760, %v18619_v45  ;;  %v18648_v58 = vsub.f32 %v1562_v43, %v18621_v32  ;;  %v1565_v5 = vld [vmem:[#allocation5 + $0x68] sm:$0xff] }
 0x22c   : > { %15377 = vmatpush3.bf16.msra.mxu1 %v18531_v52  ;;  %12833 = vmatprep.mubr.f32.mxu1 %v22315_v20  ;;  %v18650_v38 = vand.u32 4294901760, %v1564_v63  ;;  %v15402_v24 = vpack.c.bf16 %v1919_v4, %v1912_v11  ;;  %v1703_v62 = vand.u32 4294901760, %v1702_v15  ;;  %v22316_v44 = vand.u32 4294901760, %v18598_v22 }
 0x22d   : > { %15379 = vmatprep.subr.bf16.mxu1 %v18549_v61  ;;  %v1713_v0 = vand.u32 4294901760, %v1712_v6  ;;  %v21986_v36 = vand.u32 4294901760, %v18639_v46  ;;  %v18658_v20 = vsub.f32 %v1563_v18, %v18641_v29  ;;  %v18660_v43 = vand.u32 4294901760, %v1565_v5  ;;  %v1567_v6 = vld [vmem:[#allocation5 + $0x78] sm:$0xff] }
 0x22e   : > { %v1722_v52 = vsub.f32 %v18598_v22, %v22316_v44  ;;  %v1732_v4 = vsub.f32 %v18619_v45, %v21983_v34  ;;  %v1751_v15 = vand.u32 4294901760, %v18648_v58  ;;  %v18668_v11 = vsub.f32 %v1564_v63, %v18650_v38 }
 0x22f   : > { %12834 = vmatmul.mubr.f32.gmra.mrb[2].mxu1 %v1683_v41  ;;  %v18670_v41 = vand.u32 4294901760, %v1566_v51  ;;  %v18678_v44 = vsub.f32 %v1565_v5, %v18660_v43  ;;  %v18680_v34 = vand.u32 4294901760, %v1567_v6 }
 0x230   : > { %15381 = vmatpush3.bf16.msra.mxu1 %v18549_v61  ;;  %12836 = vmatprep.mubr.f32.mxu1 %v1693_v9  ;;  %v1723_v18 = vand.u32 4294901760, %v1722_v52  ;;  %v1742_v61 = vsub.f32 %v18639_v46, %v21986_v36  ;;  %v21987_v9 = vand.u32 4294901760, %v18658_v20  ;;  %v1733_v63 = vand.u32 4294901760, %v1732_v4 }
 0x231   : > { %15383 = vmatprep.subr.bf16.mxu1 %v18561_v49  ;;  %v1752_v52 = vsub.f32 %v18648_v58, %v1751_v15  ;;  %v18688_v39 = vsub.f32 %v1566_v51, %v18670_v41 }
 0x232   : > { %v1743_v5 = vand.u32 4294901760, %v1742_v61  ;;  %v1762_v36 = vsub.f32 %v18658_v20, %v21987_v9 }
 0x233   : > { %12837 = vmatmul.mubr.f32.gmra.mrb[4].mxu1 %v1703_v62  ;;  %v1771_v62 = vand.u32 4294901760, %v18668_v11  ;;  %v1753_v4 = vand.u32 4294901760, %v1752_v52 }
 0x234   : > { %15385 = vmatpush3.bf16.msra.mxu1 %v18561_v49  ;;  %12839 = vmatprep.mubr.f32.mxu1 %v1713_v0  ;;  %v1781_v49 = vand.u32 4294901760, %v18678_v44  ;;  %v18696_v0 = vsub.f32 %v1567_v6, %v18680_v34  ;;  %v1763_v61 = vand.u32 4294901760, %v1762_v36 }
 0x235   : > { %15387 = vmatprep.subr.bf16.mxu1 %v18574_v33  ;;  %v1772_v51 = vsub.f32 %v18668_v11, %v1771_v62 }
 0x236   : > { %v1782_v9 = vsub.f32 %v18678_v44, %v1781_v49  ;;  %v21998_v6 = vand.u32 4294901760, %v18696_v0 }
 0x237   : > { %12840 = vmatmul.mubr.f32.gmra.mrb[6].mxu1 %v1723_v18  ;;  %v21999_v18 = vand.u32 4294901760, %v18688_v39 }
 0x238   : > { %15389 = vmatpush3.bf16.msra.mxu1 %v18574_v33  ;;  %12842 = vmatprep.mubr.f32.mxu1 %v1733_v63  ;;  %v1773_v33 = vand.u32 4294901760, %v1772_v51  ;;  %v1783_v52 = vand.u32 4294901760, %v1782_v9  ;;  %v1802_v36 = vsub.f32 %v18696_v0, %v21998_v6  ;;  %v22323_v6 = vld [vmem:[#allocation15_spill] sm:$0xff] }
 0x239   : > { %15391 = vmatprep.subr.bf16.mxu1 %v18589_v21  ;;  %v1792_v63 = vsub.f32 %v18688_v39, %v21999_v18  ;;  %v22324_v18 = vand.u32 4294901760, %v18498_v42 }
 0x23b   : > { %12843 = vmatmul.mubr.f32.gmra.mrb[8].mxu1 %v1743_v5  ;;  %v1793_v5 = vand.u32 4294901760, %v1792_v63 }
 0x23c   : > { %15393 = vmatpush3.bf16.msra.mxu1 %v18589_v21  ;;  %12845 = vmatprep.mubr.f32.mxu1 %v1753_v4  ;;  %v1803_v21 = vand.u32 4294901760, %v1802_v36 }
 0x23d   : > { %15395 = vmatprep.subr.bf16.mxu1 %v18604_v48 }
 0x23f   : > { %12846 = vmatmul.mubr.f32.gmra.mrb[10].mxu1 %v1763_v61  ;;  %v18786_v61 = vld [vmem:[#allocation7 + $0xb0] sm:$0xff] }
 0x240   : > { %15397 = vmatpush3.bf16.msra.mxu1 %v18604_v48  ;;  %12848 = vmatprep.mubr.f32.mxu1 %v1773_v33  ;;  %v18763_v48 = vld [vmem:[#allocation7 + $0xa0] sm:$0xff]  ;;  %v18788_v33 = vld [vmem:[#allocation7 + $0xb8] sm:$0xff] }
 0x241   : > { %15399 = vmatprep.subr.bf16.mxu1 %v18624_v37  ;;  %v21989_v4 = vand.u32 4294901760, %v18763_v48  ;;  %v21991_v36 = vand.u32 4294901760, %v18788_v33 }
 0x243   : > { %12849 = vmatmul.mubr.f32.gmra.mrb[12].mxu1 %v1783_v52  ;;  %v21994_v52 = vand.u32 4294901760, %v18786_v61 }
 0x244   : > { %15401 = vmatpush3.bf16.msra.mxu1 %v18624_v37  ;;  %12851 = vmatprep.mubr.f32.mxu1 %v1793_v5  ;;  %v18765_v37 = vld [vmem:[#allocation7 + $0xa8] sm:$0xff]  ;;  %v18805_v5 = vld [vmem:[#allocation7 + $0xc0] sm:$0xff] }
 0x245   : > { %15403 = vmatprep.subr.bf16.mxu1 %v15402_v24  ;;  %v21988_v51 = vand.u32 4294901760, %v18765_v37 }
 0x247   : > { %12852 = vmatmul.mubr.f32.gmra.mrb[14].mxu1 %v1803_v21  ;;  %v18799_v63 = vpack.c.bf16 %v21988_v51, %v21989_v4  ;;  %v18807_v21 = vld [vmem:[#allocation7 + $0xc8] sm:$0xff]  ;;  %v18817_v51 = vpack.c.bf16 %v21991_v36, %v21994_v52  ;;  %v21993_v4 = vand.u32 4294901760, %v18805_v5  ;;  %v22319_v52 = vand.u32 4294901760, %v18473_v50 }
 0x248   : > { %15405 = vmatpush3.bf16.msra.mxu1 %v15402_v24  ;;  %12886 = vmatprep.mubr.f32.mxu1 %v18470_v31 }
 0x249   : > { %15407 = vmatprep.subr.bf16.mxu1 %v18506_v53 }
 0x24b   : > { %12887 = vmatmul.mubr.f32.vlgmr.msra.gmra.mrb[0].mxu1 %v18479_v17 }
 0x24c   : > { %15409 = vmatpush3.bf16.msra.mxu1 %v18506_v53  ;;  %12889 = vmatprep.mubr.f32.mxu1 %v18484_v16  ;;  %v18750_v53 = vld [vmem:[#allocation7 + $0x80] sm:$0xff] }
 0x24d   : > { %15411 = vmatprep.subr.bf16.mxu1 %v18518_v57 }
 0x24f   : > { %12890 = vmatmul.mubr.f32.gmra.mrb[2].mxu1 %v18487_v28 }
 0x250   : > { %15413 = vmatpush3.bf16.msra.mxu1 %v18518_v57  ;;  %12892 = vmatprep.mubr.f32.mxu1 %v18504_v14  ;;  %v18752_v57 = vld [vmem:[#allocation7 + $0x88] sm:$0xff] }
 0x251   : > { %15415 = vmatprep.subr.bf16.mxu1 %v18536_v47 }
 0x253   : > { %12893 = vmatmul.mubr.f32.gmra.mrb[4].mxu1 %v18515_v59 }
 0x254   : > { %15417 = vmatpush3.bf16.msra.mxu1 %v18536_v47  ;;  %12895 = vmatprep.mubr.f32.mxu1 %v18570_v26  ;;  %v18754_v47 = vld [vmem:[#allocation7 + $0x90] sm:$0xff] }
 0x255   : > { %15419 = vmatprep.subr.bf16.mxu1 %v18554_v12 }
 0x257   : > { %12896 = vmatmul.mubr.f32.gmra.mrb[6].mxu1 %v18585_v54 }
 0x258   : > { %15421 = vmatpush3.bf16.msra.mxu1 %v18554_v12  ;;  %12898 = vmatprep.mubr.f32.mxu1 %v18600_v7  ;;  %v21996_v12 = vand.u32 4294901760, %v18752_v57 }
 0x259   : > { %15423 = vmatprep.subr.bf16.mxu1 %v18566_v27 }
 0x25b   : > { %12899 = vmatmul.mubr.f32.gmra.mrb[8].mxu1 %v18610_v2 }
 0x25c   : > { %15425 = vmatpush3.bf16.msra.mxu1 %v18566_v27  ;;  %12901 = vmatprep.mubr.f32.mxu1 %v18621_v32  ;;  %v18760_v27 = vld [vmem:[#allocation7 + $0x98] sm:$0xff] }
 0x25d   : > { %15427 = vmatprep.subr.bf16.mxu1 %v18579_v19  ;;  %v21990_v24 = vand.u32 4294901760, %v18760_v27 }
 0x25f   : > { %12902 = vmatmul.mubr.f32.gmra.mrb[10].mxu1 %v18641_v29 }
 0x260   : > { %15429 = vmatpush3.bf16.msra.mxu1 %v18579_v19  ;;  %12904 = vmatprep.mubr.f32.mxu1 %v18650_v38  ;;  %v21997_v19 = vand.u32 4294901760, %v18750_v53 }
 0x261   : > { %15431 = vmatprep.subr.bf16.mxu1 %v18594_v30 }
 0x263   : > { %12905 = vmatmul.mubr.f32.gmra.mrb[12].mxu1 %v18660_v43 }
 0x264   : > { %15433 = vmatpush3.bf16.msra.mxu1 %v18594_v30  ;;  %12907 = vmatprep.mubr.f32.mxu1 %v18670_v41  ;;  %v21995_v30 = vand.u32 4294901760, %v18754_v47 }
 0x265   : > { %15435 = vmatprep.subr.bf16.mxu1 %v18612_v35 }
 0x266   : > { %v18780_v9 = vpack.c.bf16 %v21990_v24, %v21995_v30  ;;  %v21992_v24 = vand.u32 4294901760, %v18807_v21  ;;  %v22320_v30 = vld [vmem:[#allocation31_spill] sm:$0xff] }
 0x267   : > { %12908 = vmatmul.mubr.f32.gmra.mrb[14].mxu1 %v18680_v34 }
 0x268   : > { %15437 = vmatpush3.bf16.msra.mxu1 %v18612_v35  ;;  %12942 = vmatprep.mubr.f32.mxu1 %v18473_v50  ;;  %v18773_v35 = vpack.c.bf16 %v21996_v12, %v21997_v19  ;;  %v18831_v36 = vpack.c.bf16 %v21992_v24, %v21993_v4  ;;  %v22317_v24 = vld [vmem:[#allocation13_spill] sm:$0xff]  ;;  %v22318_v4 = vld [vmem:[#allocation22_spill] sm:$0xff]  ;;  %v22321_v12 = vand.u32 4294901760, %v18482_v55  ;;  %v22322_v19 = vand.u32 4294901760, %v18490_v13 }
 0x269   : > { %15439 = vmatprep.subr.bf16.mxu1 %v18500_v40  ;;  %v22325_v50 = vand.u32 4294901760, %v18527_v8 }
 0x26a   : > { %15535 = vmatprep.subr.bf16.mxu0 %v18773_v35 }
 0x26b   : > { %12943 = vmatmul.mubr.f32.vlgmr.msra.gmra.mrb[0].mxu1 %v18482_v55  ;;  %15537 = vmatpush3.bf16.msra.mxu0 %v18773_v35  ;;  %v22327_v55 = vand.u32 4294901760, %v18545_v10 }
 0x26c   : > { %15441 = vmatpush3.bf16.msra.mxu1 %v18500_v40  ;;  %12945 = vmatprep.mubr.f32.mxu1 %v18490_v13  ;;  %v22328_v13 = vand.u32 4294901760, %v18583_v60 }
 0x26d   : > { %15443 = vmatprep.subr.bf16.mxu1 %v18511_v25  ;;  %15539 = vmatprep.subr.bf16.mxu0 %v18780_v9 }
 0x26f   : > { %12946 = vmatmul.mubr.f32.gmra.mrb[2].mxu1 %v18498_v42  ;;  %15541 = vmatpush3.bf16.msra.mxu0 %v18780_v9  ;;  %v22330_v42 = vand.u32 4294901760, %v18598_v22 }
 0x270   : > { %15445 = vmatpush3.bf16.msra.mxu1 %v18511_v25  ;;  %12948 = vmatprep.mubr.f32.mxu1 %v18527_v8  ;;  %v22331_v8 = vand.u32 4294901760, %v18619_v45 }
 0x271   : > { %15447 = vmatprep.subr.bf16.mxu1 %v18529_v56  ;;  %15543 = vmatprep.subr.bf16.mxu0 %v18799_v63 }
 0x273   : > { %12949 = vmatmul.mubr.f32.gmra.mrb[4].mxu1 %v18545_v10  ;;  %15545 = vmatpush3.bf16.msra.mxu0 %v18799_v63  ;;  %v22333_v10 = vand.u32 4294901760, %v18639_v46 }
 0x274   : > { %15449 = vmatpush3.bf16.msra.mxu1 %v18529_v56  ;;  %12951 = vmatprep.mubr.f32.mxu1 %v18583_v60  ;;  %v22334_v60 = vld [vmem:[#allocation20_spill] sm:$0xff] }
 0x275   : > { %15451 = vmatprep.subr.bf16.mxu1 %v18547_v23  ;;  %15547 = vmatprep.subr.bf16.mxu0 %v18817_v51 }
 0x277   : > { %12952 = vmatmul.mubr.f32.gmra.mrb[6].mxu1 %v18598_v22  ;;  %15549 = vmatpush3.bf16.msra.mxu0 %v18817_v51  ;;  %v22335_v22 = vand.u32 4294901760, %v18658_v20 }
 0x278   : > { %15453 = vmatpush3.bf16.msra.mxu1 %v18547_v23  ;;  %12954 = vmatprep.mubr.f32.mxu1 %v18619_v45  ;;  %v22336_v45 = vld [vmem:[#allocation14_spill] sm:$0xff] }
 0x279   : > { %15455 = vmatprep.subr.bf16.mxu1 %v18559_v3  ;;  %15551 = vmatprep.subr.bf16.mxu0 %v18831_v36 }
 0x27b   : > { %12955 = vmatmul.mubr.f32.gmra.mrb[8].mxu1 %v18639_v46  ;;  %15553 = vmatpush3.bf16.msra.mxu0 %v18831_v36  ;;  %v22337_v46 = vand.u32 4294901760, %v18688_v39 }
 0x27c   : > { %15457 = vmatpush3.bf16.msra.mxu1 %v18559_v3  ;;  %12957 = vmatprep.mubr.f32.mxu1 %v18648_v58  ;;  %v22338_v58 = vld [vmem:[#allocation23_spill] sm:$0xff] }
 0x27d   : > { %15459 = vmatprep.subr.bf16.mxu1 %v18572_v1 }
 0x27f   : > { %12958 = vmatmul.mubr.f32.gmra.mrb[10].mxu1 %v18658_v20  ;;  %v22339_v20 = vand.u32 4294901760, %v18696_v0 }
 0x280   : > { %15461 = vmatpush3.bf16.msra.mxu1 %v18572_v1  ;;  %12960 = vmatprep.mubr.f32.mxu1 %v18668_v11 }
 0x281   : > { %15463 = vmatprep.subr.bf16.mxu1 %v22317_v24 }
 0x283   : > { %12961 = vmatmul.mubr.f32.gmra.mrb[12].mxu1 %v18678_v44 }
 0x284   : > { %15465 = vmatpush3.bf16.msra.mxu1 %v22317_v24  ;;  %12963 = vmatprep.mubr.f32.mxu1 %v18688_v39  ;;  %v2886_v39 = vld [vmem:[#allocation7 + $0xf0] sm:$0xff] }
 0x285   : > { %15467 = vmatprep.subr.bf16.mxu1 %v22318_v4 }
 0x287   : > { %12964 = vmatmul.mubr.f32.gmra.mrb[14].mxu1 %v18696_v0 }
 0x288   : > { %15469 = vmatpush3.bf16.msra.mxu1 %v22318_v4  ;;  %12998 = vmatprep.mubr.f32.mxu1 %v22319_v52  ;;  %v22326_v52 = vld [vmem:[#allocation12_spill] sm:$0xff] }
 0x289   : > { %15471 = vmatprep.subr.bf16.mxu1 %v22320_v30 }
 0x28b   : > { %12999 = vmatmul.mubr.f32.vlgmr.msra.gmra.mrb[0].mxu1 %v22321_v12 }
 0x28c   : > { %15473 = vmatpush3.bf16.msra.mxu1 %v22320_v30  ;;  %13001 = vmatprep.mubr.f32.mxu1 %v22322_v19  ;;  %v22329_v19 = vld [vmem:[#allocation17_spill] sm:$0xff] }
 0x28d   : > { %15475 = vmatprep.subr.bf16.mxu1 %v22323_v6 }
 0x28f   : > { %13002 = vmatmul.mubr.f32.gmra.mrb[2].mxu1 %v22324_v18  ;;  %v22332_v18 = vld [vmem:[#allocation19_spill] sm:$0xff] }
 0x290   : > { %15477 = vmatpush3.bf16.msra.mxu1 %v22323_v6  ;;  %13004 = vmatprep.mubr.f32.mxu1 %v22325_v50 }
 0x291   : > { %15479 = vmatprep.subr.bf16.mxu1 %v22326_v52 }
 0x293   : > { %13005 = vmatmul.mubr.f32.gmra.mrb[4].mxu1 %v22327_v55 }
 0x294   : > { %15481 = vmatpush3.bf16.msra.mxu1 %v22326_v52  ;;  %13007 = vmatprep.mubr.f32.mxu1 %v22328_v13 }
 0x295   : > { %15483 = vmatprep.subr.bf16.mxu1 %v22329_v19 }
 0x297   : > { %13008 = vmatmul.mubr.f32.gmra.mrb[6].mxu1 %v22330_v42 }
 0x298   : > { %15485 = vmatpush3.bf16.msra.mxu1 %v22329_v19  ;;  %13010 = vmatprep.mubr.f32.mxu1 %v22331_v8 }
 0x299   : > { %15487 = vmatprep.subr.bf16.mxu1 %v22332_v18 }
 0x29b   : > { %13011 = vmatmul.mubr.f32.gmra.mrb[8].mxu1 %v22333_v10 }
 0x29c   : > { %15489 = vmatpush3.bf16.msra.mxu1 %v22332_v18  ;;  %13013 = vmatprep.mubr.f32.mxu1 %v1751_v15 }
 0x29d   : > { %15491 = vmatprep.subr.bf16.mxu1 %v22334_v60 }
 0x29f   : > { %13014 = vmatmul.mubr.f32.gmra.mrb[10].mxu1 %v22335_v22 }
 0x2a0   : > { %15493 = vmatpush3.bf16.msra.mxu1 %v22334_v60  ;;  %13016 = vmatprep.mubr.f32.mxu1 %v1771_v62 }
 0x2a1   : > { %15495 = vmatprep.subr.bf16.mxu1 %v22336_v45 }
 0x2a3   : > { %13017 = vmatmul.mubr.f32.gmra.mrb[12].mxu1 %v1781_v49 }
 0x2a4   : > { %15497 = vmatpush3.bf16.msra.mxu1 %v22336_v45  ;;  %13019 = vmatprep.mubr.f32.mxu1 %v22337_v46 }
 0x2a5   : > { %15499 = vmatprep.subr.bf16.mxu1 %v22338_v58 }
 0x2a7   : > { %13020 = vmatmul.mubr.f32.gmra.mrb[14].mxu1 %v22339_v20 }
 0x2a8   : > { %15501 = vmatpush3.bf16.msra.mxu1 %v22338_v58  ;;  %13054 = vmatprep.mubr.f32.mxu1 %v18470_v31 }
 0x2a9   : > { %15503 = vmatprep.subr.bf16.mxu1 %v18500_v40 }
 0x2ab   : > { %13055 = vmatmul.mubr.f32.vlgmr.msra.gmra.mrb[0].mxu1 %v18479_v17 }
 0x2ac   : > { %15505 = vmatpush3.bf16.msra.mxu1 %v18500_v40  ;;  %13057 = vmatprep.mubr.f32.mxu1 %v18484_v16 }
 0x2ad   : > { %15507 = vmatprep.subr.bf16.mxu1 %v18511_v25 }
 0x2af   : > { %13058 = vmatmul.mubr.f32.gmra.mrb[2].mxu1 %v18487_v28 }
 0x2b0   : > { %15509 = vmatpush3.bf16.msra.mxu1 %v18511_v25  ;;  %13060 = vmatprep.mubr.f32.mxu1 %v18504_v14  ;;  %v2885_v25 = vld [vmem:[#allocation7 + $0xe8] sm:$0xff] }
 0x2b1   : > { %15511 = vmatprep.subr.bf16.mxu1 %v18529_v56 }
 0x2b3   : > { %13061 = vmatmul.mubr.f32.gmra.mrb[4].mxu1 %v18515_v59 }
 0x2b4   : > { %15513 = vmatpush3.bf16.msra.mxu1 %v18529_v56  ;;  %13063 = vmatprep.mubr.f32.mxu1 %v18570_v26  ;;  %v2928_v56 = vand.u32 4294901760, %v2885_v25 }
 0x2b5   : > { %15515 = vmatprep.subr.bf16.mxu1 %v18547_v23 }
 0x2b6   : > { %v18996_v30 = vsub.f32 %v2885_v25, %v2928_v56 }
 0x2b7   : > { %13064 = vmatmul.mubr.f32.gmra.mrb[6].mxu1 %v18585_v54 }
 0x2b8   : > { %15517 = vmatpush3.bf16.msra.mxu1 %v18547_v23  ;;  %13066 = vmatprep.mubr.f32.mxu1 %v18600_v7  ;;  %22349 = vst [vmem:[#allocation21_spill] sm:$0xff] %v18996_v30  ;;  %v22002_v52 = vand.u32 4294901760, %v18996_v30 }
 0x2b9   : > { %15519 = vmatprep.subr.bf16.mxu1 %v18559_v3 }
 0x2ba   : > { %v3224_v19 = vsub.f32 %v18996_v30, %v22002_v52 }
 0x2bb   : > { %13067 = vmatmul.mubr.f32.gmra.mrb[8].mxu1 %v18610_v2 }
 0x2bc   : > { %15521 = vmatpush3.bf16.msra.mxu1 %v18559_v3  ;;  %13069 = vmatprep.mubr.f32.mxu1 %v18621_v32  ;;  %v22341_v3 = vand.u32 4294901760, %v18750_v53  ;;  %v3225_v10 = vand.u32 4294901760, %v3224_v19 }
 0x2bd   : > { %15523 = vmatprep.subr.bf16.mxu1 %v18572_v1 }
 0x2bf   : > { %13070 = vmatmul.mubr.f32.gmra.mrb[10].mxu1 %v18641_v29 }
 0x2c0   : > { %15525 = vmatpush3.bf16.msra.mxu1 %v18572_v1  ;;  %13072 = vmatprep.mubr.f32.mxu1 %v18650_v38  ;;  %v22343_v1 = vand.u32 4294901760, %v18752_v57 }
 0x2c1   : > { %15527 = vmatprep.subr.bf16.mxu1 %v22317_v24 }
 0x2c3   : > { %13073 = vmatmul.mubr.f32.gmra.mrb[12].mxu1 %v18660_v43 }
 0x2c4   : > { %15529 = vmatpush3.bf16.msra.mxu1 %v22317_v24  ;;  %13075 = vmatprep.mubr.f32.mxu1 %v18670_v41 }
 0x2c5   : > { %15531 = vmatprep.subr.bf16.mxu1 %v22318_v4 }
 0x2c7   : > { %13076 = vmatmul.mubr.f32.gmra.mrb[14].mxu1 %v18680_v34 }
 0x2c8   : > { %15533 = vmatpush3.bf16.msra.mxu1 %v22318_v4  ;;  %13110 = vmatprep.mubr.f32.mxu1 %v18470_v31  ;;  %v2882_v31 = vld [vmem:[#allocation7 + $0xd0] sm:$0xff] }
 0x2cb   : > { %13111 = vmatmul.mubr.f32.vlgmr.msra.gmra.mrb[0].mxu1 %v18479_v17  ;;  %v2883_v17 = vld [vmem:[#allocation7 + $0xd8] sm:$0xff] }
 0x2cc   : > { %13113 = vmatprep.mubr.f32.mxu1 %v18484_v16  ;;  %v2919_v16 = vand.u32 4294901760, %v2882_v31 }
 0x2ce   : > { %v18982_v62 = vsub.f32 %v2882_v31, %v2919_v16 }
 0x2cf   : > { %13114 = vmatmul.mubr.f32.gmra.mrb[2].mxu1 %v18487_v28  ;;  %v2922_v28 = vand.u32 4294901760, %v2883_v17 }
 0x2d0   : > { %13116 = vmatprep.mubr.f32.mxu1 %v18504_v14  ;;  %v2884_v14 = vld [vmem:[#allocation7 + $0xe0] sm:$0xff]  ;;  %22346 = vst [vmem:[#allocation18_spill] sm:$0xff] %v18982_v62  ;;  %v22005_v0 = vand.u32 4294901760, %v18982_v62 }
 0x2d1   : > { %v18949_v40 = vpack.c.bf16 %v2922_v28, %v2919_v16  ;;  %v18984_v49 = vsub.f32 %v2883_v17, %v2922_v28 }
 0x2d3   : > { %13117 = vmatmul.mubr.f32.gmra.mrb[4].mxu1 %v18515_v59  ;;  %15555 = vmatprep.subr.bf16.mxu0 %v18949_v40  ;;  %v2925_v59 = vand.u32 4294901760, %v2884_v14  ;;  %22347 = vst [vmem:[#allocation29_spill] sm:$0xff] %v18984_v49  ;;  %v22004_v6 = vand.u32 4294901760, %v18984_v49  ;;  %v19030_v28 = vpack.c.bf16 %v18984_v49, %v18982_v62 }
 0x2d4   : > { %13119 = vmatprep.mubr.f32.mxu1 %v18570_v26  ;;  %15557 = vmatpush3.bf16.msra.mxu0 %v18949_v40  ;;  %v18958_v26 = vsub.f32 %v18750_v53, %v22341_v3  ;;  %v3203_v53 = vsub.f32 %v18982_v62, %v22005_v0  ;;  %v22353_v3 = vand.u32 4294901760, %v18760_v27 }
 0x2d5   : > { %v18953_v23 = vpack.c.bf16 %v2928_v56, %v2925_v59  ;;  %v18994_v12 = vsub.f32 %v2884_v14, %v2925_v59  ;;  %v22352_v59 = vand.u32 4294901760, %v18754_v47 }
 0x2d6   : > { %22342 = vst [vmem:[#allocation16_spill] sm:$0xff] %v18958_v26  ;;  %v3204_v24 = vand.u32 4294901760, %v3203_v53 }
 0x2d7   : > { %13120 = vmatmul.mubr.f32.gmra.mrb[6].mxu1 %v18585_v54  ;;  %22340 = vst [vmem:[#allocation26_spill] sm:$0xff] %v18953_v23  ;;  %v18963_v54 = vsub.f32 %v18752_v57, %v22343_v1  ;;  %15559 = vmatprep.subr.bf16.mxu0 %v18953_v23  ;;  %v3210_v57 = vsub.f32 %v18984_v49, %v22004_v6  ;;  %22348 = vst [vmem:[#allocation30_spill] sm:$0xff] %v18994_v12  ;;  %v22003_v50 = vand.u32 4294901760, %v18994_v12 }
 0x2d8   : > { %13122 = vmatprep.mubr.f32.mxu1 %v18600_v7  ;;  %v2887_v7 = vld [vmem:[#allocation7 + $0xf8] sm:$0xff]  ;;  %15561 = vmatpush3.bf16.msra.mxu0 %v18953_v23  ;;  %v19034_v14 = vpack.c.bf16 %v18996_v30, %v18994_v12  ;;  %v19043_v56 = vsub.f32 %v18754_v47, %v22352_v59  ;;  %v19048_v1 = vsub.f32 %v18760_v27, %v22353_v3 }
 0x2d9   : > { %22344 = vst [vmem:[#allocation27_spill] sm:$0xff] %v18963_v54  ;;  %v3211_v4 = vand.u32 4294901760, %v3210_v57  ;;  %v3217_v13 = vsub.f32 %v18994_v12, %v22003_v50  ;;  %v19026_v16 = vpack.c.bf16 %v18963_v54, %v18958_v26 }
 0x2db   : > { %13123 = vmatmul.mubr.f32.gmra.mrb[8].mxu1 %v18610_v2  ;;  %v2931_v2 = vand.u32 4294901760, %v2886_v39  ;;  %v19000_v55 = vpack.c.bf16 %v3211_v4, %v3204_v24  ;;  %v3218_v18 = vand.u32 4294901760, %v3217_v13  ;;  %v22357_v4 = vand.u32 4294901760, %v18788_v33 }
 0x2dc   : > { %13125 = vmatprep.mubr.f32.mxu1 %v18621_v32  ;;  %v2934_v32 = vand.u32 4294901760, %v2887_v7 }
 0x2dd   : > { %v19008_v42 = vsub.f32 %v2886_v39, %v2931_v2  ;;  %v19014_v45 = vpack.c.bf16 %v3225_v10, %v3218_v18  ;;  %v22012_v39 = vand.u32 4294901760, %v19043_v56  ;;  %v19081_v13 = vsub.f32 %v18788_v33, %v22357_v4 }
 0x2de   : > { %v19010_v8 = vsub.f32 %v2887_v7, %v2934_v32  ;;  %v22010_v7 = vand.u32 4294901760, %v19048_v1 }
 0x2df   : > { %13126 = vmatmul.mubr.f32.gmra.mrb[10].mxu1 %v18641_v29  ;;  %v22016_v29 = vand.u32 4294901760, %v18958_v26  ;;  %22350 = vst [vmem:[#allocation24_spill] sm:$0xff] %v19008_v42  ;;  %v22001_v60 = vand.u32 4294901760, %v19008_v42 }
 0x2e0   : > { %13128 = vmatprep.mubr.f32.mxu1 %v18650_v38  ;;  %v18969_v38 = vpack.c.bf16 %v2934_v32, %v2931_v2  ;;  %22351 = vst [vmem:[#allocation25_spill] sm:$0xff] %v19010_v8  ;;  %v22000_v22 = vand.u32 4294901760, %v19010_v8  ;;  %v19038_v25 = vpack.c.bf16 %v19010_v8, %v19008_v42  ;;  %v22354_v2 = vand.u32 4294901760, %v18763_v48 }
 0x2e1   : > { %v3231_v46 = vsub.f32 %v19008_v42, %v22001_v60  ;;  %v3154_v27 = vsub.f32 %v19048_v1, %v22010_v7  ;;  %v22359_v60 = vand.u32 4294901760, %v18807_v21 }
 0x2e2   : > { %22345 = vst [vmem:[#allocation28_spill] sm:$0xff] %v18969_v38  ;;  %15563 = vmatprep.subr.bf16.mxu0 %v18969_v38  ;;  %v3238_v58 = vsub.f32 %v19010_v8, %v22000_v22  ;;  %v19055_v32 = vsub.f32 %v18763_v48, %v22354_v2 }
 0x2e3   : > { %13129 = vmatmul.mubr.f32.gmra.mrb[12].mxu1 %v18660_v43  ;;  %v3133_v43 = vsub.f32 %v18958_v26, %v22016_v29  ;;  %15565 = vmatpush3.bf16.msra.mxu0 %v18969_v38  ;;  %v3232_v20 = vand.u32 4294901760, %v3231_v46  ;;  %v3155_v46 = vand.u32 4294901760, %v3154_v27  ;;  %v19122_v52 = vsub.f32 %v18807_v21, %v22359_v60 }
 0x2e4   : > { %13131 = vmatprep.mubr.f32.mxu1 %v18670_v41  ;;  %v3239_v31 = vand.u32 4294901760, %v3238_v58 }
 0x2e5   : > { %v3134_v11 = vand.u32 4294901760, %v3133_v43  ;;  %v22355_v43 = vand.u32 4294901760, %v18765_v37 }
 0x2e6   : > { %v19022_v17 = vpack.c.bf16 %v3239_v31, %v3232_v20 }
 0x2e7   : > { %13132 = vmatmul.mubr.f32.gmra.mrb[14].mxu1 %v18680_v34  ;;  %v22014_v34 = vand.u32 4294901760, %v18963_v54  ;;  %v19060_v47 = vsub.f32 %v18765_v37, %v22355_v43  ;;  %v22356_v37 = vand.u32 4294901760, %v18786_v61  ;;  %v22011_v43 = vand.u32 4294901760, %v19081_v13 }
 0x2e9   : > { %v3140_v15 = vsub.f32 %v18963_v54, %v22014_v34  ;;  %v22006_v53 = vand.u32 4294901760, %v19060_v47  ;;  %v19076_v24 = vsub.f32 %v18786_v61, %v22356_v37  ;;  %v3182_v60 = vsub.f32 %v19081_v13, %v22011_v43 }
 0x2eb   : > { %v3141_v41 = vand.u32 4294901760, %v3140_v15  ;;  %v3147_v15 = vsub.f32 %v19043_v56, %v22012_v39  ;;  %v3168_v33 = vsub.f32 %v19060_v47, %v22006_v53  ;;  %v22009_v2 = vand.u32 4294901760, %v19076_v24 }
 0x2ec   : > { %v3183_v29 = vand.u32 4294901760, %v3182_v60  ;;  %v22360_v60 = vand.u32 4294901760, %v19122_v52 }
 0x2ed   : > { %v18979_v44 = vpack.c.bf16 %v3141_v41, %v3134_v11  ;;  %v22007_v41 = vand.u32 4294901760, %v19055_v32  ;;  %v3148_v10 = vand.u32 4294901760, %v3147_v15  ;;  %v3169_v0 = vand.u32 4294901760, %v3168_v33 }
 0x2ee   : > { %v3175_v21 = vsub.f32 %v19076_v24, %v22009_v2 }
 0x2ef   : > { %15567 = vmatprep.subr.bf16.mxu0 %v18979_v44  ;;  %v3161_v61 = vsub.f32 %v19055_v32, %v22007_v41  ;;  %v15570_v22 = vpack.c.bf16 %v3155_v46, %v3148_v10 }
 0x39e   : > { %v13112_v11 = vpop.f32.mrb[0].mxu1 }
 0x39f   : > { %10859 = vst [vmem:[%s17819_s18 + $0x88] sm:$0xff] %v13112_v11  ;;  %v19071_v48 = vand.u32 4294901760, %v13112_v11  ;;  %v2760_v57 = vpop.f32.mrb[1].mxu1 }
 0x3a0   : > { %10858 = vst [vmem:[%s17819_s18 + $0x80] sm:$0xff] %v2760_v57  ;;  %v19084_v19 = vand.u32 4294901760, %v2760_v57 }
 0x3a1   : > { %v19087_v18 = vsub.f32 %v13112_v11, %v19071_v48  ;;  %v22358_v11 = vand.u32 4294901760, %v18805_v5 }
 0x3a2   : > { %v19090_v58 = vsub.f32 %v2760_v57, %v19084_v19  ;;  %v13115_v20 = vpop.f32.mrb[2].mxu1 }
 0x3a3   : > { %v22008_v31 = vand.u32 4294901760, %v19087_v18  ;;  %10861 = vst [vmem:[%s17819_s18 + $0x98] sm:$0xff] %v13115_v20  ;;  %v19100_v59 = vand.u32 4294901760, %v13115_v20  ;;  %v2772_v3 = vpop.f32.mrb[3].mxu1  ;;  %v19111_v57 = vsub.f32 %v18805_v5, %v22358_v11  ;;  %v3162_v11 = vand.u32 4294901760, %v3161_v61 }
 0x3a4   : > { %10860 = vst [vmem:[%s17819_s18 + $0x90] sm:$0xff] %v2772_v3  ;;  %v19105_v15 = vand.u32 4294901760, %v2772_v3  ;;  %v22013_v27 = vand.u32 4294901760, %v19090_v58 }
 0x3a5   : > { %v2982_v37 = vsub.f32 %v19087_v18, %v22008_v31  ;;  %v19117_v4 = vsub.f32 %v13115_v20, %v19100_v59 }
 0x3a6   : > { %v19125_v50 = vsub.f32 %v2772_v3, %v19105_v15  ;;  %v13118_v6 = vpop.f32.mrb[4].mxu1  ;;  %v2972_v5 = vsub.f32 %v19090_v58, %v22013_v27  ;;  %v22018_v3 = vand.u32 4294901760, %v19111_v57 }
 0x3a7   : > { %10863 = vst [vmem:[%s17819_s18 + $0xa8] sm:$0xff] %v13118_v6  ;;  %v19131_v53 = vand.u32 4294901760, %v13118_v6  ;;  %v2784_v20 = vpop.f32.mrb[5].mxu1  ;;  %v22015_v10 = vand.u32 4294901760, %v19117_v4  ;;  %v2983_v41 = vand.u32 4294901760, %v2982_v37  ;;  %v15574_v37 = vpack.c.bf16 %v3169_v0, %v3162_v11 }
 0x3a8   : > { %10862 = vst [vmem:[%s17819_s18 + $0xa0] sm:$0xff] %v2784_v20  ;;  %v19141_v46 = vand.u32 4294901760, %v2784_v20  ;;  %v2973_v61 = vand.u32 4294901760, %v2972_v5  ;;  %v22017_v33 = vand.u32 4294901760, %v19125_v50  ;;  %v3189_v0 = vsub.f32 %v19111_v57, %v22018_v3 }
 0x3a9   : > { %v19146_v31 = vsub.f32 %v13118_v6, %v19131_v53  ;;  %v3002_v2 = vsub.f32 %v19117_v4, %v22015_v10  ;;  %v3176_v10 = vand.u32 4294901760, %v3175_v21 }
 0x3aa   : > { %v19153_v43 = vsub.f32 %v2784_v20, %v19141_v46  ;;  %v13121_v39 = vpop.f32.mrb[6].mxu1  ;;  %13166 = vmatprep.mubr.f32.mxu0 %v2973_v61  ;;  %v2992_v5 = vsub.f32 %v19125_v50, %v22017_v33  ;;  %v3190_v42 = vand.u32 4294901760, %v3189_v0 }
 0x3ab   : > { %10865 = vst [vmem:[%s17819_s18 + $0xb8] sm:$0xff] %v13121_v39  ;;  %v19159_v27 = vand.u32 4294901760, %v13121_v39  ;;  %v2796_v6 = vpop.f32.mrb[7].mxu1  ;;  %13167 = vmatmul.mubr.f32.vlgmr.msra.gmra.mrb[16].mxu0 %v2983_v41  ;;  %v22019_v34 = vand.u32 4294901760, %v19146_v31  ;;  %v3003_v11 = vand.u32 4294901760, %v3002_v2  ;;  %v15578_v8 = vpack.c.bf16 %v3183_v29, %v3176_v10 }
 0x3ac   : > { %10864 = vst [vmem:[%s17819_s18 + $0xb0] sm:$0xff] %v2796_v6  ;;  %v19163_v20 = vand.u32 4294901760, %v2796_v6  ;;  %15569 = vmatpush3.bf16.msra.mxu0 %v18979_v44  ;;  %v2993_v61 = vand.u32 4294901760, %v2992_v5  ;;  %v22022_v7 = vand.u32 4294901760, %v19153_v43  ;;  %v3196_v44 = vsub.f32 %v19122_v52, %v22360_v60 }
 0x3ad   : > { %v19171_v41 = vsub.f32 %v13121_v39, %v19159_v27  ;;  %15571 = vmatprep.subr.bf16.mxu0 %v15570_v22  ;;  %v3022_v21 = vsub.f32 %v19146_v31, %v22019_v34 }
 0x3ae   : > { %v19180_v5 = vsub.f32 %v2796_v6, %v19163_v20  ;;  %v13124_v33 = vpop.f32.mrb[8].mxu1  ;;  %13169 = vmatprep.mubr.f32.mxu0 %v2993_v61  ;;  %v3012_v39 = vsub.f32 %v19153_v43, %v22022_v7  ;;  %v3197_v29 = vand.u32 4294901760, %v3196_v44 }
 0x3af   : > { %10867 = vst [vmem:[%s17819_s18 + $0xc8] sm:$0xff] %v13124_v33  ;;  %v19186_v2 = vand.u32 4294901760, %v13124_v33  ;;  %v2808_v3 = vpop.f32.mrb[9].mxu1  ;;  %13170 = vmatmul.mubr.f32.gmra.mrb[18].mxu0 %v3003_v11  ;;  %v22025_v34 = vand.u32 4294901760, %v19171_v41  ;;  %v3023_v30 = vand.u32 4294901760, %v3022_v21 }
 0x3b0   : > { %10866 = vst [vmem:[%s17819_s18 + $0xc0] sm:$0xff] %v2808_v3  ;;  %v19190_v60 = vand.u32 4294901760, %v2808_v3  ;;  %15573 = vmatpush3.bf16.msra.mxu0 %v15570_v22  ;;  %v3013_v6 = vand.u32 4294901760, %v3012_v39  ;;  %v22026_v61 = vand.u32 4294901760, %v19180_v5 }
 0x3b1   : > { %v19194_v7 = vsub.f32 %v13124_v33, %v19186_v2  ;;  %15575 = vmatprep.subr.bf16.mxu0 %v15574_v37  ;;  %v3042_v11 = vsub.f32 %v19171_v41, %v22025_v34 }
 0x3b2   : > { %v19200_v10 = vsub.f32 %v2808_v3, %v19190_v60  ;;  %v13127_v12 = vpop.f32.mrb[10].mxu1  ;;  %13172 = vmatprep.mubr.f32.mxu0 %v3013_v6  ;;  %v3032_v22 = vsub.f32 %v19180_v5, %v22026_v61  ;;  %v15582_v61 = vpack.c.bf16 %v3197_v29, %v3190_v42 }
 0x3b3   : > { %10869 = vst [vmem:[%s17819_s18 + $0xd8] sm:$0xff] %v13127_v12  ;;  %v19206_v0 = vand.u32 4294901760, %v13127_v12  ;;  %v2820_v33 = vpop.f32.mrb[11].mxu1  ;;  %13173 = vmatmul.mubr.f32.gmra.mrb[20].mxu0 %v3023_v30  ;;  %v22029_v21 = vand.u32 4294901760, %v19194_v7  ;;  %v3043_v34 = vand.u32 4294901760, %v3042_v11 }
 0x3b4   : > { %10868 = vst [vmem:[%s17819_s18 + $0xd0] sm:$0xff] %v2820_v33  ;;  %v19210_v39 = vand.u32 4294901760, %v2820_v33  ;;  %15577 = vmatpush3.bf16.msra.mxu0 %v15574_v37  ;;  %v3033_v3 = vand.u32 4294901760, %v3032_v22  ;;  %v22030_v44 = vand.u32 4294901760, %v19200_v10 }
 0x3b5   : > { %v19214_v6 = vsub.f32 %v13127_v12, %v19206_v0  ;;  %15579 = vmatprep.subr.bf16.mxu0 %v15578_v8  ;;  %v3062_v30 = vsub.f32 %v19194_v7, %v22029_v21 }
 0x3b6   : > { %v19220_v49 = vsub.f32 %v2820_v33, %v19210_v39  ;;  %v13130_v62 = vpop.f32.mrb[12].mxu1  ;;  %13175 = vmatprep.mubr.f32.mxu0 %v3033_v3  ;;  %v3052_v37 = vsub.f32 %v19200_v10, %v22030_v44 }
 0x3b7   : > { %10871 = vst [vmem:[%s17819_s18 + $0xe8] sm:$0xff] %v13130_v62  ;;  %v19226_v22 = vand.u32 4294901760, %v13130_v62  ;;  %v2832_v12 = vpop.f32.mrb[13].mxu1  ;;  %13176 = vmatmul.mubr.f32.gmra.mrb[22].mxu0 %v3043_v34  ;;  %v22033_v11 = vand.u32 4294901760, %v19214_v6  ;;  %v3063_v3 = vand.u32 4294901760, %v3062_v30 }
 0x3b8   : > { %10870 = vst [vmem:[%s17819_s18 + $0xe0] sm:$0xff] %v2832_v12  ;;  %v19230_v21 = vand.u32 4294901760, %v2832_v12  ;;  %15581 = vmatpush3.bf16.msra.mxu0 %v15578_v8  ;;  %v3053_v42 = vand.u32 4294901760, %v3052_v37  ;;  %v22036_v29 = vand.u32 4294901760, %v19220_v49 }
 0x3b9   : > { %v19234_v33 = vsub.f32 %v13130_v62, %v19226_v22  ;;  %15583 = vmatprep.subr.bf16.mxu0 %v15582_v61  ;;  %v3082_v44 = vsub.f32 %v19214_v6, %v22033_v11 }
 0x3ba   : > { %v19240_v34 = vsub.f32 %v2832_v12, %v19230_v21  ;;  %v13133_v54 = vpop.f32.mrb[14].mxu1  ;;  %13178 = vmatprep.mubr.f32.mxu0 %v3053_v42  ;;  %v3072_v8 = vsub.f32 %v19220_v49, %v22036_v29 }
 0x3bb   : > { %10873 = vst [vmem:[%s17819_s18 + $0xf8] sm:$0xff] %v13133_v54  ;;  %v19246_v37 = vand.u32 4294901760, %v13133_v54  ;;  %v2844_v62 = vpop.f32.mrb[15].mxu1  ;;  %13179 = vmatmul.mubr.f32.gmra.mrb[24].mxu0 %v3063_v3  ;;  %v3101_v30 = vand.u32 4294901760, %v19234_v33  ;;  %v3083_v38 = vand.u32 4294901760, %v3082_v44 }
 0x3bc   : > { %10872 = vst [vmem:[%s17819_s18 + $0xf0] sm:$0xff] %v2844_v62  ;;  %v19250_v26 = vand.u32 4294901760, %v2844_v62  ;;  %15585 = vmatpush3.bf16.msra.mxu0 %v15582_v61  ;;  %v3073_v11 = vand.u32 4294901760, %v3072_v8  ;;  %v3091_v12 = vand.u32 4294901760, %v19240_v34 }
 0x3bd   : > { %v19254_v42 = vsub.f32 %v13133_v54, %v19246_v37  ;;  %15587 = vmatprep.subr.bf16.mxu0 %v19000_v55  ;;  %v3102_v29 = vsub.f32 %v19234_v33, %v3101_v30 }
 0x3be   : > { %v19261_v3 = vsub.f32 %v2844_v62, %v19250_v26  ;;  %13181 = vmatprep.mubr.f32.mxu0 %v3073_v11  ;;  %v3092_v61 = vsub.f32 %v19240_v34, %v3091_v12 }
 0x3bf   : > { %13182 = vmatmul.mubr.f32.gmra.mrb[26].mxu0 %v3083_v38  ;;  %v3121_v8 = vand.u32 4294901760, %v19254_v42  ;;  %v3103_v23 = vand.u32 4294901760, %v3102_v29  ;;  %v15602_v29 = vpack.c.bf16 %v19048_v1, %v19043_v56 }
 0x3c0   : > { %15589 = vmatpush3.bf16.msra.mxu0 %v19000_v55  ;;  %v3093_v54 = vand.u32 4294901760, %v3092_v61  ;;  %v3111_v44 = vand.u32 4294901760, %v19261_v3  ;;  %v22365_v61 = vld [vmem:[#allocation27_spill] sm:$0xff] }
 0x3c1   : > { %15591 = vmatprep.subr.bf16.mxu0 %v19014_v45  ;;  %v3122_v62 = vsub.f32 %v19254_v42, %v3121_v8 }
 0x3c2   : > { %13184 = vmatprep.mubr.f32.mxu0 %v3093_v54  ;;  %v3112_v11 = vsub.f32 %v19261_v3, %v3111_v44  ;;  %v22366_v54 = vand.u32 4294901760, %v22365_v61  ;;  %v22378_v61 = vand.u32 4294901760, %v19146_v31 }
 0x3c3   : > { %13185 = vmatmul.mubr.f32.gmra.mrb[28].mxu0 %v3103_v23  ;;  %v3123_v55 = vand.u32 4294901760, %v3122_v62  ;;  %v15606_v23 = vpack.c.bf16 %v19060_v47, %v19055_v32 }
 0x3c4   : > { %15593 = vmatpush3.bf16.msra.mxu0 %v19014_v45  ;;  %v3113_v38 = vand.u32 4294901760, %v3112_v11  ;;  %v15610_v45 = vpack.c.bf16 %v19081_v13, %v19076_v24  ;;  %v22367_v11 = vand.u32 4294901760, %v19090_v58 }
 0x3c5   : > { %15595 = vmatprep.subr.bf16.mxu0 %v19022_v17 }
 0x3c6   : > { %13187 = vmatprep.mubr.f32.mxu0 %v3113_v38  ;;  %v22368_v38 = vand.u32 4294901760, %v19043_v56  ;;  %v22375_v56 = vand.u32 4294901760, %v19153_v43 }
 0x3c7   : > { %13188 = vmatmul.mubr.f32.gmra.mrb[30].mxu0 %v3123_v55  ;;  %v22369_v55 = vand.u32 4294901760, %v19048_v1  ;;  %v22376_v1 = vand.u32 4294901760, %v19076_v24  ;;  %v22383_v24 = vand.u32 4294901760, %v19200_v10 }
 0x3c8   : > { %15597 = vmatpush3.bf16.msra.mxu0 %v19022_v17  ;;  %13222 = vmatprep.mubr.f32.mxu0 %v19084_v19  ;;  %v15614_v17 = vpack.c.bf16 %v19122_v52, %v19111_v57 }
 0x3c9   : > { %15599 = vmatprep.subr.bf16.mxu0 %v19026_v16 }
 0x3cb   : > { %13223 = vmatmul.mubr.f32.vlgmr.msra.gmra.mrb[16].mxu0 %v19071_v48 }
 0x3cc   : > { %13225 = vmatprep.mubr.f32.mxu0 %v19105_v15  ;;  %15601 = vmatpush3.bf16.msra.mxu0 %v19026_v16  ;;  %v22361_v16 = vld [vmem:[#allocation26_spill] sm:$0xff] }
 0x3cd   : > { %15603 = vmatprep.subr.bf16.mxu0 %v15602_v29 }
 0x3cf   : > { %13226 = vmatmul.mubr.f32.gmra.mrb[18].mxu0 %v19100_v59 }
 0x3d0   : > { %13228 = vmatprep.mubr.f32.mxu0 %v19141_v46  ;;  %15605 = vmatpush3.bf16.msra.mxu0 %v15602_v29  ;;  %v15666_v29 = vpack.c.bf16 %v22369_v55, %v22368_v38  ;;  %v22388_v38 = vand.u32 4294901760, %v19194_v7  ;;  %v22392_v55 = vld [vmem:[#allocation21_spill] sm:$0xff] }
 0x3d1   : > { %15607 = vmatprep.subr.bf16.mxu0 %v15606_v23 }
 0x3d3   : > { %13229 = vmatmul.mubr.f32.gmra.mrb[20].mxu0 %v19131_v53 }
 0x3d4   : > { %13231 = vmatprep.mubr.f32.mxu0 %v19163_v20  ;;  %15609 = vmatpush3.bf16.msra.mxu0 %v15606_v23  ;;  %v22370_v23 = vand.u32 4294901760, %v19087_v18 }
 0x3d5   : > { %15611 = vmatprep.subr.bf16.mxu0 %v15610_v45 }
 0x3d7   : > { %13232 = vmatmul.mubr.f32.gmra.mrb[22].mxu0 %v19159_v27 }
 0x3d8   : > { %13234 = vmatprep.mubr.f32.mxu0 %v19190_v60  ;;  %15613 = vmatpush3.bf16.msra.mxu0 %v15610_v45  ;;  %v22371_v45 = vand.u32 4294901760, %v19125_v50 }
 0x3d9   : > { %15615 = vmatprep.subr.bf16.mxu0 %v15614_v17 }
 0x3db   : > { %13235 = vmatmul.mubr.f32.gmra.mrb[24].mxu0 %v19186_v2 }
 0x3dc   : > { %13237 = vmatprep.mubr.f32.mxu0 %v19210_v39  ;;  %15617 = vmatpush3.bf16.msra.mxu0 %v15614_v17  ;;  %v22372_v17 = vand.u32 4294901760, %v19055_v32  ;;  %v22379_v32 = vand.u32 4294901760, %v19180_v5 }
 0x3dd   : > { %15619 = vmatprep.subr.bf16.mxu0 %v19030_v28 }
 0x3df   : > { %13238 = vmatmul.mubr.f32.gmra.mrb[26].mxu0 %v19206_v0 }
 0x3e0   : > { %13240 = vmatprep.mubr.f32.mxu0 %v19230_v21  ;;  %15621 = vmatpush3.bf16.msra.mxu0 %v19030_v28  ;;  %v22362_v28 = vld [vmem:[#allocation28_spill] sm:$0xff] }
 0x3e1   : > { %15623 = vmatprep.subr.bf16.mxu0 %v19034_v14 }
 0x3e3   : > { %13241 = vmatmul.mubr.f32.gmra.mrb[28].mxu0 %v19226_v22 }
 0x3e4   : > { %13243 = vmatprep.mubr.f32.mxu0 %v19250_v26  ;;  %15625 = vmatpush3.bf16.msra.mxu0 %v19034_v14  ;;  %v22363_v14 = vld [vmem:[#allocation16_spill] sm:$0xff] }
 0x3e5   : > { %15627 = vmatprep.subr.bf16.mxu0 %v19038_v25 }
 0x3e7   : > { %13244 = vmatmul.mubr.f32.gmra.mrb[30].mxu0 %v19246_v37 }
 0x3e8   : > { %15629 = vmatpush3.bf16.msra.mxu0 %v19038_v25  ;;  %13278 = vmatprep.mubr.f32.mxu0 %v19090_v58  ;;  %v22364_v25 = vand.u32 4294901760, %v22363_v14  ;;  %v22373_v14 = vand.u32 4294901760, %v19060_v47  ;;  %v22380_v47 = vand.u32 4294901760, %v19111_v57  ;;  %v22389_v57 = vand.u32 4294901760, %v19220_v49 }
 0x3e9   : > { %15631 = vmatprep.subr.bf16.mxu0 %v18773_v35 }
 0x3ea   : > { %v15662_v62 = vpack.c.bf16 %v22366_v54, %v22364_v25  ;;  %v15670_v58 = vpack.c.bf16 %v22373_v14, %v22372_v17  ;;  %v22374_v25 = vand.u32 4294901760, %v19117_v4  ;;  %v22382_v54 = vand.u32 4294901760, %v19171_v41  ;;  %v22397_v17 = vld [vmem:[#allocation25_spill] sm:$0xff] }
 0x3eb   : > { %13279 = vmatmul.mubr.f32.vlgmr.msra.gmra.mrb[16].mxu0 %v19087_v18 }
 0x3ec   : > { %13281 = vmatprep.mubr.f32.mxu0 %v19125_v50  ;;  %15633 = vmatpush3.bf16.msra.mxu0 %v18773_v35  ;;  %v22377_v50 = vand.u32 4294901760, %v19081_v13  ;;  %v22384_v13 = vld [vmem:[#allocation18_spill] sm:$0xff] }
 0x3ed   : > { %15635 = vmatprep.subr.bf16.mxu0 %v18780_v9 }
 0x3ee   : > { %v15674_v18 = vpack.c.bf16 %v22377_v50, %v22376_v1 }
 0x3ef   : > { %13282 = vmatmul.mubr.f32.gmra.mrb[18].mxu0 %v19117_v4 }
 0x3f0   : > { %13284 = vmatprep.mubr.f32.mxu0 %v19153_v43  ;;  %15637 = vmatpush3.bf16.msra.mxu0 %v18780_v9  ;;  %v22381_v43 = vand.u32 4294901760, %v19122_v52  ;;  %v22390_v52 = vld [vmem:[#allocation30_spill] sm:$0xff] }
 0x3f1   : > { %15639 = vmatprep.subr.bf16.mxu0 %v18799_v63 }
 0x3f2   : > { %v15678_v4 = vpack.c.bf16 %v22381_v43, %v22380_v47 }
 0x3f3   : > { %13285 = vmatmul.mubr.f32.gmra.mrb[20].mxu0 %v19146_v31  ;;  %v22385_v31 = vand.u32 4294901760, %v22384_v13 }
 0x3f4   : > { %13287 = vmatprep.mubr.f32.mxu0 %v19180_v5  ;;  %15641 = vmatpush3.bf16.msra.mxu0 %v18799_v63 }
 0x3f5   : > { %15643 = vmatprep.subr.bf16.mxu0 %v18817_v51 }
 0x3f7   : > { %13288 = vmatmul.mubr.f32.gmra.mrb[22].mxu0 %v19171_v41  ;;  %v22391_v41 = vand.u32 4294901760, %v22390_v52 }
 0x3f8   : > { %13290 = vmatprep.mubr.f32.mxu0 %v19200_v10  ;;  %15645 = vmatpush3.bf16.msra.mxu0 %v18817_v51  ;;  %v22393_v10 = vand.u32 4294901760, %v22392_v55 }
 0x3f9   : > { %15647 = vmatprep.subr.bf16.mxu0 %v18831_v36 }
 0x3fb   : > { %13291 = vmatmul.mubr.f32.gmra.mrb[24].mxu0 %v19194_v7  ;;  %v22395_v7 = vld [vmem:[#allocation24_spill] sm:$0xff] }
 0x3fc   : > { %13293 = vmatprep.mubr.f32.mxu0 %v19220_v49  ;;  %15649 = vmatpush3.bf16.msra.mxu0 %v18831_v36  ;;  %v22398_v49 = vand.u32 4294901760, %v22397_v17 }
 0x3fd   : > { %15651 = vmatprep.subr.bf16.mxu0 %v18949_v40 }
 0x3ff   : > { %13294 = vmatmul.mubr.f32.gmra.mrb[26].mxu0 %v19214_v6 }
 0x400   : > { %13296 = vmatprep.mubr.f32.mxu0 %v19240_v34  ;;  %15653 = vmatpush3.bf16.msra.mxu0 %v18949_v40 }
 0x401   : > { %15655 = vmatprep.subr.bf16.mxu0 %v22361_v16 }
 0x403   : > { %13297 = vmatmul.mubr.f32.gmra.mrb[28].mxu0 %v19234_v33  ;;  %v4179_v33 = vld [vmem:[#allocation5 + $0xa0] sm:$0xff] }
 0x404   : > { %13299 = vmatprep.mubr.f32.mxu0 %v19261_v3  ;;  %15657 = vmatpush3.bf16.msra.mxu0 %v22361_v16 }
 0x405   : > { %15659 = vmatprep.subr.bf16.mxu0 %v22362_v28 }
 0x407   : > { %13300 = vmatmul.mubr.f32.gmra.mrb[30].mxu0 %v19254_v42 }
 0x408   : > { %15661 = vmatpush3.bf16.msra.mxu0 %v22362_v28  ;;  %13334 = vmatprep.mubr.f32.mxu0 %v22367_v11 }
 0x409   : > { %15663 = vmatprep.subr.bf16.mxu0 %v15662_v62 }
 0x40b   : > { %13335 = vmatmul.mubr.f32.vlgmr.msra.gmra.mrb[16].mxu0 %v22370_v23  ;;  %v22394_v23 = vand.u32 4294901760, %v19214_v6 }
 0x40c   : > { %13337 = vmatprep.mubr.f32.mxu0 %v22371_v45  ;;  %15665 = vmatpush3.bf16.msra.mxu0 %v15662_v62  ;;  %v22386_v62 = vld [vmem:[#allocation29_spill] sm:$0xff]  ;;  %v22396_v45 = vand.u32 4294901760, %v22395_v7 }
 0x40d   : > { %15667 = vmatprep.subr.bf16.mxu0 %v15666_v29  ;;  %v22387_v5 = vand.u32 4294901760, %v22386_v62 }
 0x40e   : > { %v15690_v14 = vpack.c.bf16 %v22398_v49, %v22396_v45 }
 0x40f   : > { %13338 = vmatmul.mubr.f32.gmra.mrb[18].mxu0 %v22374_v25  ;;  %v15682_v11 = vpack.c.bf16 %v22387_v5, %v22385_v31 }
 0x410   : > { %13340 = vmatprep.mubr.f32.mxu0 %v22375_v56  ;;  %15669 = vmatpush3.bf16.msra.mxu0 %v15666_v29  ;;  %v15686_v29 = vpack.c.bf16 %v22393_v10, %v22391_v41 }
 0x411   : > { %15671 = vmatprep.subr.bf16.mxu0 %v15670_v58 }
 0x413   : > { %13341 = vmatmul.mubr.f32.gmra.mrb[20].mxu0 %v22378_v61 }
 0x414   : > { %13343 = vmatprep.mubr.f32.mxu0 %v22379_v32  ;;  %15673 = vmatpush3.bf16.msra.mxu0 %v15670_v58  ;;  %v4180_v58 = vld [vmem:[#allocation5 + $0xa8] sm:$0xff] }
 0x415   : > { %15675 = vmatprep.subr.bf16.mxu0 %v15674_v18  ;;  %v19500_v62 = vand.u32 4294901760, %v4180_v58 }
 0x417   : > { %13344 = vmatmul.mubr.f32.gmra.mrb[22].mxu0 %v22382_v54 }
 0x418   : > { %13346 = vmatprep.mubr.f32.mxu0 %v22383_v24  ;;  %15677 = vmatpush3.bf16.msra.mxu0 %v15674_v18 }
 0x419   : > { %15679 = vmatprep.subr.bf16.mxu0 %v15678_v4 }
 0x41b   : > { %13347 = vmatmul.mubr.f32.gmra.mrb[24].mxu0 %v22388_v38 }
 0x41c   : > { %13349 = vmatprep.mubr.f32.mxu0 %v22389_v57  ;;  %15681 = vmatpush3.bf16.msra.mxu0 %v15678_v4 }
 0x41d   : > { %15683 = vmatprep.subr.bf16.mxu0 %v15682_v11 }
 0x41f   : > { %13350 = vmatmul.mubr.f32.gmra.mrb[26].mxu0 %v22394_v23 }
 0x420   : > { %13352 = vmatprep.mubr.f32.mxu0 %v3091_v12  ;;  %15685 = vmatpush3.bf16.msra.mxu0 %v15682_v11 }
 0x421   : > { %15687 = vmatprep.subr.bf16.mxu0 %v15686_v29 }
 0x423   : > { %13353 = vmatmul.mubr.f32.gmra.mrb[28].mxu0 %v3101_v30 }
 0x424   : > { %13355 = vmatprep.mubr.f32.mxu0 %v3111_v44  ;;  %15689 = vmatpush3.bf16.msra.mxu0 %v15686_v29 }
 0x425   : > { %15691 = vmatprep.subr.bf16.mxu0 %v15690_v14 }
 0x427   : > { %13356 = vmatmul.mubr.f32.gmra.mrb[30].mxu0 %v3121_v8 }
 0x428   : > { %15693 = vmatpush3.bf16.msra.mxu0 %v15690_v14  ;;  %13390 = vmatprep.mubr.f32.mxu0 %v19084_v19 }
 0x429   : > { %15695 = vmatprep.subr.bf16.mxu0 %v18773_v35 }
 0x42b   : > { %13391 = vmatmul.mubr.f32.vlgmr.msra.gmra.mrb[16].mxu0 %v19071_v48 }
 0x42c   : > { %13393 = vmatprep.mubr.f32.mxu0 %v19105_v15  ;;  %15697 = vmatpush3.bf16.msra.mxu0 %v18773_v35  ;;  %v4175_v35 = vld [vmem:[#allocation5 + $0x80] sm:$0xff] }
 0x42d   : > { %15699 = vmatprep.subr.bf16.mxu0 %v18780_v9 }
 0x42f   : > { %13394 = vmatmul.mubr.f32.gmra.mrb[18].mxu0 %v19100_v59 }
 0x430   : > { %13396 = vmatprep.mubr.f32.mxu0 %v19141_v46  ;;  %15701 = vmatpush3.bf16.msra.mxu0 %v18780_v9  ;;  %v19455_v9 = vand.u32 4294901760, %v4175_v35 }
 0x431   : > { %15703 = vmatprep.subr.bf16.mxu0 %v18799_v63 }
 0x433   : > { %13397 = vmatmul.mubr.f32.gmra.mrb[20].mxu0 %v19131_v53 }
 0x434   : > { %13399 = vmatprep.mubr.f32.mxu0 %v19163_v20  ;;  %15705 = vmatpush3.bf16.msra.mxu0 %v18799_v63 }
 0x435   : > { %15707 = vmatprep.subr.bf16.mxu0 %v18817_v51 }
 0x437   : > { %13400 = vmatmul.mubr.f32.gmra.mrb[22].mxu0 %v19159_v27 }
 0x438   : > { %13402 = vmatprep.mubr.f32.mxu0 %v19190_v60  ;;  %15709 = vmatpush3.bf16.msra.mxu0 %v18817_v51  ;;  %v19458_v51 = vsub.f32 %v4175_v35, %v19455_v9 }
 0x439   : > { %15711 = vmatprep.subr.bf16.mxu0 %v18831_v36 }
 0x43a   : > { %v22042_v63 = vand.u32 4294901760, %v19458_v51 }
 0x43b   : > { %13403 = vmatmul.mubr.f32.gmra.mrb[24].mxu0 %v19186_v2 }
 0x43c   : > { %13405 = vmatprep.mubr.f32.mxu0 %v19210_v39  ;;  %15713 = vmatpush3.bf16.msra.mxu0 %v18831_v36  ;;  %v4275_v36 = vsub.f32 %v19458_v51, %v22042_v63  ;;  %v4183_v63 = vld [vmem:[#allocation5 + $0xc0] sm:$0xff] }
 0x43d   : > { %15715 = vmatprep.subr.bf16.mxu0 %v18949_v40 }
 0x43f   : > { %13406 = vmatmul.mubr.f32.gmra.mrb[26].mxu0 %v19206_v0 }
 0x440   : > { %13408 = vmatprep.mubr.f32.mxu0 %v19230_v21  ;;  %15717 = vmatpush3.bf16.msra.mxu0 %v18949_v40  ;;  %v4276_v40 = vand.u32 4294901760, %v4275_v36 }
 0x441   : > { %15719 = vmatprep.subr.bf16.mxu0 %v22361_v16 }
 0x442   : > { %13502 = vmatprep.mubr.f32.mxu1 %v4276_v40 }
 0x443   : > { %13409 = vmatmul.mubr.f32.gmra.mrb[28].mxu0 %v19226_v22 }
 0x444   : > { %13411 = vmatprep.mubr.f32.mxu0 %v19250_v26  ;;  %15721 = vmatpush3.bf16.msra.mxu0 %v22361_v16 }
 0x445   : > { %15723 = vmatprep.subr.bf16.mxu0 %v22362_v28 }
 0x447   : > { %13412 = vmatmul.mubr.f32.gmra.mrb[30].mxu0 %v19246_v37 }
 0x448   : > { %15725 = vmatpush3.bf16.msra.mxu0 %v22362_v28  ;;  %13446 = vmatprep.mubr.f32.mxu0 %v19084_v19  ;;  %v19489_v28 = vand.u32 4294901760, %v4179_v33 }
 0x44a   : > { %v19512_v10 = vsub.f32 %v4179_v33, %v19489_v28 }
 0x44b   : > { %13447 = vmatmul.mubr.f32.vlgmr.msra.gmra.mrb[16].mxu0 %v19071_v48 }
 0x44c   : > { %13449 = vmatprep.mubr.f32.mxu0 %v19105_v15 }
 0x44f   : > { %13450 = vmatmul.mubr.f32.gmra.mrb[18].mxu0 %v19100_v59  ;;  %v4178_v59 = vld [vmem:[#allocation5 + $0x98] sm:$0xff] }
 0x450   : > { %13452 = vmatprep.mubr.f32.mxu0 %v19141_v46  ;;  %v19472_v46 = vand.u32 4294901760, %v4178_v59 }
 0x453   : > { %13453 = vmatmul.mubr.f32.gmra.mrb[20].mxu0 %v19131_v53  ;;  %v4176_v53 = vld [vmem:[#allocation5 + $0x88] sm:$0xff] }
 0x454   : > { %13455 = vmatprep.mubr.f32.mxu0 %v19163_v20  ;;  %v19464_v48 = vand.u32 4294901760, %v4176_v53 }
 0x456   : > { %v19467_v19 = vsub.f32 %v4176_v53, %v19464_v48 }
 0x457   : > { %13456 = vmatmul.mubr.f32.gmra.mrb[22].mxu0 %v19159_v27 }
 0x458   : > { %13458 = vmatprep.mubr.f32.mxu0 %v19190_v60  ;;  %v22041_v27 = vand.u32 4294901760, %v19467_v19 }
 0x45a   : > { %v19480_v6 = vsub.f32 %v19467_v19, %v22041_v27 }
 0x45b   : > { %13459 = vmatmul.mubr.f32.gmra.mrb[24].mxu0 %v19186_v2 }
 0x45c   : > { %13461 = vmatprep.mubr.f32.mxu0 %v19210_v39 }
 0x45f   : > { %13462 = vmatmul.mubr.f32.gmra.mrb[26].mxu0 %v19206_v0 }
 0x460   : > { %13464 = vmatprep.mubr.f32.mxu0 %v19230_v21 }
 0x463   : > { %13465 = vmatmul.mubr.f32.gmra.mrb[28].mxu0 %v19226_v22  ;;  %v19483_v22 = vsub.f32 %v4178_v59, %v19472_v46 }
 0x464   : > { %13467 = vmatprep.mubr.f32.mxu0 %v19250_v26  ;;  %v4177_v26 = vld [vmem:[#allocation5 + $0x90] sm:$0xff] }
 0x465   : > { %v19469_v15 = vand.u32 4294901760, %v4177_v26  ;;  %v22039_v18 = vand.u32 4294901760, %v19483_v22 }
 0x467   : > { %13468 = vmatmul.mubr.f32.gmra.mrb[30].mxu0 %v19246_v37  ;;  %v19475_v0 = vsub.f32 %v4177_v26, %v19469_v15 }
 0x469   : > { %v22040_v8 = vand.u32 4294901760, %v19475_v0 }
 0x46b   : > { %v19509_v55 = vsub.f32 %v19475_v0, %v22040_v8 }
 0x51e   : > { %v13448_v20 = vpop.f32.mrb[16].mxu0 }
 0x51f   : > { %v4195_v2 = vand.u32 4294901760, %v13448_v20  ;;  %v4080_v60 = vpop.f32.mrb[17].mxu0 }
 0x520   : > { %v4192_v21 = vand.u32 4294901760, %v4080_v60 }
 0x521   : > { %v4441_v39 = vsub.f32 %v13448_v20, %v4195_v2 }
 0x522   : > { %v19485_v34 = vpack.c.bf16 %v4195_v2, %v4192_v21  ;;  %v4434_v37 = vsub.f32 %v4080_v60, %v4192_v21  ;;  %v13451_v30 = vpop.f32.mrb[18].mxu0  ;;  %v19527_v21 = vsub.f32 %v19483_v22, %v22039_v18 }
 0x523   : > { %v4442_v12 = vand.u32 4294901760, %v4441_v39  ;;  %v4201_v42 = vand.u32 4294901760, %v13451_v30  ;;  %v4092_v3 = vpop.f32.mrb[19].mxu0 }
 0x524   : > { %v4435_v44 = vand.u32 4294901760, %v4434_v37  ;;  %v4198_v16 = vand.u32 4294901760, %v4092_v3  ;;  %15727 = vmatprep.subr.bf16.mxu1 %v19485_v34  ;;  %v19491_v25 = vpack.c.bf16 %v4441_v39, %v4434_v37 }
 0x525   : > { %v4443_v56 = vsub.f32 %v4441_v39, %v4442_v12  ;;  %v4455_v1 = vsub.f32 %v13451_v30, %v4201_v42  ;;  %15729 = vmatpush3.bf16.msra.mxu1 %v19485_v34  ;;  %v19530_v39 = vsub.f32 %v4180_v58, %v19500_v62 }
 0x526   : > { %v4436_v61 = vsub.f32 %v4434_v37, %v4435_v44  ;;  %v19496_v32 = vpack.c.bf16 %v4201_v42, %v4198_v16  ;;  %v4448_v47 = vsub.f32 %v4092_v3, %v4198_v16  ;;  %v13454_v43 = vpop.f32.mrb[20].mxu0  ;;  %v19498_v4 = vpack.c.bf16 %v4442_v12, %v4435_v44 }
 0x527   : > { %v4456_v54 = vand.u32 4294901760, %v4455_v1  ;;  %v4207_v24 = vand.u32 4294901760, %v13454_v43  ;;  %v4104_v13 = vpop.f32.mrb[21].mxu0  ;;  %v4444_v31 = vand.u32 4294901760, %v4443_v56 }
 0x528   : > { %22399 = vst [vmem:[#allocation32_spill] sm:$0xff] %v19498_v4  ;;  %v4449_v5 = vand.u32 4294901760, %v4448_v47  ;;  %v4204_v11 = vand.u32 4294901760, %v4104_v13  ;;  %15731 = vmatprep.subr.bf16.mxu1 %v19496_v32  ;;  %v4437_v38 = vand.u32 4294901760, %v4436_v61  ;;  %v19503_v57 = vpack.c.bf16 %v4455_v1, %v4448_v47 }
 0x529   : > { %v4457_v52 = vsub.f32 %v4455_v1, %v4456_v54  ;;  %v4469_v41 = vsub.f32 %v13454_v43, %v4207_v24  ;;  %15733 = vmatpush3.bf16.msra.mxu1 %v19496_v32 }
 0x52a   : > { %v4450_v29 = vsub.f32 %v4448_v47, %v4449_v5  ;;  %v19514_v23 = vpack.c.bf16 %v4207_v24, %v4204_v11  ;;  %v4462_v7 = vsub.f32 %v4104_v13, %v4204_v11  ;;  %v13457_v45 = vpop.f32.mrb[22].mxu0  ;;  %v19516_v17 = vpack.c.bf16 %v4444_v31, %v4437_v38 }
 0x52b   : > { %v4470_v49 = vand.u32 4294901760, %v4469_v41  ;;  %v4213_v14 = vand.u32 4294901760, %v13457_v45  ;;  %v4116_v35 = vpop.f32.mrb[23].mxu0  ;;  %v4458_v36 = vand.u32 4294901760, %v4457_v52  ;;  %v19518_v40 = vpack.c.bf16 %v4456_v54, %v4449_v5 }
 0x52c   : > { %v4463_v53 = vand.u32 4294901760, %v4462_v7  ;;  %v4210_v26 = vand.u32 4294901760, %v4116_v35  ;;  %15735 = vmatprep.subr.bf16.mxu1 %v19514_v23  ;;  %v4451_v59 = vand.u32 4294901760, %v4450_v29  ;;  %v19521_v20 = vpack.c.bf16 %v4469_v41, %v4462_v7  ;;  %v4181_v29 = vld [vmem:[#allocation5 + $0xb0] sm:$0xff] }
 0x52d   : > { %22400 = vst [vmem:[#allocation33_spill] sm:$0xff] %v19518_v40  ;;  %v4471_v2 = vsub.f32 %v4469_v41, %v4470_v49  ;;  %v4483_v60 = vsub.f32 %v13457_v45, %v4213_v14  ;;  %15737 = vmatpush3.bf16.msra.mxu1 %v19514_v23 }
 0x52e   : > { %v4464_v33 = vsub.f32 %v4462_v7, %v4463_v53  ;;  %v19532_v37 = vpack.c.bf16 %v4213_v14, %v4210_v26  ;;  %v4476_v30 = vsub.f32 %v4116_v35, %v4210_v26  ;;  %v13460_v12 = vpop.f32.mrb[24].mxu0  ;;  %v19534_v42 = vpack.c.bf16 %v4458_v36, %v4451_v59 }
 0x52f   : > { %v4484_v3 = vand.u32 4294901760, %v4483_v60  ;;  %v4219_v44 = vand.u32 4294901760, %v13460_v12  ;;  %v4128_v16 = vpop.f32.mrb[25].mxu0  ;;  %v4472_v56 = vand.u32 4294901760, %v4471_v2  ;;  %v19536_v1 = vpack.c.bf16 %v4470_v49, %v4463_v53 }
 0x530   : > { %v4477_v61 = vand.u32 4294901760, %v4476_v30  ;;  %v4216_v47 = vand.u32 4294901760, %v4128_v16  ;;  %15739 = vmatprep.subr.bf16.mxu1 %v19532_v37  ;;  %v4465_v43 = vand.u32 4294901760, %v4464_v33  ;;  %v19539_v58 = vpack.c.bf16 %v4483_v60, %v4476_v30 }
 0x531   : > { %22401 = vst [vmem:[#allocation34_spill] sm:$0xff] %v19536_v1  ;;  %v4485_v54 = vsub.f32 %v4483_v60, %v4484_v3  ;;  %v4497_v24 = vsub.f32 %v13460_v12, %v4219_v44  ;;  %15741 = vmatpush3.bf16.msra.mxu1 %v19532_v37 }
 0x532   : > { %v4478_v5 = vsub.f32 %v4476_v30, %v4477_v61  ;;  %v19544_v11 = vpack.c.bf16 %v4219_v44, %v4216_v47  ;;  %v4490_v38 = vsub.f32 %v4128_v16, %v4216_v47  ;;  %v13463_v52 = vpop.f32.mrb[26].mxu0  ;;  %v19546_v41 = vpack.c.bf16 %v4472_v56, %v4465_v43 }
 0x533   : > { %v4498_v7 = vand.u32 4294901760, %v4497_v24  ;;  %v4225_v45 = vand.u32 4294901760, %v13463_v52  ;;  %v4140_v49 = vpop.f32.mrb[27].mxu0  ;;  %v4486_v14 = vand.u32 4294901760, %v4485_v54  ;;  %v19548_v35 = vpack.c.bf16 %v4484_v3, %v4477_v61  ;;  %v4182_v61 = vld [vmem:[#allocation5 + $0xb8] sm:$0xff] }
 0x534   : > { %v4491_v36 = vand.u32 4294901760, %v4490_v38  ;;  %v4222_v53 = vand.u32 4294901760, %v4140_v49  ;;  %15743 = vmatprep.subr.bf16.mxu1 %v19544_v11  ;;  %v4479_v26 = vand.u32 4294901760, %v4478_v5  ;;  %v19551_v59 = vpack.c.bf16 %v4497_v24, %v4490_v38 }
 0x535   : > { %22402 = vst [vmem:[#allocation13_spill] sm:$0xff] %v19548_v35  ;;  %v4499_v2 = vsub.f32 %v4497_v24, %v4498_v7  ;;  %v4511_v60 = vsub.f32 %v13463_v52, %v4225_v45  ;;  %15745 = vmatpush3.bf16.msra.mxu1 %v19544_v11  ;;  %v19555_v30 = vand.u32 4294901760, %v4181_v29  ;;  %v22410_v35 = vand.u32 4294901760, %v19530_v39 }
 0x536   : > { %v4492_v12 = vsub.f32 %v4490_v38, %v4491_v36  ;;  %v19557_v44 = vpack.c.bf16 %v4225_v45, %v4222_v53  ;;  %v4504_v3 = vsub.f32 %v4140_v49, %v4222_v53  ;;  %v13466_v16 = vpop.f32.mrb[28].mxu0  ;;  %v19559_v56 = vpack.c.bf16 %v4486_v14, %v4479_v26 }
 0x537   : > { %v4512_v47 = vand.u32 4294901760, %v4511_v60  ;;  %v4231_v43 = vand.u32 4294901760, %v13466_v16  ;;  %v4152_v54 = vpop.f32.mrb[29].mxu0  ;;  %v4500_v5 = vand.u32 4294901760, %v4499_v2  ;;  %v19561_v24 = vpack.c.bf16 %v4498_v7, %v4491_v36 }
 0x538   : > { %v4505_v52 = vand.u32 4294901760, %v4504_v3  ;;  %v4228_v18 = vand.u32 4294901760, %v4152_v54  ;;  %15747 = vmatprep.subr.bf16.mxu1 %v19557_v44  ;;  %v4493_v8 = vand.u32 4294901760, %v4492_v12  ;;  %v19564_v27 = vpack.c.bf16 %v4511_v60, %v4504_v3 }
 0x539   : > { %22403 = vst [vmem:[#allocation22_spill] sm:$0xff] %v19561_v24  ;;  %v4513_v38 = vsub.f32 %v4511_v60, %v4512_v47  ;;  %v4525_v45 = vsub.f32 %v13466_v16, %v4231_v43  ;;  %15749 = vmatpush3.bf16.msra.mxu1 %v19557_v44  ;;  %v19568_v49 = vsub.f32 %v4181_v29, %v19555_v30  ;;  %v19570_v14 = vand.u32 4294901760, %v4182_v61 }
 0x53a   : > { %v4506_v53 = vsub.f32 %v4504_v3, %v4505_v52  ;;  %v19572_v26 = vpack.c.bf16 %v4231_v43, %v4228_v18  ;;  %v4518_v7 = vsub.f32 %v4152_v54, %v4228_v18  ;;  %v13469_v36 = vpop.f32.mrb[30].mxu0  ;;  %v19574_v2 = vpack.c.bf16 %v4500_v5, %v4493_v8  ;;  %v4184_v54 = vld [vmem:[#allocation5 + $0xc8] sm:$0xff] }
 0x53b   : > { %v4526_v12 = vand.u32 4294901760, %v4525_v45  ;;  %v4237_v13 = vand.u32 4294901760, %v13469_v36  ;;  %v4164_v50 = vpop.f32.mrb[31].mxu0  ;;  %v4514_v60 = vand.u32 4294901760, %v4513_v38  ;;  %v19576_v16 = vpack.c.bf16 %v4512_v47, %v4505_v52 }
 0x53c   : > { %22404 = vst [vmem:[#allocation31_spill] sm:$0xff] %v19572_v26  ;;  %v4519_v33 = vand.u32 4294901760, %v4518_v7  ;;  %v4234_v31 = vand.u32 4294901760, %v4164_v50  ;;  %15751 = vmatprep.subr.bf16.mxu1 %v19572_v26  ;;  %v4507_v29 = vand.u32 4294901760, %v4506_v53  ;;  %v19579_v24 = vpack.c.bf16 %v4525_v45, %v4518_v7 }
 0x53d   : > { %22405 = vst [vmem:[#allocation15_spill] sm:$0xff] %v19576_v16  ;;  %v4527_v3 = vsub.f32 %v4525_v45, %v4526_v12  ;;  %v4539_v43 = vsub.f32 %v13469_v36, %v4237_v13  ;;  %15753 = vmatpush3.bf16.msra.mxu1 %v19572_v26  ;;  %v19583_v8 = vsub.f32 %v4182_v61, %v19570_v14  ;;  %v19585_v18 = vand.u32 4294901760, %v4183_v63  ;;  %v4185_v16 = vld [vmem:[#allocation5 + $0xd0] sm:$0xff] }
 0x53e   : > { %v4520_v5 = vsub.f32 %v4518_v7, %v4519_v33  ;;  %v19587_v47 = vpack.c.bf16 %v4237_v13, %v4234_v31  ;;  %v4532_v52 = vsub.f32 %v4164_v50, %v4234_v31  ;;  %v19589_v38 = vpack.c.bf16 %v4514_v60, %v4507_v29 }
 0x53f   : > { %v4540_v53 = vand.u32 4294901760, %v4539_v43  ;;  %v4528_v45 = vand.u32 4294901760, %v4527_v3  ;;  %v19592_v36 = vpack.c.bf16 %v4526_v12, %v4519_v33  ;;  %v19595_v61 = vand.u32 4294901760, %v4184_v54  ;;  %v4186_v12 = vld [vmem:[#allocation5 + $0xd8] sm:$0xff]  ;;  %v4187_v3 = vld [vmem:[#allocation5 + $0xe0] sm:$0xff] }
 0x540   : > { %22406 = vst [vmem:[#allocation12_spill] sm:$0xff] %v19587_v47  ;;  %v4533_v1 = vand.u32 4294901760, %v4532_v52  ;;  %15755 = vmatprep.subr.bf16.mxu1 %v19587_v47  ;;  %v4521_v40 = vand.u32 4294901760, %v4520_v5  ;;  %v19597_v4 = vpack.c.bf16 %v4539_v43, %v4532_v52  ;;  %v22408_v50 = vand.u32 4294901760, %v19512_v10 }
 0x541   : > { %22407 = vst [vmem:[#allocation17_spill] sm:$0xff] %v19592_v36  ;;  %v4541_v13 = vsub.f32 %v4539_v43, %v4540_v53  ;;  %15757 = vmatpush3.bf16.msra.mxu1 %v19587_v47  ;;  %v19604_v7 = vsub.f32 %v4183_v63, %v19585_v18  ;;  %v19606_v33 = vand.u32 4294901760, %v4185_v16  ;;  %v4306_v43 = vand.u32 4294901760, %v19527_v21  ;;  %v4189_v63 = vld [vmem:[#allocation5 + $0xf0] sm:$0xff] }
 0x542   : > { %v4315_v31 = vsub.f32 %v19512_v10, %v22408_v50  ;;  %v4534_v60 = vsub.f32 %v4532_v52, %v4533_v1  ;;  %15759 = vmatprep.subr.bf16.mxu1 %v19516_v17  ;;  %v19609_v29 = vpack.c.bf16 %v4528_v45, %v4521_v40  ;;  %v19611_v5 = vpack.c.bf16 %v4540_v53, %v4533_v1 }
 0x543   : > { %v4325_v50 = vsub.f32 %v19530_v39, %v22410_v35  ;;  %v4542_v36 = vand.u32 4294901760, %v4541_v13  ;;  %v22411_v47 = vand.u32 4294901760, %v19480_v6  ;;  %v22412_v52 = vand.u32 4294901760, %v19568_v49 }
 0x544   : > { %22409 = vst [vmem:[#allocation19_spill] sm:$0xff] %v19611_v5  ;;  %v19624_v45 = vsub.f32 %v4184_v54, %v19595_v61  ;;  %v19626_v1 = vand.u32 4294901760, %v4186_v12  ;;  %v4535_v21 = vand.u32 4294901760, %v4534_v60  ;;  %v22413_v35 = vand.u32 4294901760, %v19509_v55 }
 0x545   : > { %13503 = vmatmul.mubr.f32.vlgmr.msra.gmra.mrb[16].mxu1 %v22411_v47  ;;  %v4335_v40 = vsub.f32 %v19568_v49, %v22412_v52  ;;  %v4316_v53 = vand.u32 4294901760, %v4315_v31  ;;  %v22053_v13 = vand.u32 4294901760, %v19604_v7  ;;  %v19633_v6 = vsub.f32 %v4185_v16, %v19606_v33  ;;  %v4188_v52 = vld [vmem:[#allocation5 + $0xe8] sm:$0xff] }
 0x546   : > { %15761 = vmatpush3.bf16.msra.mxu1 %v19516_v17  ;;  %13505 = vmatprep.mubr.f32.mxu1 %v22413_v35  ;;  %v19635_v47 = vand.u32 4294901760, %v4187_v3  ;;  %v15786_v54 = vpack.c.bf16 %v4542_v36, %v4535_v21  ;;  %v4326_v5 = vand.u32 4294901760, %v4325_v50  ;;  %v22414_v60 = vand.u32 4294901760, %v19583_v8 }
 0x547   : > { %15763 = vmatprep.subr.bf16.mxu1 %v19534_v42  ;;  %v4336_v55 = vand.u32 4294901760, %v4335_v40  ;;  %v22056_v31 = vand.u32 4294901760, %v19624_v45  ;;  %v19643_v35 = vsub.f32 %v4186_v12, %v19626_v1  ;;  %v19645_v16 = vand.u32 4294901760, %v4188_v52  ;;  %v4190_v40 = vld [vmem:[#allocation5 + $0xf8] sm:$0xff] }
 0x548   : > { %v4345_v17 = vsub.f32 %v19583_v8, %v22414_v60  ;;  %v4355_v36 = vsub.f32 %v19604_v7, %v22053_v13  ;;  %v4374_v50 = vand.u32 4294901760, %v19633_v6  ;;  %v19653_v21 = vsub.f32 %v4187_v3, %v19635_v47 }
 0x549   : > { %13506 = vmatmul.mubr.f32.gmra.mrb[18].mxu1 %v4306_v43  ;;  %v19655_v43 = vand.u32 4294901760, %v4189_v63  ;;  %v19663_v60 = vsub.f32 %v4188_v52, %v19645_v16  ;;  %v19665_v13 = vand.u32 4294901760, %v4190_v40 }
 0x54a   : > { %15765 = vmatpush3.bf16.msra.mxu1 %v19534_v42  ;;  %13508 = vmatprep.mubr.f32.mxu1 %v4316_v53  ;;  %v4346_v12 = vand.u32 4294901760, %v4345_v17  ;;  %v4365_v42 = vsub.f32 %v19624_v45, %v22056_v31  ;;  %v22057_v53 = vand.u32 4294901760, %v19643_v35  ;;  %v4356_v3 = vand.u32 4294901760, %v4355_v36 }
 0x54b   : > { %15767 = vmatprep.subr.bf16.mxu1 %v19546_v41  ;;  %v4375_v17 = vsub.f32 %v19633_v6, %v4374_v50  ;;  %v19673_v26 = vsub.f32 %v4189_v63, %v19655_v43 }
 0x54c   : > { %v4366_v52 = vand.u32 4294901760, %v4365_v42  ;;  %v4385_v31 = vsub.f32 %v19643_v35, %v22057_v53 }
 0x54d   : > { %13509 = vmatmul.mubr.f32.gmra.mrb[20].mxu1 %v4326_v5  ;;  %v4394_v5 = vand.u32 4294901760, %v19653_v21  ;;  %v4376_v36 = vand.u32 4294901760, %v4375_v17 }
 0x54e   : > { %15769 = vmatpush3.bf16.msra.mxu1 %v19546_v41  ;;  %13511 = vmatprep.mubr.f32.mxu1 %v4336_v55  ;;  %v4404_v41 = vand.u32 4294901760, %v19663_v60  ;;  %v19681_v55 = vsub.f32 %v4190_v40, %v19665_v13  ;;  %v4386_v42 = vand.u32 4294901760, %v4385_v31 }
 0x54f   : > { %15771 = vmatprep.subr.bf16.mxu1 %v19559_v56  ;;  %v4395_v63 = vsub.f32 %v19653_v21, %v4394_v5 }
 0x550   : > { %v4405_v53 = vsub.f32 %v19663_v60, %v4404_v41  ;;  %v22068_v40 = vand.u32 4294901760, %v19681_v55 }
 0x551   : > { %13512 = vmatmul.mubr.f32.gmra.mrb[22].mxu1 %v4346_v12  ;;  %v22069_v12 = vand.u32 4294901760, %v19673_v26 }
 0x552   : > { %15773 = vmatpush3.bf16.msra.mxu1 %v19559_v56  ;;  %13514 = vmatprep.mubr.f32.mxu1 %v4356_v3  ;;  %v4396_v56 = vand.u32 4294901760, %v4395_v63  ;;  %v4406_v17 = vand.u32 4294901760, %v4405_v53  ;;  %v4425_v31 = vsub.f32 %v19681_v55, %v22068_v40  ;;  %v22421_v40 = vld [vmem:[#allocation33_spill] sm:$0xff] }
 0x553   : > { %15775 = vmatprep.subr.bf16.mxu1 %v19574_v2  ;;  %v4415_v3 = vsub.f32 %v19673_v26, %v22069_v12  ;;  %v22422_v12 = vand.u32 4294901760, %v19483_v22 }
 0x555   : > { %13515 = vmatmul.mubr.f32.gmra.mrb[24].mxu1 %v4366_v52  ;;  %v4416_v52 = vand.u32 4294901760, %v4415_v3 }
 0x556   : > { %15777 = vmatpush3.bf16.msra.mxu1 %v19574_v2  ;;  %13517 = vmatprep.mubr.f32.mxu1 %v4376_v36  ;;  %v4426_v2 = vand.u32 4294901760, %v4425_v31 }
 0x557   : > { %15779 = vmatprep.subr.bf16.mxu1 %v19589_v38 }
 0x559   : > { %13518 = vmatmul.mubr.f32.gmra.mrb[26].mxu1 %v4386_v42  ;;  %v19771_v42 = vld [vmem:[#allocation7 + $0x130] sm:$0xff] }
 0x55a   : > { %15781 = vmatpush3.bf16.msra.mxu1 %v19589_v38  ;;  %13520 = vmatprep.mubr.f32.mxu1 %v4396_v56  ;;  %v19748_v38 = vld [vmem:[#allocation7 + $0x120] sm:$0xff]  ;;  %v19773_v56 = vld [vmem:[#allocation7 + $0x138] sm:$0xff] }
 0x55b   : > { %15783 = vmatprep.subr.bf16.mxu1 %v19609_v29  ;;  %v22059_v36 = vand.u32 4294901760, %v19748_v38  ;;  %v22061_v31 = vand.u32 4294901760, %v19773_v56 }
 0x55d   : > { %13521 = vmatmul.mubr.f32.gmra.mrb[28].mxu1 %v4406_v17  ;;  %v22064_v17 = vand.u32 4294901760, %v19771_v42 }
 0x55e   : > { %15785 = vmatpush3.bf16.msra.mxu1 %v19609_v29  ;;  %13523 = vmatprep.mubr.f32.mxu1 %v4416_v52  ;;  %v19750_v29 = vld [vmem:[#allocation7 + $0x128] sm:$0xff]  ;;  %v19790_v52 = vld [vmem:[#allocation7 + $0x140] sm:$0xff] }
 0x55f   : > { %15787 = vmatprep.subr.bf16.mxu1 %v15786_v54  ;;  %v22058_v63 = vand.u32 4294901760, %v19750_v29 }
 0x561   : > { %13524 = vmatmul.mubr.f32.gmra.mrb[30].mxu1 %v4426_v2  ;;  %v19784_v3 = vpack.c.bf16 %v22058_v63, %v22059_v36  ;;  %v19792_v2 = vld [vmem:[#allocation7 + $0x148] sm:$0xff]  ;;  %v19802_v63 = vpack.c.bf16 %v22061_v31, %v22064_v17  ;;  %v22063_v36 = vand.u32 4294901760, %v19790_v52  ;;  %v22417_v17 = vand.u32 4294901760, %v19458_v51 }
 0x562   : > { %15789 = vmatpush3.bf16.msra.mxu1 %v15786_v54  ;;  %13558 = vmatprep.mubr.f32.mxu1 %v19455_v9 }
 0x563   : > { %15791 = vmatprep.subr.bf16.mxu1 %v19491_v25 }
 0x565   : > { %13559 = vmatmul.mubr.f32.vlgmr.msra.gmra.mrb[16].mxu1 %v19464_v48 }
 0x566   : > { %15793 = vmatpush3.bf16.msra.mxu1 %v19491_v25  ;;  %13561 = vmatprep.mubr.f32.mxu1 %v19469_v15  ;;  %v19735_v25 = vld [vmem:[#allocation7 + $0x100] sm:$0xff] }
 0x567   : > { %15795 = vmatprep.subr.bf16.mxu1 %v19503_v57 }
 0x569   : > { %13562 = vmatmul.mubr.f32.gmra.mrb[18].mxu1 %v19472_v46 }
 0x56a   : > { %15797 = vmatpush3.bf16.msra.mxu1 %v19503_v57  ;;  %13564 = vmatprep.mubr.f32.mxu1 %v19489_v28  ;;  %v19737_v57 = vld [vmem:[#allocation7 + $0x108] sm:$0xff] }
 0x56b   : > { %15799 = vmatprep.subr.bf16.mxu1 %v19521_v20 }
 0x56d   : > { %13565 = vmatmul.mubr.f32.gmra.mrb[20].mxu1 %v19500_v62 }
 0x56e   : > { %15801 = vmatpush3.bf16.msra.mxu1 %v19521_v20  ;;  %13567 = vmatprep.mubr.f32.mxu1 %v19555_v30  ;;  %v19739_v20 = vld [vmem:[#allocation7 + $0x110] sm:$0xff] }
 0x56f   : > { %15803 = vmatprep.subr.bf16.mxu1 %v19539_v58 }
 0x571   : > { %13568 = vmatmul.mubr.f32.gmra.mrb[22].mxu1 %v19570_v14 }
 0x572   : > { %15805 = vmatpush3.bf16.msra.mxu1 %v19539_v58  ;;  %13570 = vmatprep.mubr.f32.mxu1 %v19585_v18  ;;  %v22066_v58 = vand.u32 4294901760, %v19737_v57 }
 0x573   : > { %15807 = vmatprep.subr.bf16.mxu1 %v19551_v59 }
 0x575   : > { %13571 = vmatmul.mubr.f32.gmra.mrb[24].mxu1 %v19595_v61 }
 0x576   : > { %15809 = vmatpush3.bf16.msra.mxu1 %v19551_v59  ;;  %13573 = vmatprep.mubr.f32.mxu1 %v19606_v33  ;;  %v19745_v59 = vld [vmem:[#allocation7 + $0x118] sm:$0xff] }
 0x577   : > { %15811 = vmatprep.subr.bf16.mxu1 %v19564_v27  ;;  %v22060_v54 = vand.u32 4294901760, %v19745_v59 }
 0x579   : > { %13574 = vmatmul.mubr.f32.gmra.mrb[26].mxu1 %v19626_v1 }
 0x57a   : > { %15813 = vmatpush3.bf16.msra.mxu1 %v19564_v27  ;;  %13576 = vmatprep.mubr.f32.mxu1 %v19635_v47  ;;  %v22067_v27 = vand.u32 4294901760, %v19735_v25 }
 0x57b   : > { %15815 = vmatprep.subr.bf16.mxu1 %v19579_v24 }
 0x57d   : > { %13577 = vmatmul.mubr.f32.gmra.mrb[28].mxu1 %v19645_v16 }
 0x57e   : > { %15817 = vmatpush3.bf16.msra.mxu1 %v19579_v24  ;;  %13579 = vmatprep.mubr.f32.mxu1 %v19655_v43  ;;  %v22065_v24 = vand.u32 4294901760, %v19739_v20 }
 0x57f   : > { %15819 = vmatprep.subr.bf16.mxu1 %v19597_v4 }
 0x580   : > { %v19765_v53 = vpack.c.bf16 %v22060_v54, %v22065_v24  ;;  %v22062_v54 = vand.u32 4294901760, %v19792_v2  ;;  %v22418_v24 = vld [vmem:[#allocation32_spill] sm:$0xff] }
 0x581   : > { %13580 = vmatmul.mubr.f32.gmra.mrb[30].mxu1 %v19665_v13 }
 0x582   : > { %15821 = vmatpush3.bf16.msra.mxu1 %v19597_v4  ;;  %13614 = vmatprep.mubr.f32.mxu1 %v19458_v51  ;;  %v19758_v4 = vpack.c.bf16 %v22066_v58, %v22067_v27  ;;  %v19816_v31 = vpack.c.bf16 %v22062_v54, %v22063_v36  ;;  %v22415_v54 = vld [vmem:[#allocation31_spill] sm:$0xff]  ;;  %v22416_v36 = vld [vmem:[#allocation12_spill] sm:$0xff]  ;;  %v22419_v58 = vand.u32 4294901760, %v19467_v19  ;;  %v22420_v27 = vand.u32 4294901760, %v19475_v0 }
 0x583   : > { %15823 = vmatprep.subr.bf16.mxu1 %v19485_v34  ;;  %v22423_v51 = vand.u32 4294901760, %v19512_v10 }
 0x584   : > { %15919 = vmatprep.subr.bf16.mxu0 %v19758_v4 }
 0x585   : > { %13615 = vmatmul.mubr.f32.vlgmr.msra.gmra.mrb[16].mxu1 %v19467_v19  ;;  %15921 = vmatpush3.bf16.msra.mxu0 %v19758_v4  ;;  %v22425_v19 = vand.u32 4294901760, %v19530_v39 }
 0x586   : > { %15825 = vmatpush3.bf16.msra.mxu1 %v19485_v34  ;;  %13617 = vmatprep.mubr.f32.mxu1 %v19475_v0  ;;  %v22426_v0 = vand.u32 4294901760, %v19568_v49 }
 0x587   : > { %15827 = vmatprep.subr.bf16.mxu1 %v19496_v32  ;;  %15923 = vmatprep.subr.bf16.mxu0 %v19765_v53 }
 0x589   : > { %13618 = vmatmul.mubr.f32.gmra.mrb[18].mxu1 %v19483_v22  ;;  %15925 = vmatpush3.bf16.msra.mxu0 %v19765_v53  ;;  %v22428_v22 = vand.u32 4294901760, %v19583_v8 }
 0x58a   : > { %15829 = vmatpush3.bf16.msra.mxu1 %v19496_v32  ;;  %13620 = vmatprep.mubr.f32.mxu1 %v19512_v10  ;;  %v22429_v10 = vand.u32 4294901760, %v19604_v7 }
 0x58b   : > { %15831 = vmatprep.subr.bf16.mxu1 %v19514_v23  ;;  %15927 = vmatprep.subr.bf16.mxu0 %v19784_v3 }
 0x58d   : > { %13621 = vmatmul.mubr.f32.gmra.mrb[20].mxu1 %v19530_v39  ;;  %15929 = vmatpush3.bf16.msra.mxu0 %v19784_v3  ;;  %v22431_v39 = vand.u32 4294901760, %v19624_v45 }
 0x58e   : > { %15833 = vmatpush3.bf16.msra.mxu1 %v19514_v23  ;;  %13623 = vmatprep.mubr.f32.mxu1 %v19568_v49  ;;  %v22432_v49 = vld [vmem:[#allocation15_spill] sm:$0xff] }
 0x58f   : > { %15835 = vmatprep.subr.bf16.mxu1 %v19532_v37  ;;  %15931 = vmatprep.subr.bf16.mxu0 %v19802_v63 }
 0x591   : > { %13624 = vmatmul.mubr.f32.gmra.mrb[22].mxu1 %v19583_v8  ;;  %15933 = vmatpush3.bf16.msra.mxu0 %v19802_v63  ;;  %v22433_v8 = vand.u32 4294901760, %v19643_v35 }
 0x592   : > { %15837 = vmatpush3.bf16.msra.mxu1 %v19532_v37  ;;  %13626 = vmatprep.mubr.f32.mxu1 %v19604_v7  ;;  %v22434_v7 = vld [vmem:[#allocation17_spill] sm:$0xff] }
 0x593   : > { %15839 = vmatprep.subr.bf16.mxu1 %v19544_v11  ;;  %15935 = vmatprep.subr.bf16.mxu0 %v19816_v31 }
 0x595   : > { %13627 = vmatmul.mubr.f32.gmra.mrb[24].mxu1 %v19624_v45  ;;  %15937 = vmatpush3.bf16.msra.mxu0 %v19816_v31  ;;  %v22435_v45 = vand.u32 4294901760, %v19673_v26 }
 0x596   : > { %15841 = vmatpush3.bf16.msra.mxu1 %v19544_v11  ;;  %13629 = vmatprep.mubr.f32.mxu1 %v19633_v6  ;;  %v22436_v6 = vld [vmem:[#allocation19_spill] sm:$0xff] }
 0x597   : > { %15843 = vmatprep.subr.bf16.mxu1 %v19557_v44 }
 0x599   : > { %13630 = vmatmul.mubr.f32.gmra.mrb[26].mxu1 %v19643_v35  ;;  %v22437_v35 = vand.u32 4294901760, %v19681_v55 }
 0x59a   : > { %15845 = vmatpush3.bf16.msra.mxu1 %v19557_v44  ;;  %13632 = vmatprep.mubr.f32.mxu1 %v19653_v21 }
 0x59b   : > { %15847 = vmatprep.subr.bf16.mxu1 %v22415_v54 }
 0x59d   : > { %13633 = vmatmul.mubr.f32.gmra.mrb[28].mxu1 %v19663_v60 }
 0x59e   : > { %15849 = vmatpush3.bf16.msra.mxu1 %v22415_v54  ;;  %13635 = vmatprep.mubr.f32.mxu1 %v19673_v26  ;;  %v5509_v26 = vld [vmem:[#allocation7 + $0x170] sm:$0xff] }
 0x59f   : > { %15851 = vmatprep.subr.bf16.mxu1 %v22416_v36 }
 0x5a1   : > { %13636 = vmatmul.mubr.f32.gmra.mrb[30].mxu1 %v19681_v55 }
 0x5a2   : > { %15853 = vmatpush3.bf16.msra.mxu1 %v22416_v36  ;;  %13670 = vmatprep.mubr.f32.mxu1 %v22417_v17  ;;  %v22424_v17 = vld [vmem:[#allocation34_spill] sm:$0xff] }
 0x5a3   : > { %15855 = vmatprep.subr.bf16.mxu1 %v22418_v24 }
 0x5a5   : > { %13671 = vmatmul.mubr.f32.vlgmr.msra.gmra.mrb[16].mxu1 %v22419_v58 }
 0x5a6   : > { %15857 = vmatpush3.bf16.msra.mxu1 %v22418_v24  ;;  %13673 = vmatprep.mubr.f32.mxu1 %v22420_v27  ;;  %v22427_v27 = vld [vmem:[#allocation13_spill] sm:$0xff] }
 0x5a7   : > { %15859 = vmatprep.subr.bf16.mxu1 %v22421_v40 }
 0x5a9   : > { %13674 = vmatmul.mubr.f32.gmra.mrb[18].mxu1 %v22422_v12  ;;  %v22430_v12 = vld [vmem:[#allocation22_spill] sm:$0xff] }
 0x5aa   : > { %15861 = vmatpush3.bf16.msra.mxu1 %v22421_v40  ;;  %13676 = vmatprep.mubr.f32.mxu1 %v22423_v51 }
 0x5ab   : > { %15863 = vmatprep.subr.bf16.mxu1 %v22424_v17 }
 0x5ad   : > { %13677 = vmatmul.mubr.f32.gmra.mrb[20].mxu1 %v22425_v19 }
 0x5ae   : > { %15865 = vmatpush3.bf16.msra.mxu1 %v22424_v17  ;;  %13679 = vmatprep.mubr.f32.mxu1 %v22426_v0 }
 0x5af   : > { %15867 = vmatprep.subr.bf16.mxu1 %v22427_v27 }
 0x5b1   : > { %13680 = vmatmul.mubr.f32.gmra.mrb[22].mxu1 %v22428_v22 }
 0x5b2   : > { %15869 = vmatpush3.bf16.msra.mxu1 %v22427_v27  ;;  %13682 = vmatprep.mubr.f32.mxu1 %v22429_v10 }
 0x5b3   : > { %15871 = vmatprep.subr.bf16.mxu1 %v22430_v12 }
 0x5b5   : > { %13683 = vmatmul.mubr.f32.gmra.mrb[24].mxu1 %v22431_v39 }
 0x5b6   : > { %15873 = vmatpush3.bf16.msra.mxu1 %v22430_v12  ;;  %13685 = vmatprep.mubr.f32.mxu1 %v4374_v50 }
 0x5b7   : > { %15875 = vmatprep.subr.bf16.mxu1 %v22432_v49 }
 0x5b9   : > { %13686 = vmatmul.mubr.f32.gmra.mrb[26].mxu1 %v22433_v8 }
 0x5ba   : > { %15877 = vmatpush3.bf16.msra.mxu1 %v22432_v49  ;;  %13688 = vmatprep.mubr.f32.mxu1 %v4394_v5 }
 0x5bb   : > { %15879 = vmatprep.subr.bf16.mxu1 %v22434_v7 }
 0x5bd   : > { %13689 = vmatmul.mubr.f32.gmra.mrb[28].mxu1 %v4404_v41 }
 0x5be   : > { %15881 = vmatpush3.bf16.msra.mxu1 %v22434_v7  ;;  %13691 = vmatprep.mubr.f32.mxu1 %v22435_v45 }
 0x5bf   : > { %15883 = vmatprep.subr.bf16.mxu1 %v22436_v6 }
 0x5c1   : > { %13692 = vmatmul.mubr.f32.gmra.mrb[30].mxu1 %v22437_v35 }
 0x5c2   : > { %15885 = vmatpush3.bf16.msra.mxu1 %v22436_v6  ;;  %13726 = vmatprep.mubr.f32.mxu1 %v19455_v9 }
 0x5c3   : > { %15887 = vmatprep.subr.bf16.mxu1 %v19485_v34 }
 0x5c5   : > { %13727 = vmatmul.mubr.f32.vlgmr.msra.gmra.mrb[16].mxu1 %v19464_v48 }
 0x5c6   : > { %15889 = vmatpush3.bf16.msra.mxu1 %v19485_v34  ;;  %13729 = vmatprep.mubr.f32.mxu1 %v19469_v15 }
 0x5c7   : > { %15891 = vmatprep.subr.bf16.mxu1 %v19496_v32 }
 0x5c9   : > { %13730 = vmatmul.mubr.f32.gmra.mrb[18].mxu1 %v19472_v46 }
 0x5ca   : > { %15893 = vmatpush3.bf16.msra.mxu1 %v19496_v32  ;;  %13732 = vmatprep.mubr.f32.mxu1 %v19489_v28  ;;  %v5508_v32 = vld [vmem:[#allocation7 + $0x168] sm:$0xff] }
 0x5cb   : > { %15895 = vmatprep.subr.bf16.mxu1 %v19514_v23 }
 0x5cd   : > { %13733 = vmatmul.mubr.f32.gmra.mrb[20].mxu1 %v19500_v62 }
 0x5ce   : > { %15897 = vmatpush3.bf16.msra.mxu1 %v19514_v23  ;;  %13735 = vmatprep.mubr.f32.mxu1 %v19555_v30  ;;  %v5551_v23 = vand.u32 4294901760, %v5508_v32 }
 0x5cf   : > { %15899 = vmatprep.subr.bf16.mxu1 %v19532_v37 }
 0x5d0   : > { %v19981_v24 = vsub.f32 %v5508_v32, %v5551_v23 }
 0x5d1   : > { %13736 = vmatmul.mubr.f32.gmra.mrb[22].mxu1 %v19570_v14 }
 0x5d2   : > { %15901 = vmatpush3.bf16.msra.mxu1 %v19532_v37  ;;  %13738 = vmatprep.mubr.f32.mxu1 %v19585_v18  ;;  %22447 = vst [vmem:[#allocation18_spill] sm:$0xff] %v19981_v24  ;;  %v22072_v17 = vand.u32 4294901760, %v19981_v24 }
 0x5d3   : > { %15903 = vmatprep.subr.bf16.mxu1 %v19544_v11 }
 0x5d4   : > { %v5847_v27 = vsub.f32 %v19981_v24, %v22072_v17 }
 0x5d5   : > { %13739 = vmatmul.mubr.f32.gmra.mrb[24].mxu1 %v19595_v61 }
 0x5d6   : > { %15905 = vmatpush3.bf16.msra.mxu1 %v19544_v11  ;;  %13741 = vmatprep.mubr.f32.mxu1 %v19606_v33  ;;  %v22439_v11 = vand.u32 4294901760, %v19735_v25  ;;  %v5848_v39 = vand.u32 4294901760, %v5847_v27 }
 0x5d7   : > { %15907 = vmatprep.subr.bf16.mxu1 %v19557_v44 }
 0x5d9   : > { %13742 = vmatmul.mubr.f32.gmra.mrb[26].mxu1 %v19626_v1 }
 0x5da   : > { %15909 = vmatpush3.bf16.msra.mxu1 %v19557_v44  ;;  %13744 = vmatprep.mubr.f32.mxu1 %v19635_v47  ;;  %v22441_v44 = vand.u32 4294901760, %v19737_v57 }
 0x5db   : > { %15911 = vmatprep.subr.bf16.mxu1 %v22415_v54 }
 0x5dd   : > { %13745 = vmatmul.mubr.f32.gmra.mrb[28].mxu1 %v19645_v16 }
 0x5de   : > { %15913 = vmatpush3.bf16.msra.mxu1 %v22415_v54  ;;  %13747 = vmatprep.mubr.f32.mxu1 %v19655_v43 }
 0x5df   : > { %15915 = vmatprep.subr.bf16.mxu1 %v22416_v36 }
 0x5e1   : > { %13748 = vmatmul.mubr.f32.gmra.mrb[30].mxu1 %v19665_v13 }
 0x5e2   : > { %15917 = vmatpush3.bf16.msra.mxu1 %v22416_v36  ;;  %13782 = vmatprep.mubr.f32.mxu1 %v19455_v9  ;;  %v5505_v9 = vld [vmem:[#allocation7 + $0x150] sm:$0xff] }
 0x5e5   : > { %13783 = vmatmul.mubr.f32.vlgmr.msra.gmra.mrb[16].mxu1 %v19464_v48  ;;  %v5506_v48 = vld [vmem:[#allocation7 + $0x158] sm:$0xff] }
 0x5e6   : > { %13785 = vmatprep.mubr.f32.mxu1 %v19469_v15  ;;  %v5542_v15 = vand.u32 4294901760, %v5505_v9 }
 0x5e8   : > { %v19967_v5 = vsub.f32 %v5505_v9, %v5542_v15 }
 0x5e9   : > { %13786 = vmatmul.mubr.f32.gmra.mrb[18].mxu1 %v19472_v46  ;;  %v5545_v46 = vand.u32 4294901760, %v5506_v48 }
 0x5ea   : > { %13788 = vmatprep.mubr.f32.mxu1 %v19489_v28  ;;  %v5507_v28 = vld [vmem:[#allocation7 + $0x160] sm:$0xff]  ;;  %22444 = vst [vmem:[#allocation28_spill] sm:$0xff] %v19967_v5  ;;  %v22075_v55 = vand.u32 4294901760, %v19967_v5 }
 0x5eb   : > { %v19934_v34 = vpack.c.bf16 %v5545_v46, %v5542_v15  ;;  %v19969_v41 = vsub.f32 %v5506_v48, %v5545_v46 }
 0x5ed   : > { %13789 = vmatmul.mubr.f32.gmra.mrb[20].mxu1 %v19500_v62  ;;  %15939 = vmatprep.subr.bf16.mxu0 %v19934_v34  ;;  %v5548_v62 = vand.u32 4294901760, %v5507_v28  ;;  %22445 = vst [vmem:[#allocation16_spill] sm:$0xff] %v19969_v41  ;;  %v22074_v40 = vand.u32 4294901760, %v19969_v41  ;;  %v20015_v46 = vpack.c.bf16 %v19969_v41, %v19967_v5 }
 0x5ee   : > { %13791 = vmatprep.mubr.f32.mxu1 %v19555_v30  ;;  %15941 = vmatpush3.bf16.msra.mxu0 %v19934_v34  ;;  %v19943_v30 = vsub.f32 %v19735_v25, %v22439_v11  ;;  %v5826_v25 = vsub.f32 %v19967_v5, %v22075_v55  ;;  %v22451_v11 = vand.u32 4294901760, %v19745_v59 }
 0x5ef   : > { %v19938_v37 = vpack.c.bf16 %v5551_v23, %v5548_v62  ;;  %v19979_v58 = vsub.f32 %v5507_v28, %v5548_v62  ;;  %v22450_v62 = vand.u32 4294901760, %v19739_v20 }
 0x5f0   : > { %22440 = vst [vmem:[#allocation14_spill] sm:$0xff] %v19943_v30  ;;  %v5827_v54 = vand.u32 4294901760, %v5826_v25 }
 0x5f1   : > { %13792 = vmatmul.mubr.f32.gmra.mrb[22].mxu1 %v19570_v14  ;;  %22438 = vst [vmem:[#allocation20_spill] sm:$0xff] %v19938_v37  ;;  %v19948_v14 = vsub.f32 %v19737_v57, %v22441_v44  ;;  %15943 = vmatprep.subr.bf16.mxu0 %v19938_v37  ;;  %v5833_v57 = vsub.f32 %v19969_v41, %v22074_v40  ;;  %22446 = vst [vmem:[#allocation27_spill] sm:$0xff] %v19979_v58  ;;  %v22073_v51 = vand.u32 4294901760, %v19979_v58 }
 0x5f2   : > { %13794 = vmatprep.mubr.f32.mxu1 %v19585_v18  ;;  %v5510_v18 = vld [vmem:[#allocation7 + $0x178] sm:$0xff]  ;;  %15945 = vmatpush3.bf16.msra.mxu0 %v19938_v37  ;;  %v20019_v28 = vpack.c.bf16 %v19981_v24, %v19979_v58  ;;  %v20028_v23 = vsub.f32 %v19739_v20, %v22450_v62  ;;  %v20033_v44 = vsub.f32 %v19745_v59, %v22451_v11 }
 0x5f3   : > { %22442 = vst [vmem:[#allocation23_spill] sm:$0xff] %v19948_v14  ;;  %v5834_v36 = vand.u32 4294901760, %v5833_v57  ;;  %v5840_v0 = vsub.f32 %v19979_v58, %v22073_v51  ;;  %v20011_v15 = vpack.c.bf16 %v19948_v14, %v19943_v30 }
 0x5f5   : > { %13795 = vmatmul.mubr.f32.gmra.mrb[24].mxu1 %v19595_v61  ;;  %v5554_v61 = vand.u32 4294901760, %v5509_v26  ;;  %v19985_v19 = vpack.c.bf16 %v5834_v36, %v5827_v54  ;;  %v5841_v12 = vand.u32 4294901760, %v5840_v0  ;;  %v22455_v36 = vand.u32 4294901760, %v19773_v56 }
 0x5f6   : > { %13797 = vmatprep.mubr.f32.mxu1 %v19606_v33  ;;  %v5557_v33 = vand.u32 4294901760, %v5510_v18 }
 0x5f7   : > { %v19993_v22 = vsub.f32 %v5509_v26, %v5554_v61  ;;  %v19999_v7 = vpack.c.bf16 %v5848_v39, %v5841_v12  ;;  %v22082_v26 = vand.u32 4294901760, %v20028_v23  ;;  %v20066_v0 = vsub.f32 %v19773_v56, %v22455_v36 }
 0x5f8   : > { %v19995_v10 = vsub.f32 %v5510_v18, %v5557_v33  ;;  %v22080_v18 = vand.u32 4294901760, %v20033_v44 }
 0x5f9   : > { %13798 = vmatmul.mubr.f32.gmra.mrb[26].mxu1 %v19626_v1  ;;  %v22086_v1 = vand.u32 4294901760, %v19943_v30  ;;  %22448 = vst [vmem:[#allocation29_spill] sm:$0xff] %v19993_v22  ;;  %v22071_v49 = vand.u32 4294901760, %v19993_v22 }
 0x5fa   : > { %13800 = vmatprep.mubr.f32.mxu1 %v19635_v47  ;;  %v19954_v47 = vpack.c.bf16 %v5557_v33, %v5554_v61  ;;  %22449 = vst [vmem:[#allocation30_spill] sm:$0xff] %v19995_v10  ;;  %v22070_v8 = vand.u32 4294901760, %v19995_v10  ;;  %v20023_v32 = vpack.c.bf16 %v19995_v10, %v19993_v22  ;;  %v22452_v61 = vand.u32 4294901760, %v19748_v38 }
 0x5fb   : > { %v5854_v45 = vsub.f32 %v19993_v22, %v22071_v49  ;;  %v5777_v59 = vsub.f32 %v20033_v44, %v22080_v18  ;;  %v22457_v49 = vand.u32 4294901760, %v19792_v2 }
 0x5fc   : > { %22443 = vst [vmem:[#allocation26_spill] sm:$0xff] %v19954_v47  ;;  %15947 = vmatprep.subr.bf16.mxu0 %v19954_v47  ;;  %v5861_v6 = vsub.f32 %v19995_v10, %v22070_v8  ;;  %v20040_v33 = vsub.f32 %v19748_v38, %v22452_v61 }
 0x5fd   : > { %13801 = vmatmul.mubr.f32.gmra.mrb[28].mxu1 %v19645_v16  ;;  %v5756_v16 = vsub.f32 %v19943_v30, %v22086_v1  ;;  %15949 = vmatpush3.bf16.msra.mxu0 %v19954_v47  ;;  %v5855_v35 = vand.u32 4294901760, %v5854_v45  ;;  %v5778_v45 = vand.u32 4294901760, %v5777_v59  ;;  %v20107_v17 = vsub.f32 %v19792_v2, %v22457_v49 }
 0x5fe   : > { %13803 = vmatprep.mubr.f32.mxu1 %v19655_v43  ;;  %v5862_v9 = vand.u32 4294901760, %v5861_v6 }
 0x5ff   : > { %v5757_v21 = vand.u32 4294901760, %v5756_v16  ;;  %v22453_v16 = vand.u32 4294901760, %v19750_v29 }
 0x600   : > { %v20007_v48 = vpack.c.bf16 %v5862_v9, %v5855_v35 }
 0x601   : > { %13804 = vmatmul.mubr.f32.gmra.mrb[30].mxu1 %v19665_v13  ;;  %v22084_v13 = vand.u32 4294901760, %v19948_v14  ;;  %v20045_v20 = vsub.f32 %v19750_v29, %v22453_v16  ;;  %v22454_v29 = vand.u32 4294901760, %v19771_v42  ;;  %v22081_v16 = vand.u32 4294901760, %v20066_v0 }
 0x603   : > { %v5763_v50 = vsub.f32 %v19948_v14, %v22084_v13  ;;  %v22076_v25 = vand.u32 4294901760, %v20045_v20  ;;  %v20061_v54 = vsub.f32 %v19771_v42, %v22454_v29  ;;  %v5805_v49 = vsub.f32 %v20066_v0, %v22081_v16 }
 0x605   : > { %v5764_v43 = vand.u32 4294901760, %v5763_v50  ;;  %v5770_v50 = vsub.f32 %v20028_v23, %v22082_v26  ;;  %v5791_v56 = vsub.f32 %v20045_v20, %v22076_v25  ;;  %v22079_v61 = vand.u32 4294901760, %v20061_v54 }
 0x606   : > { %v5806_v1 = vand.u32 4294901760, %v5805_v49  ;;  %v22458_v49 = vand.u32 4294901760, %v20107_v17 }
 0x607   : > { %v19964_v60 = vpack.c.bf16 %v5764_v43, %v5757_v21  ;;  %v22077_v43 = vand.u32 4294901760, %v20040_v33  ;;  %v5771_v39 = vand.u32 4294901760, %v5770_v50  ;;  %v5792_v55 = vand.u32 4294901760, %v5791_v56 }
 0x608   : > { %v5798_v2 = vsub.f32 %v20061_v54, %v22079_v61 }
 0x609   : > { %15951 = vmatprep.subr.bf16.mxu0 %v19964_v60  ;;  %v5784_v42 = vsub.f32 %v20040_v33, %v22077_v43  ;;  %v15954_v8 = vpack.c.bf16 %v5778_v45, %v5771_v39 }
 0x6b8   : > { %v13784_v21 = vpop.f32.mrb[16].mxu1 }
 0x6b9   : > { %10875 = vst [vmem:[%s17819_s18 + $0x108] sm:$0xff] %v13784_v21  ;;  %v20056_v38 = vand.u32 4294901760, %v13784_v21  ;;  %v5383_v57 = vpop.f32.mrb[17].mxu1 }
 0x6ba   : > { %10874 = vst [vmem:[%s17819_s18 + $0x100] sm:$0xff] %v5383_v57  ;;  %v20069_v27 = vand.u32 4294901760, %v5383_v57 }
 0x6bb   : > { %v20072_v12 = vsub.f32 %v13784_v21, %v20056_v38  ;;  %v22456_v21 = vand.u32 4294901760, %v19790_v52 }
 0x6bc   : > { %v20075_v6 = vsub.f32 %v5383_v57, %v20069_v27  ;;  %v13787_v35 = vpop.f32.mrb[18].mxu1 }
 0x6bd   : > { %v22078_v9 = vand.u32 4294901760, %v20072_v12  ;;  %10877 = vst [vmem:[%s17819_s18 + $0x118] sm:$0xff] %v13787_v35  ;;  %v20085_v62 = vand.u32 4294901760, %v13787_v35  ;;  %v5395_v11 = vpop.f32.mrb[19].mxu1  ;;  %v20096_v57 = vsub.f32 %v19790_v52, %v22456_v21  ;;  %v5785_v21 = vand.u32 4294901760, %v5784_v42 }
 0x6be   : > { %10876 = vst [vmem:[%s17819_s18 + $0x110] sm:$0xff] %v5395_v11  ;;  %v20090_v50 = vand.u32 4294901760, %v5395_v11  ;;  %v22083_v59 = vand.u32 4294901760, %v20075_v6 }
 0x6bf   : > { %v5605_v29 = vsub.f32 %v20072_v12, %v22078_v9  ;;  %v20102_v36 = vsub.f32 %v13787_v35, %v20085_v62 }
 0x6c0   : > { %v20110_v51 = vsub.f32 %v5395_v11, %v20090_v50  ;;  %v13790_v40 = vpop.f32.mrb[20].mxu1  ;;  %v5595_v52 = vsub.f32 %v20075_v6, %v22083_v59  ;;  %v22088_v11 = vand.u32 4294901760, %v20096_v57 }
 0x6c1   : > { %10879 = vst [vmem:[%s17819_s18 + $0x128] sm:$0xff] %v13790_v40  ;;  %v20116_v25 = vand.u32 4294901760, %v13790_v40  ;;  %v5407_v35 = vpop.f32.mrb[21].mxu1  ;;  %v22085_v39 = vand.u32 4294901760, %v20102_v36  ;;  %v5606_v43 = vand.u32 4294901760, %v5605_v29  ;;  %v15958_v29 = vpack.c.bf16 %v5792_v55, %v5785_v21 }
 0x6c2   : > { %10878 = vst [vmem:[%s17819_s18 + $0x120] sm:$0xff] %v5407_v35  ;;  %v20126_v45 = vand.u32 4294901760, %v5407_v35  ;;  %v5596_v42 = vand.u32 4294901760, %v5595_v52  ;;  %v22087_v56 = vand.u32 4294901760, %v20110_v51  ;;  %v5812_v55 = vsub.f32 %v20096_v57, %v22088_v11 }
 0x6c3   : > { %v20131_v9 = vsub.f32 %v13790_v40, %v20116_v25  ;;  %v5625_v61 = vsub.f32 %v20102_v36, %v22085_v39  ;;  %v5799_v39 = vand.u32 4294901760, %v5798_v2 }
 0x6c4   : > { %v20138_v16 = vsub.f32 %v5407_v35, %v20126_v45  ;;  %v13793_v26 = vpop.f32.mrb[22].mxu1  ;;  %13838 = vmatprep.mubr.f32.mxu0 %v5596_v42  ;;  %v5615_v52 = vsub.f32 %v20110_v51, %v22087_v56  ;;  %v5813_v22 = vand.u32 4294901760, %v5812_v55 }
 0x6c5   : > { %10881 = vst [vmem:[%s17819_s18 + $0x138] sm:$0xff] %v13793_v26  ;;  %v20144_v59 = vand.u32 4294901760, %v13793_v26  ;;  %v5419_v40 = vpop.f32.mrb[23].mxu1  ;;  %13839 = vmatmul.mubr.f32.vlgmr.msra.gmra.mrb[32].mxu0 %v5606_v43  ;;  %v22089_v13 = vand.u32 4294901760, %v20131_v9  ;;  %v5626_v21 = vand.u32 4294901760, %v5625_v61  ;;  %v15962_v10 = vpack.c.bf16 %v5806_v1, %v5799_v39 }
 0x6c6   : > { %10880 = vst [vmem:[%s17819_s18 + $0x130] sm:$0xff] %v5419_v40  ;;  %v20148_v35 = vand.u32 4294901760, %v5419_v40  ;;  %15953 = vmatpush3.bf16.msra.mxu0 %v19964_v60  ;;  %v5616_v42 = vand.u32 4294901760, %v5615_v52  ;;  %v22092_v18 = vand.u32 4294901760, %v20138_v16  ;;  %v5819_v60 = vsub.f32 %v20107_v17, %v22458_v49 }
 0x6c7   : > { %v20156_v43 = vsub.f32 %v13793_v26, %v20144_v59  ;;  %15955 = vmatprep.subr.bf16.mxu0 %v15954_v8  ;;  %v5645_v2 = vsub.f32 %v20131_v9, %v22089_v13 }
 0x6c8   : > { %v20165_v52 = vsub.f32 %v5419_v40, %v20148_v35  ;;  %v13796_v56 = vpop.f32.mrb[24].mxu1  ;;  %13841 = vmatprep.mubr.f32.mxu0 %v5616_v42  ;;  %v5635_v26 = vsub.f32 %v20138_v16, %v22092_v18  ;;  %v5820_v1 = vand.u32 4294901760, %v5819_v60 }
 0x6c9   : > { %10883 = vst [vmem:[%s17819_s18 + $0x148] sm:$0xff] %v13796_v56  ;;  %v20171_v61 = vand.u32 4294901760, %v13796_v56  ;;  %v5431_v11 = vpop.f32.mrb[25].mxu1  ;;  %13842 = vmatmul.mubr.f32.gmra.mrb[34].mxu0 %v5626_v21  ;;  %v22095_v13 = vand.u32 4294901760, %v20156_v43  ;;  %v5646_v24 = vand.u32 4294901760, %v5645_v2 }
 0x6ca   : > { %10882 = vst [vmem:[%s17819_s18 + $0x140] sm:$0xff] %v5431_v11  ;;  %v20175_v49 = vand.u32 4294901760, %v5431_v11  ;;  %15957 = vmatpush3.bf16.msra.mxu0 %v15954_v8  ;;  %v5636_v40 = vand.u32 4294901760, %v5635_v26  ;;  %v22096_v42 = vand.u32 4294901760, %v20165_v52 }
 0x6cb   : > { %v20179_v18 = vsub.f32 %v13796_v56, %v20171_v61  ;;  %15959 = vmatprep.subr.bf16.mxu0 %v15958_v29  ;;  %v5665_v21 = vsub.f32 %v20156_v43, %v22095_v13 }
 0x6cc   : > { %v20185_v39 = vsub.f32 %v5431_v11, %v20175_v49  ;;  %v13799_v58 = vpop.f32.mrb[26].mxu1  ;;  %13844 = vmatprep.mubr.f32.mxu0 %v5636_v40  ;;  %v5655_v8 = vsub.f32 %v20165_v52, %v22096_v42  ;;  %v15966_v42 = vpack.c.bf16 %v5820_v1, %v5813_v22 }
 0x6cd   : > { %10885 = vst [vmem:[%s17819_s18 + $0x158] sm:$0xff] %v13799_v58  ;;  %v20191_v55 = vand.u32 4294901760, %v13799_v58  ;;  %v5443_v56 = vpop.f32.mrb[27].mxu1  ;;  %13845 = vmatmul.mubr.f32.gmra.mrb[36].mxu0 %v5646_v24  ;;  %v22099_v2 = vand.u32 4294901760, %v20179_v18  ;;  %v5666_v13 = vand.u32 4294901760, %v5665_v21 }
 0x6ce   : > { %10884 = vst [vmem:[%s17819_s18 + $0x150] sm:$0xff] %v5443_v56  ;;  %v20195_v26 = vand.u32 4294901760, %v5443_v56  ;;  %15961 = vmatpush3.bf16.msra.mxu0 %v15958_v29  ;;  %v5656_v11 = vand.u32 4294901760, %v5655_v8  ;;  %v22100_v60 = vand.u32 4294901760, %v20185_v39 }
 0x6cf   : > { %v20199_v40 = vsub.f32 %v13799_v58, %v20191_v55  ;;  %15963 = vmatprep.subr.bf16.mxu0 %v15962_v10  ;;  %v5685_v24 = vsub.f32 %v20179_v18, %v22099_v2 }
 0x6d0   : > { %v20205_v41 = vsub.f32 %v5443_v56, %v20195_v26  ;;  %v13802_v5 = vpop.f32.mrb[28].mxu1  ;;  %13847 = vmatprep.mubr.f32.mxu0 %v5656_v11  ;;  %v5675_v29 = vsub.f32 %v20185_v39, %v22100_v60 }
 0x6d1   : > { %10887 = vst [vmem:[%s17819_s18 + $0x168] sm:$0xff] %v13802_v5  ;;  %v20211_v8 = vand.u32 4294901760, %v13802_v5  ;;  %v5455_v58 = vpop.f32.mrb[29].mxu1  ;;  %13848 = vmatmul.mubr.f32.gmra.mrb[38].mxu0 %v5666_v13  ;;  %v22103_v21 = vand.u32 4294901760, %v20199_v40  ;;  %v5686_v11 = vand.u32 4294901760, %v5685_v24 }
 0x6d2   : > { %10886 = vst [vmem:[%s17819_s18 + $0x160] sm:$0xff] %v5455_v58  ;;  %v20215_v2 = vand.u32 4294901760, %v5455_v58  ;;  %15965 = vmatpush3.bf16.msra.mxu0 %v15962_v10  ;;  %v5676_v22 = vand.u32 4294901760, %v5675_v29  ;;  %v22106_v1 = vand.u32 4294901760, %v20205_v41 }
 0x6d3   : > { %v20219_v56 = vsub.f32 %v13802_v5, %v20211_v8  ;;  %15967 = vmatprep.subr.bf16.mxu0 %v15966_v42  ;;  %v5705_v60 = vsub.f32 %v20199_v40, %v22103_v21 }
 0x6d4   : > { %v20225_v13 = vsub.f32 %v5455_v58, %v20215_v2  ;;  %v13805_v14 = vpop.f32.mrb[30].mxu1  ;;  %13850 = vmatprep.mubr.f32.mxu0 %v5676_v22  ;;  %v5695_v10 = vsub.f32 %v20205_v41, %v22106_v1 }
 0x6d5   : > { %10889 = vst [vmem:[%s17819_s18 + $0x178] sm:$0xff] %v13805_v14  ;;  %v20231_v29 = vand.u32 4294901760, %v13805_v14  ;;  %v5467_v5 = vpop.f32.mrb[31].mxu1  ;;  %13851 = vmatmul.mubr.f32.gmra.mrb[40].mxu0 %v5686_v11  ;;  %v5724_v24 = vand.u32 4294901760, %v20219_v56  ;;  %v5706_v47 = vand.u32 4294901760, %v5705_v60 }
 0x6d6   : > { %10888 = vst [vmem:[%s17819_s18 + $0x170] sm:$0xff] %v5467_v5  ;;  %v20235_v30 = vand.u32 4294901760, %v5467_v5  ;;  %15969 = vmatpush3.bf16.msra.mxu0 %v15966_v42  ;;  %v5696_v21 = vand.u32 4294901760, %v5695_v10  ;;  %v5714_v58 = vand.u32 4294901760, %v20225_v13 }
 0x6d7   : > { %v20239_v22 = vsub.f32 %v13805_v14, %v20231_v29  ;;  %15971 = vmatprep.subr.bf16.mxu0 %v19985_v19  ;;  %v5725_v1 = vsub.f32 %v20219_v56, %v5724_v24 }
 0x6d8   : > { %v20246_v11 = vsub.f32 %v5467_v5, %v20235_v30  ;;  %13853 = vmatprep.mubr.f32.mxu0 %v5696_v21  ;;  %v5715_v42 = vsub.f32 %v20225_v13, %v5714_v58 }
 0x6d9   : > { %13854 = vmatmul.mubr.f32.gmra.mrb[42].mxu0 %v5706_v47  ;;  %v5744_v10 = vand.u32 4294901760, %v20239_v22  ;;  %v5726_v37 = vand.u32 4294901760, %v5725_v1  ;;  %v15986_v1 = vpack.c.bf16 %v20033_v44, %v20028_v23 }
 0x6da   : > { %15973 = vmatpush3.bf16.msra.mxu0 %v19985_v19  ;;  %v5716_v14 = vand.u32 4294901760, %v5715_v42  ;;  %v5734_v60 = vand.u32 4294901760, %v20246_v11  ;;  %v22463_v42 = vld [vmem:[#allocation23_spill] sm:$0xff] }
 0x6db   : > { %15975 = vmatprep.subr.bf16.mxu0 %v19999_v7  ;;  %v5745_v5 = vsub.f32 %v20239_v22, %v5744_v10 }
 0x6dc   : > { %13856 = vmatprep.mubr.f32.mxu0 %v5716_v14  ;;  %v5735_v21 = vsub.f32 %v20246_v11, %v5734_v60  ;;  %v22464_v14 = vand.u32 4294901760, %v22463_v42  ;;  %v22476_v42 = vand.u32 4294901760, %v20131_v9 }
 0x6dd   : > { %13857 = vmatmul.mubr.f32.gmra.mrb[44].mxu0 %v5726_v37  ;;  %v5746_v19 = vand.u32 4294901760, %v5745_v5  ;;  %v15990_v37 = vpack.c.bf16 %v20045_v20, %v20040_v33 }
 0x6de   : > { %15977 = vmatpush3.bf16.msra.mxu0 %v19999_v7  ;;  %v5736_v47 = vand.u32 4294901760, %v5735_v21  ;;  %v15994_v7 = vpack.c.bf16 %v20066_v0, %v20061_v54  ;;  %v22465_v21 = vand.u32 4294901760, %v20075_v6 }
 0x6df   : > { %15979 = vmatprep.subr.bf16.mxu0 %v20007_v48 }
 0x6e0   : > { %13859 = vmatprep.mubr.f32.mxu0 %v5736_v47  ;;  %v22466_v47 = vand.u32 4294901760, %v20028_v23  ;;  %v22473_v23 = vand.u32 4294901760, %v20138_v16 }
 0x6e1   : > { %13860 = vmatmul.mubr.f32.gmra.mrb[46].mxu0 %v5746_v19  ;;  %v22467_v19 = vand.u32 4294901760, %v20033_v44  ;;  %v22474_v44 = vand.u32 4294901760, %v20061_v54  ;;  %v22481_v54 = vand.u32 4294901760, %v20185_v39 }
 0x6e2   : > { %15981 = vmatpush3.bf16.msra.mxu0 %v20007_v48  ;;  %13894 = vmatprep.mubr.f32.mxu0 %v20069_v27  ;;  %v15998_v48 = vpack.c.bf16 %v20107_v17, %v20096_v57 }
 0x6e3   : > { %15983 = vmatprep.subr.bf16.mxu0 %v20011_v15 }
 0x6e5   : > { %13895 = vmatmul.mubr.f32.vlgmr.msra.gmra.mrb[32].mxu0 %v20056_v38 }
 0x6e6   : > { %13897 = vmatprep.mubr.f32.mxu0 %v20090_v50  ;;  %15985 = vmatpush3.bf16.msra.mxu0 %v20011_v15  ;;  %v22459_v15 = vld [vmem:[#allocation20_spill] sm:$0xff] }
 0x6e7   : > { %15987 = vmatprep.subr.bf16.mxu0 %v15986_v1 }
 0x6e9   : > { %13898 = vmatmul.mubr.f32.gmra.mrb[34].mxu0 %v20085_v62 }
 0x6ea   : > { %13900 = vmatprep.mubr.f32.mxu0 %v20126_v45  ;;  %15989 = vmatpush3.bf16.msra.mxu0 %v15986_v1  ;;  %v16050_v1 = vpack.c.bf16 %v22467_v19, %v22466_v47  ;;  %v22486_v47 = vand.u32 4294901760, %v20179_v18  ;;  %v22490_v19 = vld [vmem:[#allocation18_spill] sm:$0xff] }
 0x6eb   : > { %15991 = vmatprep.subr.bf16.mxu0 %v15990_v37 }
 0x6ed   : > { %13901 = vmatmul.mubr.f32.gmra.mrb[36].mxu0 %v20116_v25 }
 0x6ee   : > { %13903 = vmatprep.mubr.f32.mxu0 %v20148_v35  ;;  %15993 = vmatpush3.bf16.msra.mxu0 %v15990_v37  ;;  %v22468_v37 = vand.u32 4294901760, %v20072_v12 }
 0x6ef   : > { %15995 = vmatprep.subr.bf16.mxu0 %v15994_v7 }
 0x6f1   : > { %13904 = vmatmul.mubr.f32.gmra.mrb[38].mxu0 %v20144_v59 }
 0x6f2   : > { %13906 = vmatprep.mubr.f32.mxu0 %v20175_v49  ;;  %15997 = vmatpush3.bf16.msra.mxu0 %v15994_v7  ;;  %v22469_v7 = vand.u32 4294901760, %v20110_v51 }
 0x6f3   : > { %15999 = vmatprep.subr.bf16.mxu0 %v15998_v48 }
 0x6f5   : > { %13907 = vmatmul.mubr.f32.gmra.mrb[40].mxu0 %v20171_v61 }
 0x6f6   : > { %13909 = vmatprep.mubr.f32.mxu0 %v20195_v26  ;;  %16001 = vmatpush3.bf16.msra.mxu0 %v15998_v48  ;;  %v22470_v48 = vand.u32 4294901760, %v20040_v33  ;;  %v22477_v33 = vand.u32 4294901760, %v20165_v52 }
 0x6f7   : > { %16003 = vmatprep.subr.bf16.mxu0 %v20015_v46 }
 0x6f9   : > { %13910 = vmatmul.mubr.f32.gmra.mrb[42].mxu0 %v20191_v55 }
 0x6fa   : > { %13912 = vmatprep.mubr.f32.mxu0 %v20215_v2  ;;  %16005 = vmatpush3.bf16.msra.mxu0 %v20015_v46  ;;  %v22460_v46 = vld [vmem:[#allocation26_spill] sm:$0xff] }
 0x6fb   : > { %16007 = vmatprep.subr.bf16.mxu0 %v20019_v28 }
 0x6fd   : > { %13913 = vmatmul.mubr.f32.gmra.mrb[44].mxu0 %v20211_v8 }
 0x6fe   : > { %13915 = vmatprep.mubr.f32.mxu0 %v20235_v30  ;;  %16009 = vmatpush3.bf16.msra.mxu0 %v20019_v28  ;;  %v22461_v28 = vld [vmem:[#allocation14_spill] sm:$0xff] }
 0x6ff   : > { %16011 = vmatprep.subr.bf16.mxu0 %v20023_v32 }
 0x701   : > { %13916 = vmatmul.mubr.f32.gmra.mrb[46].mxu0 %v20231_v29 }
 0x702   : > { %16013 = vmatpush3.bf16.msra.mxu0 %v20023_v32  ;;  %13950 = vmatprep.mubr.f32.mxu0 %v20075_v6  ;;  %v22462_v32 = vand.u32 4294901760, %v22461_v28  ;;  %v22471_v28 = vand.u32 4294901760, %v20045_v20  ;;  %v22478_v20 = vand.u32 4294901760, %v20096_v57  ;;  %v22487_v57 = vand.u32 4294901760, %v20205_v41 }
 0x703   : > { %16015 = vmatprep.subr.bf16.mxu0 %v19758_v4 }
 0x704   : > { %v16046_v5 = vpack.c.bf16 %v22464_v14, %v22462_v32  ;;  %v16054_v6 = vpack.c.bf16 %v22471_v28, %v22470_v48  ;;  %v22472_v32 = vand.u32 4294901760, %v20102_v36  ;;  %v22480_v14 = vand.u32 4294901760, %v20156_v43  ;;  %v22495_v48 = vld [vmem:[#allocation30_spill] sm:$0xff] }
 0x705   : > { %13951 = vmatmul.mubr.f32.vlgmr.msra.gmra.mrb[32].mxu0 %v20072_v12 }
 0x706   : > { %13953 = vmatprep.mubr.f32.mxu0 %v20110_v51  ;;  %16017 = vmatpush3.bf16.msra.mxu0 %v19758_v4  ;;  %v22475_v51 = vand.u32 4294901760, %v20066_v0  ;;  %v22482_v0 = vld [vmem:[#allocation28_spill] sm:$0xff] }
 0x707   : > { %16019 = vmatprep.subr.bf16.mxu0 %v19765_v53 }
 0x708   : > { %v16058_v12 = vpack.c.bf16 %v22475_v51, %v22474_v44 }
 0x709   : > { %13954 = vmatmul.mubr.f32.gmra.mrb[34].mxu0 %v20102_v36 }
 0x70a   : > { %13956 = vmatprep.mubr.f32.mxu0 %v20138_v16  ;;  %16021 = vmatpush3.bf16.msra.mxu0 %v19765_v53  ;;  %v22479_v16 = vand.u32 4294901760, %v20107_v17  ;;  %v22488_v17 = vld [vmem:[#allocation27_spill] sm:$0xff] }
 0x70b   : > { %16023 = vmatprep.subr.bf16.mxu0 %v19784_v3 }
 0x70c   : > { %v16062_v36 = vpack.c.bf16 %v22479_v16, %v22478_v20 }
 0x70d   : > { %13957 = vmatmul.mubr.f32.gmra.mrb[36].mxu0 %v20131_v9  ;;  %v22483_v9 = vand.u32 4294901760, %v22482_v0 }
 0x70e   : > { %13959 = vmatprep.mubr.f32.mxu0 %v20165_v52  ;;  %16025 = vmatpush3.bf16.msra.mxu0 %v19784_v3 }
 0x70f   : > { %16027 = vmatprep.subr.bf16.mxu0 %v19802_v63 }
 0x711   : > { %13960 = vmatmul.mubr.f32.gmra.mrb[38].mxu0 %v20156_v43  ;;  %v22489_v43 = vand.u32 4294901760, %v22488_v17 }
 0x712   : > { %13962 = vmatprep.mubr.f32.mxu0 %v20185_v39  ;;  %16029 = vmatpush3.bf16.msra.mxu0 %v19802_v63  ;;  %v22491_v39 = vand.u32 4294901760, %v22490_v19 }
 0x713   : > { %16031 = vmatprep.subr.bf16.mxu0 %v19816_v31 }
 0x715   : > { %13963 = vmatmul.mubr.f32.gmra.mrb[40].mxu0 %v20179_v18  ;;  %v22493_v18 = vld [vmem:[#allocation29_spill] sm:$0xff] }
 0x716   : > { %13965 = vmatprep.mubr.f32.mxu0 %v20205_v41  ;;  %16033 = vmatpush3.bf16.msra.mxu0 %v19816_v31  ;;  %v22496_v41 = vand.u32 4294901760, %v22495_v48 }
 0x717   : > { %16035 = vmatprep.subr.bf16.mxu0 %v19934_v34 }
 0x719   : > { %13966 = vmatmul.mubr.f32.gmra.mrb[42].mxu0 %v20199_v40 }
 0x71a   : > { %13968 = vmatprep.mubr.f32.mxu0 %v20225_v13  ;;  %16037 = vmatpush3.bf16.msra.mxu0 %v19934_v34 }
 0x71b   : > { %16039 = vmatprep.subr.bf16.mxu0 %v22459_v15 }
 0x71d   : > { %13969 = vmatmul.mubr.f32.gmra.mrb[44].mxu0 %v20219_v56  ;;  %v6802_v56 = vld [vmem:[#allocation5 + $0x120] sm:$0xff] }
 0x71e   : > { %13971 = vmatprep.mubr.f32.mxu0 %v20246_v11  ;;  %16041 = vmatpush3.bf16.msra.mxu0 %v22459_v15 }
 0x71f   : > { %16043 = vmatprep.subr.bf16.mxu0 %v22460_v46 }
 0x721   : > { %13972 = vmatmul.mubr.f32.gmra.mrb[46].mxu0 %v20239_v22 }
 0x722   : > { %16045 = vmatpush3.bf16.msra.mxu0 %v22460_v46  ;;  %14006 = vmatprep.mubr.f32.mxu0 %v22465_v21 }
 0x723   : > { %16047 = vmatprep.subr.bf16.mxu0 %v16046_v5 }
 0x725   : > { %14007 = vmatmul.mubr.f32.vlgmr.msra.gmra.mrb[32].mxu0 %v22468_v37  ;;  %v22492_v37 = vand.u32 4294901760, %v20199_v40 }
 0x726   : > { %14009 = vmatprep.mubr.f32.mxu0 %v22469_v7  ;;  %16049 = vmatpush3.bf16.msra.mxu0 %v16046_v5  ;;  %v22484_v5 = vld [vmem:[#allocation16_spill] sm:$0xff]  ;;  %v22494_v7 = vand.u32 4294901760, %v22493_v18 }
 0x727   : > { %16051 = vmatprep.subr.bf16.mxu0 %v16050_v1  ;;  %v22485_v52 = vand.u32 4294901760, %v22484_v5 }
 0x728   : > { %v16074_v28 = vpack.c.bf16 %v22496_v41, %v22494_v7 }
 0x729   : > { %14010 = vmatmul.mubr.f32.gmra.mrb[34].mxu0 %v22472_v32  ;;  %v16066_v21 = vpack.c.bf16 %v22485_v52, %v22483_v9 }
 0x72a   : > { %14012 = vmatprep.mubr.f32.mxu0 %v22473_v23  ;;  %16053 = vmatpush3.bf16.msra.mxu0 %v16050_v1  ;;  %v16070_v1 = vpack.c.bf16 %v22491_v39, %v22489_v43 }
 0x72b   : > { %16055 = vmatprep.subr.bf16.mxu0 %v16054_v6 }
 0x72d   : > { %14013 = vmatmul.mubr.f32.gmra.mrb[36].mxu0 %v22476_v42 }
 0x72e   : > { %14015 = vmatprep.mubr.f32.mxu0 %v22477_v33  ;;  %16057 = vmatpush3.bf16.msra.mxu0 %v16054_v6  ;;  %v6803_v6 = vld [vmem:[#allocation5 + $0x128] sm:$0xff] }
 0x72f   : > { %16059 = vmatprep.subr.bf16.mxu0 %v16058_v12  ;;  %v20485_v5 = vand.u32 4294901760, %v6803_v6 }
 0x731   : > { %14016 = vmatmul.mubr.f32.gmra.mrb[38].mxu0 %v22480_v14 }
 0x732   : > { %14018 = vmatprep.mubr.f32.mxu0 %v22481_v54  ;;  %16061 = vmatpush3.bf16.msra.mxu0 %v16058_v12 }
 0x733   : > { %16063 = vmatprep.subr.bf16.mxu0 %v16062_v36 }
 0x735   : > { %14019 = vmatmul.mubr.f32.gmra.mrb[40].mxu0 %v22486_v47 }
 0x736   : > { %14021 = vmatprep.mubr.f32.mxu0 %v22487_v57  ;;  %16065 = vmatpush3.bf16.msra.mxu0 %v16062_v36 }
 0x737   : > { %16067 = vmatprep.subr.bf16.mxu0 %v16066_v21 }
 0x739   : > { %14022 = vmatmul.mubr.f32.gmra.mrb[42].mxu0 %v22492_v37 }
 0x73a   : > { %14024 = vmatprep.mubr.f32.mxu0 %v5714_v58  ;;  %16069 = vmatpush3.bf16.msra.mxu0 %v16066_v21 }
 0x73b   : > { %16071 = vmatprep.subr.bf16.mxu0 %v16070_v1 }
 0x73d   : > { %14025 = vmatmul.mubr.f32.gmra.mrb[44].mxu0 %v5724_v24 }
 0x73e   : > { %14027 = vmatprep.mubr.f32.mxu0 %v5734_v60  ;;  %16073 = vmatpush3.bf16.msra.mxu0 %v16070_v1 }
 0x73f   : > { %16075 = vmatprep.subr.bf16.mxu0 %v16074_v28 }
 0x741   : > { %14028 = vmatmul.mubr.f32.gmra.mrb[46].mxu0 %v5744_v10 }
 0x742   : > { %16077 = vmatpush3.bf16.msra.mxu0 %v16074_v28  ;;  %14062 = vmatprep.mubr.f32.mxu0 %v20069_v27 }
 0x743   : > { %16079 = vmatprep.subr.bf16.mxu0 %v19758_v4 }
 0x745   : > { %14063 = vmatmul.mubr.f32.vlgmr.msra.gmra.mrb[32].mxu0 %v20056_v38 }
 0x746   : > { %14065 = vmatprep.mubr.f32.mxu0 %v20090_v50  ;;  %16081 = vmatpush3.bf16.msra.mxu0 %v19758_v4  ;;  %v6798_v4 = vld [vmem:[#allocation5 + $0x100] sm:$0xff] }
 0x747   : > { %16083 = vmatprep.subr.bf16.mxu0 %v19765_v53 }
 0x749   : > { %14066 = vmatmul.mubr.f32.gmra.mrb[34].mxu0 %v20085_v62 }
 0x74a   : > { %14068 = vmatprep.mubr.f32.mxu0 %v20126_v45  ;;  %16085 = vmatpush3.bf16.msra.mxu0 %v19765_v53  ;;  %v20440_v53 = vand.u32 4294901760, %v6798_v4 }
 0x74b   : > { %16087 = vmatprep.subr.bf16.mxu0 %v19784_v3 }
 0x74d   : > { %14069 = vmatmul.mubr.f32.gmra.mrb[36].mxu0 %v20116_v25 }
 0x74e   : > { %14071 = vmatprep.mubr.f32.mxu0 %v20148_v35  ;;  %16089 = vmatpush3.bf16.msra.mxu0 %v19784_v3 }
 0x74f   : > { %16091 = vmatprep.subr.bf16.mxu0 %v19802_v63 }
 0x751   : > { %14072 = vmatmul.mubr.f32.gmra.mrb[38].mxu0 %v20144_v59 }
 0x752   : > { %14074 = vmatprep.mubr.f32.mxu0 %v20175_v49  ;;  %16093 = vmatpush3.bf16.msra.mxu0 %v19802_v63  ;;  %v20443_v63 = vsub.f32 %v6798_v4, %v20440_v53 }
 0x753   : > { %16095 = vmatprep.subr.bf16.mxu0 %v19816_v31 }
 0x754   : > { %v22112_v3 = vand.u32 4294901760, %v20443_v63 }
 0x755   : > { %14075 = vmatmul.mubr.f32.gmra.mrb[40].mxu0 %v20171_v61 }
 0x756   : > { %14077 = vmatprep.mubr.f32.mxu0 %v20195_v26  ;;  %16097 = vmatpush3.bf16.msra.mxu0 %v19816_v31  ;;  %v6898_v31 = vsub.f32 %v20443_v63, %v22112_v3  ;;  %v6806_v3 = vld [vmem:[#allocation5 + $0x140] sm:$0xff] }
 0x757   : > { %16099 = vmatprep.subr.bf16.mxu0 %v19934_v34 }
 0x759   : > { %14078 = vmatmul.mubr.f32.gmra.mrb[42].mxu0 %v20191_v55 }
 0x75a   : > { %14080 = vmatprep.mubr.f32.mxu0 %v20215_v2  ;;  %16101 = vmatpush3.bf16.msra.mxu0 %v19934_v34  ;;  %v6899_v34 = vand.u32 4294901760, %v6898_v31 }
 0x75b   : > { %16103 = vmatprep.subr.bf16.mxu0 %v22459_v15 }
 0x75c   : > { %14174 = vmatprep.mubr.f32.mxu1 %v6899_v34 }
 0x75d   : > { %14081 = vmatmul.mubr.f32.gmra.mrb[44].mxu0 %v20211_v8 }
 0x75e   : > { %14083 = vmatprep.mubr.f32.mxu0 %v20235_v30  ;;  %16105 = vmatpush3.bf16.msra.mxu0 %v22459_v15 }
 0x75f   : > { %16107 = vmatprep.subr.bf16.mxu0 %v22460_v46 }
 0x761   : > { %14084 = vmatmul.mubr.f32.gmra.mrb[46].mxu0 %v20231_v29 }
 0x762   : > { %16109 = vmatpush3.bf16.msra.mxu0 %v22460_v46  ;;  %14118 = vmatprep.mubr.f32.mxu0 %v20069_v27  ;;  %v20474_v46 = vand.u32 4294901760, %v6802_v56 }
 0x764   : > { %v20497_v39 = vsub.f32 %v6802_v56, %v20474_v46 }
 0x765   : > { %14119 = vmatmul.mubr.f32.vlgmr.msra.gmra.mrb[32].mxu0 %v20056_v38 }
 0x766   : > { %14121 = vmatprep.mubr.f32.mxu0 %v20090_v50 }
 0x769   : > { %14122 = vmatmul.mubr.f32.gmra.mrb[34].mxu0 %v20085_v62  ;;  %v6801_v62 = vld [vmem:[#allocation5 + $0x118] sm:$0xff] }
 0x76a   : > { %14124 = vmatprep.mubr.f32.mxu0 %v20126_v45  ;;  %v20457_v45 = vand.u32 4294901760, %v6801_v62 }
 0x76d   : > { %14125 = vmatmul.mubr.f32.gmra.mrb[36].mxu0 %v20116_v25  ;;  %v6799_v25 = vld [vmem:[#allocation5 + $0x108] sm:$0xff] }
 0x76e   : > { %14127 = vmatprep.mubr.f32.mxu0 %v20148_v35  ;;  %v20449_v38 = vand.u32 4294901760, %v6799_v25 }
 0x770   : > { %v20452_v27 = vsub.f32 %v6799_v25, %v20449_v38 }
 0x771   : > { %14128 = vmatmul.mubr.f32.gmra.mrb[38].mxu0 %v20144_v59 }
 0x772   : > { %14130 = vmatprep.mubr.f32.mxu0 %v20175_v49  ;;  %v22111_v59 = vand.u32 4294901760, %v20452_v27 }
 0x774   : > { %v20465_v40 = vsub.f32 %v20452_v27, %v22111_v59 }
 0x775   : > { %14131 = vmatmul.mubr.f32.gmra.mrb[40].mxu0 %v20171_v61 }
 0x776   : > { %14133 = vmatprep.mubr.f32.mxu0 %v20195_v26 }
 0x779   : > { %14134 = vmatmul.mubr.f32.gmra.mrb[42].mxu0 %v20191_v55 }
 0x77a   : > { %14136 = vmatprep.mubr.f32.mxu0 %v20215_v2 }
 0x77d   : > { %14137 = vmatmul.mubr.f32.gmra.mrb[44].mxu0 %v20211_v8  ;;  %v20468_v8 = vsub.f32 %v6801_v62, %v20457_v45 }
 0x77e   : > { %14139 = vmatprep.mubr.f32.mxu0 %v20235_v30  ;;  %v6800_v30 = vld [vmem:[#allocation5 + $0x110] sm:$0xff] }
 0x77f   : > { %v20454_v50 = vand.u32 4294901760, %v6800_v30  ;;  %v22109_v12 = vand.u32 4294901760, %v20468_v8 }
 0x781   : > { %14140 = vmatmul.mubr.f32.gmra.mrb[46].mxu0 %v20231_v29  ;;  %v20460_v55 = vsub.f32 %v6800_v30, %v20454_v50 }
 0x783   : > { %v22110_v10 = vand.u32 4294901760, %v20460_v55 }
 0x785   : > { %v20494_v19 = vsub.f32 %v20460_v55, %v22110_v10 }
 0x838   : > { %v14120_v35 = vpop.f32.mrb[32].mxu0 }
 0x839   : > { %v6818_v61 = vand.u32 4294901760, %v14120_v35  ;;  %v6703_v49 = vpop.f32.mrb[33].mxu0 }
 0x83a   : > { %v6815_v2 = vand.u32 4294901760, %v6703_v49 }
 0x83b   : > { %v7064_v26 = vsub.f32 %v14120_v35, %v6818_v61 }
 0x83c   : > { %v20470_v13 = vpack.c.bf16 %v6818_v61, %v6815_v2  ;;  %v7057_v29 = vsub.f32 %v6703_v49, %v6815_v2  ;;  %v14123_v24 = vpop.f32.mrb[34].mxu0  ;;  %v20512_v2 = vsub.f32 %v20468_v8, %v22109_v12 }
 0x83d   : > { %v7065_v58 = vand.u32 4294901760, %v7064_v26  ;;  %v6824_v22 = vand.u32 4294901760, %v14123_v24  ;;  %v6715_v11 = vpop.f32.mrb[35].mxu0 }
 0x83e   : > { %v7058_v60 = vand.u32 4294901760, %v7057_v29  ;;  %v6821_v15 = vand.u32 4294901760, %v6715_v11  ;;  %16111 = vmatprep.subr.bf16.mxu1 %v20470_v13  ;;  %v20476_v32 = vpack.c.bf16 %v7064_v26, %v7057_v29 }
 0x83f   : > { %v7066_v23 = vsub.f32 %v7064_v26, %v7065_v58  ;;  %v7078_v44 = vsub.f32 %v14123_v24, %v6824_v22  ;;  %16113 = vmatpush3.bf16.msra.mxu1 %v20470_v13  ;;  %v20515_v26 = vsub.f32 %v6803_v6, %v20485_v5 }
 0x840   : > { %v7059_v42 = vsub.f32 %v7057_v29, %v7058_v60  ;;  %v20481_v33 = vpack.c.bf16 %v6824_v22, %v6821_v15  ;;  %v7071_v20 = vsub.f32 %v6715_v11, %v6821_v15  ;;  %v14126_v16 = vpop.f32.mrb[36].mxu0  ;;  %v20483_v36 = vpack.c.bf16 %v7065_v58, %v7058_v60 }
 0x841   : > { %v7079_v14 = vand.u32 4294901760, %v7078_v44  ;;  %v6830_v54 = vand.u32 4294901760, %v14126_v16  ;;  %v6727_v0 = vpop.f32.mrb[37].mxu0  ;;  %v7067_v9 = vand.u32 4294901760, %v7066_v23 }
 0x842   : > { %22497 = vst [vmem:[#allocation21_spill] sm:$0xff] %v20483_v36  ;;  %v7072_v52 = vand.u32 4294901760, %v7071_v20  ;;  %v6827_v21 = vand.u32 4294901760, %v6727_v0  ;;  %16115 = vmatprep.subr.bf16.mxu1 %v20481_v33  ;;  %v7060_v47 = vand.u32 4294901760, %v7059_v42  ;;  %v20488_v57 = vpack.c.bf16 %v7078_v44, %v7071_v20 }
 0x843   : > { %v7080_v17 = vsub.f32 %v7078_v44, %v7079_v14  ;;  %v7092_v43 = vsub.f32 %v14126_v16, %v6830_v54  ;;  %16117 = vmatpush3.bf16.msra.mxu1 %v20481_v33 }
 0x844   : > { %v7073_v1 = vsub.f32 %v7071_v20, %v7072_v52  ;;  %v20499_v37 = vpack.c.bf16 %v6830_v54, %v6827_v21  ;;  %v7085_v18 = vsub.f32 %v6727_v0, %v6827_v21  ;;  %v14129_v7 = vpop.f32.mrb[38].mxu0  ;;  %v20501_v48 = vpack.c.bf16 %v7067_v9, %v7060_v47 }
 0x845   : > { %v7093_v41 = vand.u32 4294901760, %v7092_v43  ;;  %v6836_v28 = vand.u32 4294901760, %v14129_v7  ;;  %v6739_v4 = vpop.f32.mrb[39].mxu0  ;;  %v7081_v31 = vand.u32 4294901760, %v7080_v17  ;;  %v20503_v34 = vpack.c.bf16 %v7079_v14, %v7072_v52 }
 0x846   : > { %v7086_v25 = vand.u32 4294901760, %v7085_v18  ;;  %v6833_v30 = vand.u32 4294901760, %v6739_v4  ;;  %16119 = vmatprep.subr.bf16.mxu1 %v20499_v37  ;;  %v7074_v62 = vand.u32 4294901760, %v7073_v1  ;;  %v20506_v35 = vpack.c.bf16 %v7092_v43, %v7085_v18  ;;  %v6804_v1 = vld [vmem:[#allocation5 + $0x130] sm:$0xff] }
 0x847   : > { %22498 = vst [vmem:[#allocation24_spill] sm:$0xff] %v20503_v34  ;;  %v7094_v61 = vsub.f32 %v7092_v43, %v7093_v41  ;;  %v7106_v49 = vsub.f32 %v14129_v7, %v6836_v28  ;;  %16121 = vmatpush3.bf16.msra.mxu1 %v20499_v37 }
 0x848   : > { %v7087_v56 = vsub.f32 %v7085_v18, %v7086_v25  ;;  %v20517_v29 = vpack.c.bf16 %v6836_v28, %v6833_v30  ;;  %v7099_v24 = vsub.f32 %v6739_v4, %v6833_v30  ;;  %v14132_v58 = vpop.f32.mrb[40].mxu0  ;;  %v20519_v22 = vpack.c.bf16 %v7081_v31, %v7074_v62 }
 0x849   : > { %v7107_v11 = vand.u32 4294901760, %v7106_v49  ;;  %v6842_v60 = vand.u32 4294901760, %v14132_v58  ;;  %v6751_v15 = vpop.f32.mrb[41].mxu0  ;;  %v7095_v23 = vand.u32 4294901760, %v7094_v61  ;;  %v20521_v44 = vpack.c.bf16 %v7093_v41, %v7086_v25 }
 0x84a   : > { %v7100_v42 = vand.u32 4294901760, %v7099_v24  ;;  %v6839_v20 = vand.u32 4294901760, %v6751_v15  ;;  %16123 = vmatprep.subr.bf16.mxu1 %v20517_v29  ;;  %v7088_v16 = vand.u32 4294901760, %v7087_v56  ;;  %v20524_v6 = vpack.c.bf16 %v7106_v49, %v7099_v24 }
 0x84b   : > { %22499 = vst [vmem:[#allocation25_spill] sm:$0xff] %v20521_v44  ;;  %v7108_v14 = vsub.f32 %v7106_v49, %v7107_v11  ;;  %v7120_v54 = vsub.f32 %v14132_v58, %v6842_v60  ;;  %16125 = vmatpush3.bf16.msra.mxu1 %v20517_v29 }
 0x84c   : > { %v7101_v52 = vsub.f32 %v7099_v24, %v7100_v42  ;;  %v20529_v21 = vpack.c.bf16 %v6842_v60, %v6839_v20  ;;  %v7113_v47 = vsub.f32 %v6751_v15, %v6839_v20  ;;  %v14135_v17 = vpop.f32.mrb[42].mxu0  ;;  %v20531_v43 = vpack.c.bf16 %v7095_v23, %v7088_v16 }
 0x84d   : > { %v7121_v18 = vand.u32 4294901760, %v7120_v54  ;;  %v6848_v7 = vand.u32 4294901760, %v14135_v17  ;;  %v6763_v41 = vpop.f32.mrb[43].mxu0  ;;  %v7109_v28 = vand.u32 4294901760, %v7108_v14  ;;  %v20533_v4 = vpack.c.bf16 %v7107_v11, %v7100_v42  ;;  %v6805_v42 = vld [vmem:[#allocation5 + $0x138] sm:$0xff] }
 0x84e   : > { %v7114_v31 = vand.u32 4294901760, %v7113_v47  ;;  %v6845_v25 = vand.u32 4294901760, %v6763_v41  ;;  %16127 = vmatprep.subr.bf16.mxu1 %v20529_v21  ;;  %v7102_v30 = vand.u32 4294901760, %v7101_v52  ;;  %v20536_v62 = vpack.c.bf16 %v7120_v54, %v7113_v47 }
 0x84f   : > { %22500 = vst [vmem:[#allocation31_spill] sm:$0xff] %v20533_v4  ;;  %v7122_v61 = vsub.f32 %v7120_v54, %v7121_v18  ;;  %v7134_v49 = vsub.f32 %v14135_v17, %v6848_v7  ;;  %16129 = vmatpush3.bf16.msra.mxu1 %v20529_v21  ;;  %v20540_v24 = vand.u32 4294901760, %v6804_v1  ;;  %v22508_v4 = vand.u32 4294901760, %v20515_v26 }
 0x850   : > { %v7115_v58 = vsub.f32 %v7113_v47, %v7114_v31  ;;  %v20542_v60 = vpack.c.bf16 %v6848_v7, %v6845_v25  ;;  %v7127_v11 = vsub.f32 %v6763_v41, %v6845_v25  ;;  %v14138_v15 = vpop.f32.mrb[44].mxu0  ;;  %v20544_v23 = vpack.c.bf16 %v7109_v28, %v7102_v30 }
 0x851   : > { %v7135_v20 = vand.u32 4294901760, %v7134_v49  ;;  %v6854_v16 = vand.u32 4294901760, %v14138_v15  ;;  %v6775_v14 = vpop.f32.mrb[45].mxu0  ;;  %v7123_v52 = vand.u32 4294901760, %v7122_v61  ;;  %v20546_v54 = vpack.c.bf16 %v7121_v18, %v7114_v31 }
 0x852   : > { %v7128_v17 = vand.u32 4294901760, %v7127_v11  ;;  %v6851_v12 = vand.u32 4294901760, %v6775_v14  ;;  %16131 = vmatprep.subr.bf16.mxu1 %v20542_v60  ;;  %v7116_v10 = vand.u32 4294901760, %v7115_v58  ;;  %v20549_v59 = vpack.c.bf16 %v7134_v49, %v7127_v11 }
 0x853   : > { %22501 = vst [vmem:[#allocation12_spill] sm:$0xff] %v20546_v54  ;;  %v7136_v47 = vsub.f32 %v7134_v49, %v7135_v20  ;;  %v7148_v7 = vsub.f32 %v14138_v15, %v6854_v16  ;;  %16133 = vmatpush3.bf16.msra.mxu1 %v20542_v60  ;;  %v20553_v41 = vsub.f32 %v6804_v1, %v20540_v24  ;;  %v20555_v28 = vand.u32 4294901760, %v6805_v42 }
 0x854   : > { %v7129_v25 = vsub.f32 %v7127_v11, %v7128_v17  ;;  %v20557_v30 = vpack.c.bf16 %v6854_v16, %v6851_v12  ;;  %v7141_v18 = vsub.f32 %v6775_v14, %v6851_v12  ;;  %v14141_v31 = vpop.f32.mrb[46].mxu0  ;;  %v20559_v61 = vpack.c.bf16 %v7123_v52, %v7116_v10  ;;  %v6807_v14 = vld [vmem:[#allocation5 + $0x148] sm:$0xff] }
 0x855   : > { %v7149_v58 = vand.u32 4294901760, %v7148_v7  ;;  %v6860_v0 = vand.u32 4294901760, %v14141_v31  ;;  %v6787_v51 = vpop.f32.mrb[47].mxu0  ;;  %v7137_v49 = vand.u32 4294901760, %v7136_v47  ;;  %v20561_v15 = vpack.c.bf16 %v7135_v20, %v7128_v17 }
 0x856   : > { %22502 = vst [vmem:[#allocation32_spill] sm:$0xff] %v20557_v30  ;;  %v7142_v56 = vand.u32 4294901760, %v7141_v18  ;;  %v6857_v9 = vand.u32 4294901760, %v6787_v51  ;;  %16135 = vmatprep.subr.bf16.mxu1 %v20557_v30  ;;  %v7130_v1 = vand.u32 4294901760, %v7129_v25  ;;  %v20564_v54 = vpack.c.bf16 %v7148_v7, %v7141_v18 }
 0x857   : > { %22503 = vst [vmem:[#allocation33_spill] sm:$0xff] %v20561_v15  ;;  %v7150_v11 = vsub.f32 %v7148_v7, %v7149_v58  ;;  %v7162_v16 = vsub.f32 %v14141_v31, %v6860_v0  ;;  %16137 = vmatpush3.bf16.msra.mxu1 %v20557_v30  ;;  %v20568_v10 = vsub.f32 %v6805_v42, %v20555_v28  ;;  %v20570_v12 = vand.u32 4294901760, %v6806_v3  ;;  %v6808_v15 = vld [vmem:[#allocation5 + $0x150] sm:$0xff] }
 0x858   : > { %v7143_v52 = vsub.f32 %v7141_v18, %v7142_v56  ;;  %v20572_v20 = vpack.c.bf16 %v6860_v0, %v6857_v9  ;;  %v7155_v17 = vsub.f32 %v6787_v51, %v6857_v9  ;;  %v20574_v47 = vpack.c.bf16 %v7137_v49, %v7130_v1 }
 0x859   : > { %v7163_v25 = vand.u32 4294901760, %v7162_v16  ;;  %v7151_v7 = vand.u32 4294901760, %v7150_v11  ;;  %v20577_v31 = vpack.c.bf16 %v7149_v58, %v7142_v56  ;;  %v20580_v42 = vand.u32 4294901760, %v6807_v14  ;;  %v6809_v58 = vld [vmem:[#allocation5 + $0x158] sm:$0xff]  ;;  %v6810_v11 = vld [vmem:[#allocation5 + $0x160] sm:$0xff] }
 0x85a   : > { %22504 = vst [vmem:[#allocation34_spill] sm:$0xff] %v20572_v20  ;;  %v7156_v44 = vand.u32 4294901760, %v7155_v17  ;;  %16139 = vmatprep.subr.bf16.mxu1 %v20572_v20  ;;  %v7144_v34 = vand.u32 4294901760, %v7143_v52  ;;  %v20582_v36 = vpack.c.bf16 %v7162_v16, %v7155_v17  ;;  %v22506_v51 = vand.u32 4294901760, %v20497_v39 }
 0x85b   : > { %22505 = vst [vmem:[#allocation13_spill] sm:$0xff] %v20577_v31  ;;  %v7164_v0 = vsub.f32 %v7162_v16, %v7163_v25  ;;  %16141 = vmatpush3.bf16.msra.mxu1 %v20572_v20  ;;  %v20589_v18 = vsub.f32 %v6806_v3, %v20570_v12  ;;  %v20591_v56 = vand.u32 4294901760, %v6808_v15  ;;  %v6929_v16 = vand.u32 4294901760, %v20512_v2  ;;  %v6812_v3 = vld [vmem:[#allocation5 + $0x170] sm:$0xff] }
 0x85c   : > { %v6938_v9 = vsub.f32 %v20497_v39, %v22506_v51  ;;  %v7157_v49 = vsub.f32 %v7155_v17, %v7156_v44  ;;  %16143 = vmatprep.subr.bf16.mxu1 %v20501_v48  ;;  %v20594_v1 = vpack.c.bf16 %v7151_v7, %v7144_v34  ;;  %v20596_v52 = vpack.c.bf16 %v7163_v25, %v7156_v44 }
 0x85d   : > { %v6948_v51 = vsub.f32 %v20515_v26, %v22508_v4  ;;  %v7165_v31 = vand.u32 4294901760, %v7164_v0  ;;  %v22509_v20 = vand.u32 4294901760, %v20465_v40  ;;  %v22510_v17 = vand.u32 4294901760, %v20553_v41 }
 0x85e   : > { %22507 = vst [vmem:[#allocation22_spill] sm:$0xff] %v20596_v52  ;;  %v20609_v7 = vsub.f32 %v6807_v14, %v20580_v42  ;;  %v20611_v44 = vand.u32 4294901760, %v6809_v58  ;;  %v7158_v2 = vand.u32 4294901760, %v7157_v49  ;;  %v22511_v4 = vand.u32 4294901760, %v20494_v19 }
 0x85f   : > { %14175 = vmatmul.mubr.f32.vlgmr.msra.gmra.mrb[32].mxu1 %v22509_v20  ;;  %v6958_v34 = vsub.f32 %v20553_v41, %v22510_v17  ;;  %v6939_v25 = vand.u32 4294901760, %v6938_v9  ;;  %v22123_v0 = vand.u32 4294901760, %v20589_v18  ;;  %v20618_v40 = vsub.f32 %v6808_v15, %v20591_v56  ;;  %v6811_v17 = vld [vmem:[#allocation5 + $0x168] sm:$0xff] }
 0x860   : > { %16145 = vmatpush3.bf16.msra.mxu1 %v20501_v48  ;;  %14177 = vmatprep.mubr.f32.mxu1 %v22511_v4  ;;  %v20620_v20 = vand.u32 4294901760, %v6810_v11  ;;  %v16170_v14 = vpack.c.bf16 %v7165_v31, %v7158_v2  ;;  %v6949_v52 = vand.u32 4294901760, %v6948_v51  ;;  %v22512_v49 = vand.u32 4294901760, %v20568_v10 }
 0x861   : > { %16147 = vmatprep.subr.bf16.mxu1 %v20519_v22  ;;  %v6959_v19 = vand.u32 4294901760, %v6958_v34  ;;  %v22126_v9 = vand.u32 4294901760, %v20609_v7  ;;  %v20628_v4 = vsub.f32 %v6809_v58, %v20611_v44  ;;  %v20630_v15 = vand.u32 4294901760, %v6811_v17  ;;  %v6813_v34 = vld [vmem:[#allocation5 + $0x178] sm:$0xff] }
 0x862   : > { %v6968_v48 = vsub.f32 %v20568_v10, %v22512_v49  ;;  %v6978_v31 = vsub.f32 %v20589_v18, %v22123_v0  ;;  %v6997_v51 = vand.u32 4294901760, %v20618_v40  ;;  %v20638_v2 = vsub.f32 %v6810_v11, %v20620_v20 }
 0x863   : > { %14178 = vmatmul.mubr.f32.gmra.mrb[34].mxu1 %v6929_v16  ;;  %v20640_v16 = vand.u32 4294901760, %v6812_v3  ;;  %v20648_v49 = vsub.f32 %v6811_v17, %v20630_v15  ;;  %v20650_v0 = vand.u32 4294901760, %v6813_v34 }
 0x864   : > { %16149 = vmatpush3.bf16.msra.mxu1 %v20519_v22  ;;  %14180 = vmatprep.mubr.f32.mxu1 %v6939_v25  ;;  %v6969_v58 = vand.u32 4294901760, %v6968_v48  ;;  %v6988_v22 = vsub.f32 %v20609_v7, %v22126_v9  ;;  %v22127_v25 = vand.u32 4294901760, %v20628_v4  ;;  %v6979_v11 = vand.u32 4294901760, %v6978_v31 }
 0x865   : > { %16151 = vmatprep.subr.bf16.mxu1 %v20531_v43  ;;  %v6998_v48 = vsub.f32 %v20618_v40, %v6997_v51  ;;  %v20658_v30 = vsub.f32 %v6812_v3, %v20640_v16 }
 0x866   : > { %v6989_v17 = vand.u32 4294901760, %v6988_v22  ;;  %v7008_v9 = vsub.f32 %v20628_v4, %v22127_v25 }
 0x867   : > { %14181 = vmatmul.mubr.f32.gmra.mrb[36].mxu1 %v6949_v52  ;;  %v7017_v52 = vand.u32 4294901760, %v20638_v2  ;;  %v6999_v31 = vand.u32 4294901760, %v6998_v48 }
 0x868   : > { %16153 = vmatpush3.bf16.msra.mxu1 %v20531_v43  ;;  %14183 = vmatprep.mubr.f32.mxu1 %v6959_v19  ;;  %v7027_v43 = vand.u32 4294901760, %v20648_v49  ;;  %v20666_v19 = vsub.f32 %v6813_v34, %v20650_v0  ;;  %v7009_v22 = vand.u32 4294901760, %v7008_v9 }
 0x869   : > { %16155 = vmatprep.subr.bf16.mxu1 %v20544_v23  ;;  %v7018_v3 = vsub.f32 %v20638_v2, %v7017_v52 }
 0x86a   : > { %v7028_v25 = vsub.f32 %v20648_v49, %v7027_v43  ;;  %v22138_v34 = vand.u32 4294901760, %v20666_v19 }
 0x86b   : > { %14184 = vmatmul.mubr.f32.gmra.mrb[38].mxu1 %v6969_v58  ;;  %v22139_v58 = vand.u32 4294901760, %v20658_v30 }
 0x86c   : > { %16157 = vmatpush3.bf16.msra.mxu1 %v20544_v23  ;;  %14186 = vmatprep.mubr.f32.mxu1 %v6979_v11  ;;  %v7019_v23 = vand.u32 4294901760, %v7018_v3  ;;  %v7029_v48 = vand.u32 4294901760, %v7028_v25  ;;  %v7048_v9 = vsub.f32 %v20666_v19, %v22138_v34  ;;  %v22519_v34 = vld [vmem:[#allocation24_spill] sm:$0xff] }
 0x86d   : > { %16159 = vmatprep.subr.bf16.mxu1 %v20559_v61  ;;  %v7038_v11 = vsub.f32 %v20658_v30, %v22139_v58  ;;  %v22520_v58 = vand.u32 4294901760, %v20468_v8 }
 0x86f   : > { %14187 = vmatmul.mubr.f32.gmra.mrb[40].mxu1 %v6989_v17  ;;  %v7039_v17 = vand.u32 4294901760, %v7038_v11 }
 0x870   : > { %16161 = vmatpush3.bf16.msra.mxu1 %v20559_v61  ;;  %14189 = vmatprep.mubr.f32.mxu1 %v6999_v31  ;;  %v7049_v61 = vand.u32 4294901760, %v7048_v9 }
 0x871   : > { %16163 = vmatprep.subr.bf16.mxu1 %v20574_v47 }
 0x873   : > { %14190 = vmatmul.mubr.f32.gmra.mrb[42].mxu1 %v7009_v22  ;;  %v20756_v22 = vld [vmem:[#allocation7 + $0x1b0] sm:$0xff] }
 0x874   : > { %16165 = vmatpush3.bf16.msra.mxu1 %v20574_v47  ;;  %14192 = vmatprep.mubr.f32.mxu1 %v7019_v23  ;;  %v20733_v47 = vld [vmem:[#allocation7 + $0x1a0] sm:$0xff]  ;;  %v20758_v23 = vld [vmem:[#allocation7 + $0x1b8] sm:$0xff] }
 0x875   : > { %16167 = vmatprep.subr.bf16.mxu1 %v20594_v1  ;;  %v22129_v31 = vand.u32 4294901760, %v20733_v47  ;;  %v22131_v9 = vand.u32 4294901760, %v20758_v23 }
 0x877   : > { %14193 = vmatmul.mubr.f32.gmra.mrb[44].mxu1 %v7029_v48  ;;  %v22134_v48 = vand.u32 4294901760, %v20756_v22 }
 0x878   : > { %16169 = vmatpush3.bf16.msra.mxu1 %v20594_v1  ;;  %14195 = vmatprep.mubr.f32.mxu1 %v7039_v17  ;;  %v20735_v1 = vld [vmem:[#allocation7 + $0x1a8] sm:$0xff]  ;;  %v20775_v17 = vld [vmem:[#allocation7 + $0x1c0] sm:$0xff] }
 0x879   : > { %16171 = vmatprep.subr.bf16.mxu1 %v16170_v14  ;;  %v22128_v3 = vand.u32 4294901760, %v20735_v1 }
 0x87b   : > { %14196 = vmatmul.mubr.f32.gmra.mrb[46].mxu1 %v7049_v61  ;;  %v20769_v11 = vpack.c.bf16 %v22128_v3, %v22129_v31  ;;  %v20777_v61 = vld [vmem:[#allocation7 + $0x1c8] sm:$0xff]  ;;  %v20787_v3 = vpack.c.bf16 %v22131_v9, %v22134_v48  ;;  %v22133_v31 = vand.u32 4294901760, %v20775_v17  ;;  %v22515_v48 = vand.u32 4294901760, %v20443_v63 }
 0x87c   : > { %16173 = vmatpush3.bf16.msra.mxu1 %v16170_v14  ;;  %14230 = vmatprep.mubr.f32.mxu1 %v20440_v53 }
 0x87d   : > { %16175 = vmatprep.subr.bf16.mxu1 %v20476_v32 }
 0x87f   : > { %14231 = vmatmul.mubr.f32.vlgmr.msra.gmra.mrb[32].mxu1 %v20449_v38 }
 0x880   : > { %16177 = vmatpush3.bf16.msra.mxu1 %v20476_v32  ;;  %14233 = vmatprep.mubr.f32.mxu1 %v20454_v50  ;;  %v20720_v32 = vld [vmem:[#allocation7 + $0x180] sm:$0xff] }
 0x881   : > { %16179 = vmatprep.subr.bf16.mxu1 %v20488_v57 }
 0x883   : > { %14234 = vmatmul.mubr.f32.gmra.mrb[34].mxu1 %v20457_v45 }
 0x884   : > { %16181 = vmatpush3.bf16.msra.mxu1 %v20488_v57  ;;  %14236 = vmatprep.mubr.f32.mxu1 %v20474_v46  ;;  %v20722_v57 = vld [vmem:[#allocation7 + $0x188] sm:$0xff] }
 0x885   : > { %16183 = vmatprep.subr.bf16.mxu1 %v20506_v35 }
 0x887   : > { %14237 = vmatmul.mubr.f32.gmra.mrb[36].mxu1 %v20485_v5 }
 0x888   : > { %16185 = vmatpush3.bf16.msra.mxu1 %v20506_v35  ;;  %14239 = vmatprep.mubr.f32.mxu1 %v20540_v24  ;;  %v20724_v35 = vld [vmem:[#allocation7 + $0x190] sm:$0xff] }
 0x889   : > { %16187 = vmatprep.subr.bf16.mxu1 %v20524_v6 }
 0x88b   : > { %14240 = vmatmul.mubr.f32.gmra.mrb[38].mxu1 %v20555_v28 }
 0x88c   : > { %16189 = vmatpush3.bf16.msra.mxu1 %v20524_v6  ;;  %14242 = vmatprep.mubr.f32.mxu1 %v20570_v12  ;;  %v22136_v6 = vand.u32 4294901760, %v20722_v57 }
 0x88d   : > { %16191 = vmatprep.subr.bf16.mxu1 %v20536_v62 }
 0x88f   : > { %14243 = vmatmul.mubr.f32.gmra.mrb[40].mxu1 %v20580_v42 }
 0x890   : > { %16193 = vmatpush3.bf16.msra.mxu1 %v20536_v62  ;;  %14245 = vmatprep.mubr.f32.mxu1 %v20591_v56  ;;  %v20730_v62 = vld [vmem:[#allocation7 + $0x198] sm:$0xff] }
 0x891   : > { %16195 = vmatprep.subr.bf16.mxu1 %v20549_v59  ;;  %v22130_v14 = vand.u32 4294901760, %v20730_v62 }
 0x893   : > { %14246 = vmatmul.mubr.f32.gmra.mrb[42].mxu1 %v20611_v44 }
 0x894   : > { %16197 = vmatpush3.bf16.msra.mxu1 %v20549_v59  ;;  %14248 = vmatprep.mubr.f32.mxu1 %v20620_v20  ;;  %v22137_v59 = vand.u32 4294901760, %v20720_v32 }
 0x895   : > { %16199 = vmatprep.subr.bf16.mxu1 %v20564_v54 }
 0x897   : > { %14249 = vmatmul.mubr.f32.gmra.mrb[44].mxu1 %v20630_v15 }
 0x898   : > { %16201 = vmatpush3.bf16.msra.mxu1 %v20564_v54  ;;  %14251 = vmatprep.mubr.f32.mxu1 %v20640_v16  ;;  %v22135_v54 = vand.u32 4294901760, %v20724_v35 }
 0x899   : > { %16203 = vmatprep.subr.bf16.mxu1 %v20582_v36 }
 0x89a   : > { %v20750_v25 = vpack.c.bf16 %v22130_v14, %v22135_v54  ;;  %v22132_v14 = vand.u32 4294901760, %v20777_v61  ;;  %v22516_v54 = vld [vmem:[#allocation21_spill] sm:$0xff] }
 0x89b   : > { %14252 = vmatmul.mubr.f32.gmra.mrb[46].mxu1 %v20650_v0 }
 0x89c   : > { %16205 = vmatpush3.bf16.msra.mxu1 %v20582_v36  ;;  %14286 = vmatprep.mubr.f32.mxu1 %v20443_v63  ;;  %v20743_v36 = vpack.c.bf16 %v22136_v6, %v22137_v59  ;;  %v20801_v9 = vpack.c.bf16 %v22132_v14, %v22133_v31  ;;  %v22513_v14 = vld [vmem:[#allocation32_spill] sm:$0xff]  ;;  %v22514_v31 = vld [vmem:[#allocation34_spill] sm:$0xff]  ;;  %v22517_v6 = vand.u32 4294901760, %v20452_v27  ;;  %v22518_v59 = vand.u32 4294901760, %v20460_v55 }
 0x89d   : > { %16207 = vmatprep.subr.bf16.mxu1 %v20470_v13  ;;  %v22521_v63 = vand.u32 4294901760, %v20497_v39 }
 0x89e   : > { %16303 = vmatprep.subr.bf16.mxu0 %v20743_v36 }
 0x89f   : > { %14287 = vmatmul.mubr.f32.vlgmr.msra.gmra.mrb[32].mxu1 %v20452_v27  ;;  %16305 = vmatpush3.bf16.msra.mxu0 %v20743_v36  ;;  %v22523_v27 = vand.u32 4294901760, %v20515_v26 }
 0x8a0   : > { %16209 = vmatpush3.bf16.msra.mxu1 %v20470_v13  ;;  %14289 = vmatprep.mubr.f32.mxu1 %v20460_v55  ;;  %v22524_v55 = vand.u32 4294901760, %v20553_v41 }
 0x8a1   : > { %16211 = vmatprep.subr.bf16.mxu1 %v20481_v33  ;;  %16307 = vmatprep.subr.bf16.mxu0 %v20750_v25 }
 0x8a3   : > { %14290 = vmatmul.mubr.f32.gmra.mrb[34].mxu1 %v20468_v8  ;;  %16309 = vmatpush3.bf16.msra.mxu0 %v20750_v25  ;;  %v22526_v8 = vand.u32 4294901760, %v20568_v10 }
 0x8a4   : > { %16213 = vmatpush3.bf16.msra.mxu1 %v20481_v33  ;;  %14292 = vmatprep.mubr.f32.mxu1 %v20497_v39  ;;  %v22527_v39 = vand.u32 4294901760, %v20589_v18 }
 0x8a5   : > { %16215 = vmatprep.subr.bf16.mxu1 %v20499_v37  ;;  %16311 = vmatprep.subr.bf16.mxu0 %v20769_v11 }
 0x8a7   : > { %14293 = vmatmul.mubr.f32.gmra.mrb[36].mxu1 %v20515_v26  ;;  %16313 = vmatpush3.bf16.msra.mxu0 %v20769_v11  ;;  %v22529_v26 = vand.u32 4294901760, %v20609_v7 }
 0x8a8   : > { %16217 = vmatpush3.bf16.msra.mxu1 %v20499_v37  ;;  %14295 = vmatprep.mubr.f32.mxu1 %v20553_v41  ;;  %v22530_v41 = vld [vmem:[#allocation33_spill] sm:$0xff] }
 0x8a9   : > { %16219 = vmatprep.subr.bf16.mxu1 %v20517_v29  ;;  %16315 = vmatprep.subr.bf16.mxu0 %v20787_v3 }
 0x8ab   : > { %14296 = vmatmul.mubr.f32.gmra.mrb[38].mxu1 %v20568_v10  ;;  %16317 = vmatpush3.bf16.msra.mxu0 %v20787_v3  ;;  %v22531_v10 = vand.u32 4294901760, %v20628_v4 }
 0x8ac   : > { %16221 = vmatpush3.bf16.msra.mxu1 %v20517_v29  ;;  %14298 = vmatprep.mubr.f32.mxu1 %v20589_v18  ;;  %v22532_v18 = vld [vmem:[#allocation13_spill] sm:$0xff] }
 0x8ad   : > { %16223 = vmatprep.subr.bf16.mxu1 %v20529_v21  ;;  %16319 = vmatprep.subr.bf16.mxu0 %v20801_v9 }
 0x8af   : > { %14299 = vmatmul.mubr.f32.gmra.mrb[40].mxu1 %v20609_v7  ;;  %16321 = vmatpush3.bf16.msra.mxu0 %v20801_v9  ;;  %v22533_v7 = vand.u32 4294901760, %v20658_v30 }
 0x8b0   : > { %16225 = vmatpush3.bf16.msra.mxu1 %v20529_v21  ;;  %14301 = vmatprep.mubr.f32.mxu1 %v20618_v40  ;;  %v22534_v40 = vld [vmem:[#allocation22_spill] sm:$0xff] }
 0x8b1   : > { %16227 = vmatprep.subr.bf16.mxu1 %v20542_v60 }
 0x8b3   : > { %14302 = vmatmul.mubr.f32.gmra.mrb[42].mxu1 %v20628_v4  ;;  %v22535_v4 = vand.u32 4294901760, %v20666_v19 }
 0x8b4   : > { %16229 = vmatpush3.bf16.msra.mxu1 %v20542_v60  ;;  %14304 = vmatprep.mubr.f32.mxu1 %v20638_v2 }
 0x8b5   : > { %16231 = vmatprep.subr.bf16.mxu1 %v22513_v14 }
 0x8b7   : > { %14305 = vmatmul.mubr.f32.gmra.mrb[44].mxu1 %v20648_v49 }
 0x8b8   : > { %16233 = vmatpush3.bf16.msra.mxu1 %v22513_v14  ;;  %14307 = vmatprep.mubr.f32.mxu1 %v20658_v30  ;;  %v8132_v30 = vld [vmem:[#allocation7 + $0x1f0] sm:$0xff] }
 0x8b9   : > { %16235 = vmatprep.subr.bf16.mxu1 %v22514_v31 }
 0x8bb   : > { %14308 = vmatmul.mubr.f32.gmra.mrb[46].mxu1 %v20666_v19 }
 0x8bc   : > { %16237 = vmatpush3.bf16.msra.mxu1 %v22514_v31  ;;  %14342 = vmatprep.mubr.f32.mxu1 %v22515_v48  ;;  %v22522_v48 = vld [vmem:[#allocation25_spill] sm:$0xff] }
 0x8bd   : > { %16239 = vmatprep.subr.bf16.mxu1 %v22516_v54 }
 0x8bf   : > { %14343 = vmatmul.mubr.f32.vlgmr.msra.gmra.mrb[32].mxu1 %v22517_v6 }
 0x8c0   : > { %16241 = vmatpush3.bf16.msra.mxu1 %v22516_v54  ;;  %14345 = vmatprep.mubr.f32.mxu1 %v22518_v59  ;;  %v22525_v59 = vld [vmem:[#allocation31_spill] sm:$0xff] }
 0x8c1   : > { %16243 = vmatprep.subr.bf16.mxu1 %v22519_v34 }
 0x8c3   : > { %14346 = vmatmul.mubr.f32.gmra.mrb[34].mxu1 %v22520_v58  ;;  %v22528_v58 = vld [vmem:[#allocation12_spill] sm:$0xff] }
 0x8c4   : > { %16245 = vmatpush3.bf16.msra.mxu1 %v22519_v34  ;;  %14348 = vmatprep.mubr.f32.mxu1 %v22521_v63 }
 0x8c5   : > { %16247 = vmatprep.subr.bf16.mxu1 %v22522_v48 }
 0x8c7   : > { %14349 = vmatmul.mubr.f32.gmra.mrb[36].mxu1 %v22523_v27 }
 0x8c8   : > { %16249 = vmatpush3.bf16.msra.mxu1 %v22522_v48  ;;  %14351 = vmatprep.mubr.f32.mxu1 %v22524_v55 }
 0x8c9   : > { %16251 = vmatprep.subr.bf16.mxu1 %v22525_v59 }
 0x8cb   : > { %14352 = vmatmul.mubr.f32.gmra.mrb[38].mxu1 %v22526_v8 }
 0x8cc   : > { %16253 = vmatpush3.bf16.msra.mxu1 %v22525_v59  ;;  %14354 = vmatprep.mubr.f32.mxu1 %v22527_v39 }
 0x8cd   : > { %16255 = vmatprep.subr.bf16.mxu1 %v22528_v58 }
 0x8cf   : > { %14355 = vmatmul.mubr.f32.gmra.mrb[40].mxu1 %v22529_v26 }
 0x8d0   : > { %16257 = vmatpush3.bf16.msra.mxu1 %v22528_v58  ;;  %14357 = vmatprep.mubr.f32.mxu1 %v6997_v51 }
 0x8d1   : > { %16259 = vmatprep.subr.bf16.mxu1 %v22530_v41 }
 0x8d3   : > { %14358 = vmatmul.mubr.f32.gmra.mrb[42].mxu1 %v22531_v10 }
 0x8d4   : > { %16261 = vmatpush3.bf16.msra.mxu1 %v22530_v41  ;;  %14360 = vmatprep.mubr.f32.mxu1 %v7017_v52 }
 0x8d5   : > { %16263 = vmatprep.subr.bf16.mxu1 %v22532_v18 }
 0x8d7   : > { %14361 = vmatmul.mubr.f32.gmra.mrb[44].mxu1 %v7027_v43 }
 0x8d8   : > { %16265 = vmatpush3.bf16.msra.mxu1 %v22532_v18  ;;  %14363 = vmatprep.mubr.f32.mxu1 %v22533_v7 }
 0x8d9   : > { %16267 = vmatprep.subr.bf16.mxu1 %v22534_v40 }
 0x8db   : > { %14364 = vmatmul.mubr.f32.gmra.mrb[46].mxu1 %v22535_v4 }
 0x8dc   : > { %16269 = vmatpush3.bf16.msra.mxu1 %v22534_v40  ;;  %14398 = vmatprep.mubr.f32.mxu1 %v20440_v53 }
 0x8dd   : > { %16271 = vmatprep.subr.bf16.mxu1 %v20470_v13 }
 0x8df   : > { %14399 = vmatmul.mubr.f32.vlgmr.msra.gmra.mrb[32].mxu1 %v20449_v38 }
 0x8e0   : > { %16273 = vmatpush3.bf16.msra.mxu1 %v20470_v13  ;;  %14401 = vmatprep.mubr.f32.mxu1 %v20454_v50 }
 0x8e1   : > { %16275 = vmatprep.subr.bf16.mxu1 %v20481_v33 }
 0x8e3   : > { %14402 = vmatmul.mubr.f32.gmra.mrb[34].mxu1 %v20457_v45 }
 0x8e4   : > { %16277 = vmatpush3.bf16.msra.mxu1 %v20481_v33  ;;  %14404 = vmatprep.mubr.f32.mxu1 %v20474_v46  ;;  %v8131_v33 = vld [vmem:[#allocation7 + $0x1e8] sm:$0xff] }
 0x8e5   : > { %16279 = vmatprep.subr.bf16.mxu1 %v20499_v37 }
 0x8e7   : > { %14405 = vmatmul.mubr.f32.gmra.mrb[36].mxu1 %v20485_v5 }
 0x8e8   : > { %16281 = vmatpush3.bf16.msra.mxu1 %v20499_v37  ;;  %14407 = vmatprep.mubr.f32.mxu1 %v20540_v24  ;;  %v8174_v37 = vand.u32 4294901760, %v8131_v33 }
 0x8e9   : > { %16283 = vmatprep.subr.bf16.mxu1 %v20517_v29 }
 0x8ea   : > { %v20966_v54 = vsub.f32 %v8131_v33, %v8174_v37 }
 0x8eb   : > { %14408 = vmatmul.mubr.f32.gmra.mrb[38].mxu1 %v20555_v28 }
 0x8ec   : > { %16285 = vmatpush3.bf16.msra.mxu1 %v20517_v29  ;;  %14410 = vmatprep.mubr.f32.mxu1 %v20570_v12  ;;  %22545 = vst [vmem:[#allocation28_spill] sm:$0xff] %v20966_v54  ;;  %v22142_v48 = vand.u32 4294901760, %v20966_v54 }
 0x8ed   : > { %16287 = vmatprep.subr.bf16.mxu1 %v20529_v21 }
 0x8ee   : > { %v8470_v59 = vsub.f32 %v20966_v54, %v22142_v48 }
 0x8ef   : > { %14411 = vmatmul.mubr.f32.gmra.mrb[40].mxu1 %v20580_v42 }
 0x8f0   : > { %16289 = vmatpush3.bf16.msra.mxu1 %v20529_v21  ;;  %14413 = vmatprep.mubr.f32.mxu1 %v20591_v56  ;;  %v22537_v21 = vand.u32 4294901760, %v20720_v32  ;;  %v8471_v26 = vand.u32 4294901760, %v8470_v59 }
 0x8f1   : > { %16291 = vmatprep.subr.bf16.mxu1 %v20542_v60 }
 0x8f3   : > { %14414 = vmatmul.mubr.f32.gmra.mrb[42].mxu1 %v20611_v44 }
 0x8f4   : > { %16293 = vmatpush3.bf16.msra.mxu1 %v20542_v60  ;;  %14416 = vmatprep.mubr.f32.mxu1 %v20620_v20  ;;  %v22539_v60 = vand.u32 4294901760, %v20722_v57 }
 0x8f5   : > { %16295 = vmatprep.subr.bf16.mxu1 %v22513_v14 }
 0x8f7   : > { %14417 = vmatmul.mubr.f32.gmra.mrb[44].mxu1 %v20630_v15 }
 0x8f8   : > { %16297 = vmatpush3.bf16.msra.mxu1 %v22513_v14  ;;  %14419 = vmatprep.mubr.f32.mxu1 %v20640_v16 }
 0x8f9   : > { %16299 = vmatprep.subr.bf16.mxu1 %v22514_v31 }
 0x8fb   : > { %14420 = vmatmul.mubr.f32.gmra.mrb[46].mxu1 %v20650_v0 }
 0x8fc   : > { %16301 = vmatpush3.bf16.msra.mxu1 %v22514_v31  ;;  %14454 = vmatprep.mubr.f32.mxu1 %v20440_v53  ;;  %v8128_v53 = vld [vmem:[#allocation7 + $0x1d0] sm:$0xff] }
 0x8ff   : > { %14455 = vmatmul.mubr.f32.vlgmr.msra.gmra.mrb[32].mxu1 %v20449_v38  ;;  %v8129_v38 = vld [vmem:[#allocation7 + $0x1d8] sm:$0xff] }
 0x900   : > { %14457 = vmatprep.mubr.f32.mxu1 %v20454_v50  ;;  %v8165_v50 = vand.u32 4294901760, %v8128_v53 }
 0x902   : > { %v20952_v52 = vsub.f32 %v8128_v53, %v8165_v50 }
 0x903   : > { %14458 = vmatmul.mubr.f32.gmra.mrb[34].mxu1 %v20457_v45  ;;  %v8168_v45 = vand.u32 4294901760, %v8129_v38 }
 0x904   : > { %14460 = vmatprep.mubr.f32.mxu1 %v20474_v46  ;;  %v8130_v46 = vld [vmem:[#allocation7 + $0x1e0] sm:$0xff]  ;;  %22542 = vst [vmem:[#allocation26_spill] sm:$0xff] %v20952_v52  ;;  %v22145_v19 = vand.u32 4294901760, %v20952_v52 }
 0x905   : > { %v20919_v13 = vpack.c.bf16 %v8168_v45, %v8165_v50  ;;  %v20954_v43 = vsub.f32 %v8129_v38, %v8168_v45 }
 0x907   : > { %14461 = vmatmul.mubr.f32.gmra.mrb[36].mxu1 %v20485_v5  ;;  %16323 = vmatprep.subr.bf16.mxu0 %v20919_v13  ;;  %v8171_v5 = vand.u32 4294901760, %v8130_v46  ;;  %22543 = vst [vmem:[#allocation14_spill] sm:$0xff] %v20954_v43  ;;  %v22144_v34 = vand.u32 4294901760, %v20954_v43  ;;  %v21000_v45 = vpack.c.bf16 %v20954_v43, %v20952_v52 }
 0x908   : > { %14463 = vmatprep.mubr.f32.mxu1 %v20540_v24  ;;  %16325 = vmatpush3.bf16.msra.mxu0 %v20919_v13  ;;  %v20928_v24 = vsub.f32 %v20720_v32, %v22537_v21  ;;  %v8449_v32 = vsub.f32 %v20952_v52, %v22145_v19  ;;  %v22549_v21 = vand.u32 4294901760, %v20730_v62 }
 0x909   : > { %v20923_v29 = vpack.c.bf16 %v8174_v37, %v8171_v5  ;;  %v20964_v6 = vsub.f32 %v8130_v46, %v8171_v5  ;;  %v22548_v5 = vand.u32 4294901760, %v20724_v35 }
 0x90a   : > { %22538 = vst [vmem:[#allocation17_spill] sm:$0xff] %v20928_v24  ;;  %v8450_v14 = vand.u32 4294901760, %v8449_v32 }
 0x90b   : > { %14464 = vmatmul.mubr.f32.gmra.mrb[38].mxu1 %v20555_v28  ;;  %22536 = vst [vmem:[#allocation15_spill] sm:$0xff] %v20923_v29  ;;  %v20933_v28 = vsub.f32 %v20722_v57, %v22539_v60  ;;  %16327 = vmatprep.subr.bf16.mxu0 %v20923_v29  ;;  %v8456_v57 = vsub.f32 %v20954_v43, %v22144_v34  ;;  %22544 = vst [vmem:[#allocation23_spill] sm:$0xff] %v20964_v6  ;;  %v22143_v63 = vand.u32 4294901760, %v20964_v6 }
 0x90c   : > { %14466 = vmatprep.mubr.f32.mxu1 %v20570_v12  ;;  %v8133_v12 = vld [vmem:[#allocation7 + $0x1f8] sm:$0xff]  ;;  %16329 = vmatpush3.bf16.msra.mxu0 %v20923_v29  ;;  %v21004_v46 = vpack.c.bf16 %v20966_v54, %v20964_v6  ;;  %v21013_v37 = vsub.f32 %v20724_v35, %v22548_v5  ;;  %v21018_v60 = vsub.f32 %v20730_v62, %v22549_v21 }
 0x90d   : > { %22540 = vst [vmem:[#allocation19_spill] sm:$0xff] %v20933_v28  ;;  %v8457_v31 = vand.u32 4294901760, %v8456_v57  ;;  %v8463_v55 = vsub.f32 %v20964_v6, %v22143_v63  ;;  %v20996_v50 = vpack.c.bf16 %v20933_v28, %v20928_v24 }
 0x90f   : > { %14467 = vmatmul.mubr.f32.gmra.mrb[40].mxu1 %v20580_v42  ;;  %v8177_v42 = vand.u32 4294901760, %v8132_v30  ;;  %v20970_v27 = vpack.c.bf16 %v8457_v31, %v8450_v14  ;;  %v8464_v58 = vand.u32 4294901760, %v8463_v55  ;;  %v22553_v31 = vand.u32 4294901760, %v20758_v23 }
 0x910   : > { %14469 = vmatprep.mubr.f32.mxu1 %v20591_v56  ;;  %v8180_v56 = vand.u32 4294901760, %v8133_v12 }
 0x911   : > { %v20978_v8 = vsub.f32 %v8132_v30, %v8177_v42  ;;  %v20984_v18 = vpack.c.bf16 %v8471_v26, %v8464_v58  ;;  %v22152_v30 = vand.u32 4294901760, %v21013_v37  ;;  %v21051_v55 = vsub.f32 %v20758_v23, %v22553_v31 }
 0x912   : > { %v20980_v39 = vsub.f32 %v8133_v12, %v8180_v56  ;;  %v22150_v12 = vand.u32 4294901760, %v21018_v60 }
 0x913   : > { %14470 = vmatmul.mubr.f32.gmra.mrb[42].mxu1 %v20611_v44  ;;  %v22156_v44 = vand.u32 4294901760, %v20928_v24  ;;  %22546 = vst [vmem:[#allocation16_spill] sm:$0xff] %v20978_v8  ;;  %v22141_v41 = vand.u32 4294901760, %v20978_v8 }
 0x914   : > { %14472 = vmatprep.mubr.f32.mxu1 %v20620_v20  ;;  %v20939_v20 = vpack.c.bf16 %v8180_v56, %v8177_v42  ;;  %22547 = vst [vmem:[#allocation27_spill] sm:$0xff] %v20980_v39  ;;  %v22140_v10 = vand.u32 4294901760, %v20980_v39  ;;  %v21008_v33 = vpack.c.bf16 %v20980_v39, %v20978_v8  ;;  %v22550_v42 = vand.u32 4294901760, %v20733_v47 }
 0x915   : > { %v8477_v7 = vsub.f32 %v20978_v8, %v22141_v41  ;;  %v8400_v62 = vsub.f32 %v21018_v60, %v22150_v12  ;;  %v22555_v41 = vand.u32 4294901760, %v20777_v61 }
 0x916   : > { %22541 = vst [vmem:[#allocation20_spill] sm:$0xff] %v20939_v20  ;;  %16331 = vmatprep.subr.bf16.mxu0 %v20939_v20  ;;  %v8484_v40 = vsub.f32 %v20980_v39, %v22140_v10  ;;  %v21025_v56 = vsub.f32 %v20733_v47, %v22550_v42 }
 0x917   : > { %14473 = vmatmul.mubr.f32.gmra.mrb[44].mxu1 %v20630_v15  ;;  %v8379_v15 = vsub.f32 %v20928_v24, %v22156_v44  ;;  %16333 = vmatpush3.bf16.msra.mxu0 %v20939_v20  ;;  %v8478_v4 = vand.u32 4294901760, %v8477_v7  ;;  %v8401_v7 = vand.u32 4294901760, %v8400_v62  ;;  %v21092_v48 = vsub.f32 %v20777_v61, %v22555_v41 }
 0x918   : > { %14475 = vmatprep.mubr.f32.mxu1 %v20640_v16  ;;  %v8485_v53 = vand.u32 4294901760, %v8484_v40 }
 0x919   : > { %v8380_v2 = vand.u32 4294901760, %v8379_v15  ;;  %v22551_v15 = vand.u32 4294901760, %v20735_v1 }
 0x91a   : > { %v20992_v38 = vpack.c.bf16 %v8485_v53, %v8478_v4 }
 0x91b   : > { %14476 = vmatmul.mubr.f32.gmra.mrb[46].mxu1 %v20650_v0  ;;  %v22154_v0 = vand.u32 4294901760, %v20933_v28  ;;  %v21030_v35 = vsub.f32 %v20735_v1, %v22551_v15  ;;  %v22552_v1 = vand.u32 4294901760, %v20756_v22  ;;  %v22151_v15 = vand.u32 4294901760, %v21051_v55 }
 0x91d   : > { %v8386_v51 = vsub.f32 %v20933_v28, %v22154_v0  ;;  %v22146_v32 = vand.u32 4294901760, %v21030_v35  ;;  %v21046_v14 = vsub.f32 %v20756_v22, %v22552_v1  ;;  %v8428_v41 = vsub.f32 %v21051_v55, %v22151_v15 }
 0x91f   : > { %v8387_v16 = vand.u32 4294901760, %v8386_v51  ;;  %v8393_v51 = vsub.f32 %v21013_v37, %v22152_v30  ;;  %v8414_v23 = vsub.f32 %v21030_v35, %v22146_v32  ;;  %v22149_v42 = vand.u32 4294901760, %v21046_v14 }
 0x920   : > { %v8429_v44 = vand.u32 4294901760, %v8428_v41  ;;  %v22556_v41 = vand.u32 4294901760, %v21092_v48 }
 0x921   : > { %v20949_v49 = vpack.c.bf16 %v8387_v16, %v8380_v2  ;;  %v22147_v16 = vand.u32 4294901760, %v21025_v56  ;;  %v8394_v26 = vand.u32 4294901760, %v8393_v51  ;;  %v8415_v19 = vand.u32 4294901760, %v8414_v23 }
 0x922   : > { %v8421_v61 = vsub.f32 %v21046_v14, %v22149_v42 }
 0x923   : > { %16335 = vmatprep.subr.bf16.mxu0 %v20949_v49  ;;  %v8407_v22 = vsub.f32 %v21025_v56, %v22147_v16  ;;  %v16338_v10 = vpack.c.bf16 %v8401_v7, %v8394_v26 }
 0x9d2   : > { %v14456_v2 = vpop.f32.mrb[32].mxu1 }
 0x9d3   : > { %10891 = vst [vmem:[%s17819_s18 + $0x188] sm:$0xff] %v14456_v2  ;;  %v21041_v47 = vand.u32 4294901760, %v14456_v2  ;;  %v8006_v57 = vpop.f32.mrb[33].mxu1 }
 0x9d4   : > { %10890 = vst [vmem:[%s17819_s18 + $0x180] sm:$0xff] %v8006_v57  ;;  %v21054_v59 = vand.u32 4294901760, %v8006_v57 }
 0x9d5   : > { %v21057_v58 = vsub.f32 %v14456_v2, %v21041_v47  ;;  %v22554_v2 = vand.u32 4294901760, %v20775_v17 }
 0x9d6   : > { %v21060_v40 = vsub.f32 %v8006_v57, %v21054_v59  ;;  %v14459_v4 = vpop.f32.mrb[34].mxu1 }
 0x9d7   : > { %v22148_v53 = vand.u32 4294901760, %v21057_v58  ;;  %10893 = vst [vmem:[%s17819_s18 + $0x198] sm:$0xff] %v14459_v4  ;;  %v21070_v5 = vand.u32 4294901760, %v14459_v4  ;;  %v8018_v21 = vpop.f32.mrb[35].mxu1  ;;  %v21081_v57 = vsub.f32 %v20775_v17, %v22554_v2  ;;  %v8408_v2 = vand.u32 4294901760, %v8407_v22 }
 0x9d8   : > { %10892 = vst [vmem:[%s17819_s18 + $0x190] sm:$0xff] %v8018_v21  ;;  %v21075_v51 = vand.u32 4294901760, %v8018_v21  ;;  %v22153_v62 = vand.u32 4294901760, %v21060_v40 }
 0x9d9   : > { %v8228_v1 = vsub.f32 %v21057_v58, %v22148_v53  ;;  %v21087_v31 = vsub.f32 %v14459_v4, %v21070_v5 }
 0x9da   : > { %v21095_v63 = vsub.f32 %v8018_v21, %v21075_v51  ;;  %v14462_v34 = vpop.f32.mrb[36].mxu1  ;;  %v8218_v17 = vsub.f32 %v21060_v40, %v22153_v62  ;;  %v22158_v21 = vand.u32 4294901760, %v21081_v57 }
 0x9db   : > { %10895 = vst [vmem:[%s17819_s18 + $0x1a8] sm:$0xff] %v14462_v34  ;;  %v21101_v32 = vand.u32 4294901760, %v14462_v34  ;;  %v8030_v4 = vpop.f32.mrb[37].mxu1  ;;  %v22155_v26 = vand.u32 4294901760, %v21087_v31  ;;  %v8229_v16 = vand.u32 4294901760, %v8228_v1  ;;  %v16342_v1 = vpack.c.bf16 %v8415_v19, %v8408_v2 }
 0x9dc   : > { %10894 = vst [vmem:[%s17819_s18 + $0x1a0] sm:$0xff] %v8030_v4  ;;  %v21111_v7 = vand.u32 4294901760, %v8030_v4  ;;  %v8219_v22 = vand.u32 4294901760, %v8218_v17  ;;  %v22157_v23 = vand.u32 4294901760, %v21095_v63  ;;  %v8435_v19 = vsub.f32 %v21081_v57, %v22158_v21 }
 0x9dd   : > { %v21116_v53 = vsub.f32 %v14462_v34, %v21101_v32  ;;  %v8248_v42 = vsub.f32 %v21087_v31, %v22155_v26  ;;  %v8422_v26 = vand.u32 4294901760, %v8421_v61 }
 0x9de   : > { %v21123_v15 = vsub.f32 %v8030_v4, %v21111_v7  ;;  %v14465_v30 = vpop.f32.mrb[38].mxu1  ;;  %14510 = vmatprep.mubr.f32.mxu0 %v8219_v22  ;;  %v8238_v17 = vsub.f32 %v21095_v63, %v22157_v23  ;;  %v8436_v8 = vand.u32 4294901760, %v8435_v19 }
 0x9df   : > { %10897 = vst [vmem:[%s17819_s18 + $0x1b8] sm:$0xff] %v14465_v30  ;;  %v21129_v62 = vand.u32 4294901760, %v14465_v30  ;;  %v8042_v34 = vpop.f32.mrb[39].mxu1  ;;  %14511 = vmatmul.mubr.f32.vlgmr.msra.gmra.mrb[48].mxu0 %v8229_v16  ;;  %v22159_v0 = vand.u32 4294901760, %v21116_v53  ;;  %v8249_v2 = vand.u32 4294901760, %v8248_v42  ;;  %v16346_v39 = vpack.c.bf16 %v8429_v44, %v8422_v26 }
 0x9e0   : > { %10896 = vst [vmem:[%s17819_s18 + $0x1b0] sm:$0xff] %v8042_v34  ;;  %v21133_v4 = vand.u32 4294901760, %v8042_v34  ;;  %16337 = vmatpush3.bf16.msra.mxu0 %v20949_v49  ;;  %v8239_v22 = vand.u32 4294901760, %v8238_v17  ;;  %v22162_v12 = vand.u32 4294901760, %v21123_v15  ;;  %v8442_v49 = vsub.f32 %v21092_v48, %v22556_v41 }
 0x9e1   : > { %v21141_v16 = vsub.f32 %v14465_v30, %v21129_v62  ;;  %16339 = vmatprep.subr.bf16.mxu0 %v16338_v10  ;;  %v8268_v61 = vsub.f32 %v21116_v53, %v22159_v0 }
 0x9e2   : > { %v21150_v17 = vsub.f32 %v8042_v34, %v21133_v4  ;;  %v14468_v23 = vpop.f32.mrb[40].mxu1  ;;  %14513 = vmatprep.mubr.f32.mxu0 %v8239_v22  ;;  %v8258_v30 = vsub.f32 %v21123_v15, %v22162_v12  ;;  %v8443_v44 = vand.u32 4294901760, %v8442_v49 }
 0x9e3   : > { %10899 = vst [vmem:[%s17819_s18 + $0x1c8] sm:$0xff] %v14468_v23  ;;  %v21156_v42 = vand.u32 4294901760, %v14468_v23  ;;  %v8054_v21 = vpop.f32.mrb[41].mxu1  ;;  %14514 = vmatmul.mubr.f32.gmra.mrb[50].mxu0 %v8249_v2  ;;  %v22165_v0 = vand.u32 4294901760, %v21141_v16  ;;  %v8269_v54 = vand.u32 4294901760, %v8268_v61 }
 0x9e4   : > { %10898 = vst [vmem:[%s17819_s18 + $0x1c0] sm:$0xff] %v8054_v21  ;;  %v21160_v41 = vand.u32 4294901760, %v8054_v21  ;;  %16341 = vmatpush3.bf16.msra.mxu0 %v16338_v10  ;;  %v8259_v34 = vand.u32 4294901760, %v8258_v30  ;;  %v22166_v22 = vand.u32 4294901760, %v21150_v17 }
 0x9e5   : > { %v21164_v12 = vsub.f32 %v14468_v23, %v21156_v42  ;;  %16343 = vmatprep.subr.bf16.mxu0 %v16342_v1  ;;  %v8288_v2 = vsub.f32 %v21141_v16, %v22165_v0 }
 0x9e6   : > { %v21170_v26 = vsub.f32 %v8054_v21, %v21160_v41  ;;  %v14471_v6 = vpop.f32.mrb[42].mxu1  ;;  %14516 = vmatprep.mubr.f32.mxu0 %v8259_v34  ;;  %v8278_v10 = vsub.f32 %v21150_v17, %v22166_v22  ;;  %v16350_v22 = vpack.c.bf16 %v8443_v44, %v8436_v8 }
 0x9e7   : > { %10901 = vst [vmem:[%s17819_s18 + $0x1d8] sm:$0xff] %v14471_v6  ;;  %v21176_v19 = vand.u32 4294901760, %v14471_v6  ;;  %v8066_v23 = vpop.f32.mrb[43].mxu1  ;;  %14517 = vmatmul.mubr.f32.gmra.mrb[52].mxu0 %v8269_v54  ;;  %v22169_v61 = vand.u32 4294901760, %v21164_v12  ;;  %v8289_v0 = vand.u32 4294901760, %v8288_v2 }
 0x9e8   : > { %10900 = vst [vmem:[%s17819_s18 + $0x1d0] sm:$0xff] %v8066_v23  ;;  %v21180_v30 = vand.u32 4294901760, %v8066_v23  ;;  %16345 = vmatpush3.bf16.msra.mxu0 %v16342_v1  ;;  %v8279_v21 = vand.u32 4294901760, %v8278_v10  ;;  %v22170_v49 = vand.u32 4294901760, %v21170_v26 }
 0x9e9   : > { %v21184_v34 = vsub.f32 %v14471_v6, %v21176_v19  ;;  %16347 = vmatprep.subr.bf16.mxu0 %v16346_v39  ;;  %v8308_v54 = vsub.f32 %v21164_v12, %v22169_v61 }
 0x9ea   : > { %v21190_v43 = vsub.f32 %v8066_v23, %v21180_v30  ;;  %v14474_v52 = vpop.f32.mrb[44].mxu1  ;;  %14519 = vmatprep.mubr.f32.mxu0 %v8279_v21  ;;  %v8298_v1 = vsub.f32 %v21170_v26, %v22170_v49 }
 0x9eb   : > { %10903 = vst [vmem:[%s17819_s18 + $0x1e8] sm:$0xff] %v14474_v52  ;;  %v21196_v10 = vand.u32 4294901760, %v14474_v52  ;;  %v8078_v6 = vpop.f32.mrb[45].mxu1  ;;  %14520 = vmatmul.mubr.f32.gmra.mrb[54].mxu0 %v8289_v0  ;;  %v22173_v2 = vand.u32 4294901760, %v21184_v34  ;;  %v8309_v21 = vand.u32 4294901760, %v8308_v54 }
 0x9ec   : > { %10902 = vst [vmem:[%s17819_s18 + $0x1e0] sm:$0xff] %v8078_v6  ;;  %v21200_v61 = vand.u32 4294901760, %v8078_v6  ;;  %16349 = vmatpush3.bf16.msra.mxu0 %v16346_v39  ;;  %v8299_v8 = vand.u32 4294901760, %v8298_v1  ;;  %v22176_v44 = vand.u32 4294901760, %v21190_v43 }
 0x9ed   : > { %v21204_v23 = vsub.f32 %v14474_v52, %v21196_v10  ;;  %16351 = vmatprep.subr.bf16.mxu0 %v16350_v22  ;;  %v8328_v49 = vsub.f32 %v21184_v34, %v22173_v2 }
 0x9ee   : > { %v21210_v0 = vsub.f32 %v8078_v6, %v21200_v61  ;;  %v14477_v28 = vpop.f32.mrb[46].mxu1  ;;  %14522 = vmatprep.mubr.f32.mxu0 %v8299_v8  ;;  %v8318_v39 = vsub.f32 %v21190_v43, %v22176_v44 }
 0x9ef   : > { %10905 = vst [vmem:[%s17819_s18 + $0x1f8] sm:$0xff] %v14477_v28  ;;  %v21216_v1 = vand.u32 4294901760, %v14477_v28  ;;  %v8090_v52 = vpop.f32.mrb[47].mxu1  ;;  %14523 = vmatmul.mubr.f32.gmra.mrb[56].mxu0 %v8309_v21  ;;  %v8347_v54 = vand.u32 4294901760, %v21204_v23  ;;  %v8329_v20 = vand.u32 4294901760, %v8328_v49 }
 0x9f0   : > { %10904 = vst [vmem:[%s17819_s18 + $0x1f0] sm:$0xff] %v8090_v52  ;;  %v21220_v24 = vand.u32 4294901760, %v8090_v52  ;;  %16353 = vmatpush3.bf16.msra.mxu0 %v16350_v22  ;;  %v8319_v2 = vand.u32 4294901760, %v8318_v39  ;;  %v8337_v6 = vand.u32 4294901760, %v21210_v0 }
 0x9f1   : > { %v21224_v8 = vsub.f32 %v14477_v28, %v21216_v1  ;;  %16355 = vmatprep.subr.bf16.mxu0 %v20970_v27  ;;  %v8348_v44 = vsub.f32 %v21204_v23, %v8347_v54 }
 0x9f2   : > { %v21231_v21 = vsub.f32 %v8090_v52, %v21220_v24  ;;  %14525 = vmatprep.mubr.f32.mxu0 %v8319_v2  ;;  %v8338_v22 = vsub.f32 %v21210_v0, %v8337_v6 }
 0x9f3   : > { %14526 = vmatmul.mubr.f32.gmra.mrb[58].mxu0 %v8329_v20  ;;  %v8367_v39 = vand.u32 4294901760, %v21224_v8  ;;  %v8349_v29 = vand.u32 4294901760, %v8348_v44  ;;  %v16370_v44 = vpack.c.bf16 %v21018_v60, %v21013_v37 }
 0x9f4   : > { %16357 = vmatpush3.bf16.msra.mxu0 %v20970_v27  ;;  %v8339_v28 = vand.u32 4294901760, %v8338_v22  ;;  %v8357_v49 = vand.u32 4294901760, %v21231_v21  ;;  %v22561_v22 = vld [vmem:[#allocation19_spill] sm:$0xff] }
 0x9f5   : > { %16359 = vmatprep.subr.bf16.mxu0 %v20984_v18  ;;  %v8368_v52 = vsub.f32 %v21224_v8, %v8367_v39 }
 0x9f6   : > { %14528 = vmatprep.mubr.f32.mxu0 %v8339_v28  ;;  %v8358_v2 = vsub.f32 %v21231_v21, %v8357_v49  ;;  %v22562_v28 = vand.u32 4294901760, %v22561_v22  ;;  %v22574_v22 = vand.u32 4294901760, %v21116_v53 }
 0x9f7   : > { %14529 = vmatmul.mubr.f32.gmra.mrb[60].mxu0 %v8349_v29  ;;  %v8369_v27 = vand.u32 4294901760, %v8368_v52  ;;  %v16374_v29 = vpack.c.bf16 %v21030_v35, %v21025_v56 }
 0x9f8   : > { %16361 = vmatpush3.bf16.msra.mxu0 %v20984_v18  ;;  %v8359_v20 = vand.u32 4294901760, %v8358_v2  ;;  %v16378_v18 = vpack.c.bf16 %v21051_v55, %v21046_v14  ;;  %v22563_v2 = vand.u32 4294901760, %v21060_v40 }
 0x9f9   : > { %16363 = vmatprep.subr.bf16.mxu0 %v20992_v38 }
 0x9fa   : > { %14531 = vmatprep.mubr.f32.mxu0 %v8359_v20  ;;  %v22564_v20 = vand.u32 4294901760, %v21013_v37  ;;  %v22571_v37 = vand.u32 4294901760, %v21123_v15 }
 0x9fb   : > { %14532 = vmatmul.mubr.f32.gmra.mrb[62].mxu0 %v8369_v27  ;;  %v22565_v27 = vand.u32 4294901760, %v21018_v60  ;;  %v22572_v60 = vand.u32 4294901760, %v21046_v14  ;;  %v22579_v14 = vand.u32 4294901760, %v21170_v26 }
 0x9fc   : > { %16365 = vmatpush3.bf16.msra.mxu0 %v20992_v38  ;;  %14566 = vmatprep.mubr.f32.mxu0 %v21054_v59  ;;  %v16382_v38 = vpack.c.bf16 %v21092_v48, %v21081_v57 }
 0x9fd   : > { %16367 = vmatprep.subr.bf16.mxu0 %v20996_v50 }
 0x9ff   : > { %14567 = vmatmul.mubr.f32.vlgmr.msra.gmra.mrb[48].mxu0 %v21041_v47 }
 0xa00   : > { %14569 = vmatprep.mubr.f32.mxu0 %v21075_v51  ;;  %16369 = vmatpush3.bf16.msra.mxu0 %v20996_v50  ;;  %v22557_v50 = vld [vmem:[#allocation15_spill] sm:$0xff] }
 0xa01   : > { %16371 = vmatprep.subr.bf16.mxu0 %v16370_v44 }
 0xa03   : > { %14570 = vmatmul.mubr.f32.gmra.mrb[50].mxu0 %v21070_v5 }
 0xa04   : > { %14572 = vmatprep.mubr.f32.mxu0 %v21111_v7  ;;  %16373 = vmatpush3.bf16.msra.mxu0 %v16370_v44  ;;  %v16434_v44 = vpack.c.bf16 %v22565_v27, %v22564_v20  ;;  %v22584_v20 = vand.u32 4294901760, %v21164_v12  ;;  %v22588_v27 = vld [vmem:[#allocation28_spill] sm:$0xff] }
 0xa05   : > { %16375 = vmatprep.subr.bf16.mxu0 %v16374_v29 }
 0xa07   : > { %14573 = vmatmul.mubr.f32.gmra.mrb[52].mxu0 %v21101_v32 }
 0xa08   : > { %14575 = vmatprep.mubr.f32.mxu0 %v21133_v4  ;;  %16377 = vmatpush3.bf16.msra.mxu0 %v16374_v29  ;;  %v22566_v29 = vand.u32 4294901760, %v21057_v58 }
 0xa09   : > { %16379 = vmatprep.subr.bf16.mxu0 %v16378_v18 }
 0xa0b   : > { %14576 = vmatmul.mubr.f32.gmra.mrb[54].mxu0 %v21129_v62 }
 0xa0c   : > { %14578 = vmatprep.mubr.f32.mxu0 %v21160_v41  ;;  %16381 = vmatpush3.bf16.msra.mxu0 %v16378_v18  ;;  %v22567_v18 = vand.u32 4294901760, %v21095_v63 }
 0xa0d   : > { %16383 = vmatprep.subr.bf16.mxu0 %v16382_v38 }
 0xa0f   : > { %14579 = vmatmul.mubr.f32.gmra.mrb[56].mxu0 %v21156_v42 }
 0xa10   : > { %14581 = vmatprep.mubr.f32.mxu0 %v21180_v30  ;;  %16385 = vmatpush3.bf16.msra.mxu0 %v16382_v38  ;;  %v22568_v38 = vand.u32 4294901760, %v21025_v56  ;;  %v22575_v56 = vand.u32 4294901760, %v21150_v17 }
 0xa11   : > { %16387 = vmatprep.subr.bf16.mxu0 %v21000_v45 }
 0xa13   : > { %14582 = vmatmul.mubr.f32.gmra.mrb[58].mxu0 %v21176_v19 }
 0xa14   : > { %14584 = vmatprep.mubr.f32.mxu0 %v21200_v61  ;;  %16389 = vmatpush3.bf16.msra.mxu0 %v21000_v45  ;;  %v22558_v45 = vld [vmem:[#allocation20_spill] sm:$0xff] }
 0xa15   : > { %16391 = vmatprep.subr.bf16.mxu0 %v21004_v46 }
 0xa17   : > { %14585 = vmatmul.mubr.f32.gmra.mrb[60].mxu0 %v21196_v10 }
 0xa18   : > { %14587 = vmatprep.mubr.f32.mxu0 %v21220_v24  ;;  %16393 = vmatpush3.bf16.msra.mxu0 %v21004_v46  ;;  %v22559_v46 = vld [vmem:[#allocation17_spill] sm:$0xff] }
 0xa19   : > { %16395 = vmatprep.subr.bf16.mxu0 %v21008_v33 }
 0xa1b   : > { %14588 = vmatmul.mubr.f32.gmra.mrb[62].mxu0 %v21216_v1 }
 0xa1c   : > { %16397 = vmatpush3.bf16.msra.mxu0 %v21008_v33  ;;  %14622 = vmatprep.mubr.f32.mxu0 %v21060_v40  ;;  %v22560_v33 = vand.u32 4294901760, %v22559_v46  ;;  %v22569_v46 = vand.u32 4294901760, %v21030_v35  ;;  %v22576_v35 = vand.u32 4294901760, %v21081_v57  ;;  %v22585_v57 = vand.u32 4294901760, %v21190_v43 }
 0xa1d   : > { %16399 = vmatprep.subr.bf16.mxu0 %v20743_v36 }
 0xa1e   : > { %v16430_v52 = vpack.c.bf16 %v22562_v28, %v22560_v33  ;;  %v16438_v40 = vpack.c.bf16 %v22569_v46, %v22568_v38  ;;  %v22570_v33 = vand.u32 4294901760, %v21087_v31  ;;  %v22578_v28 = vand.u32 4294901760, %v21141_v16  ;;  %v22593_v38 = vld [vmem:[#allocation27_spill] sm:$0xff] }
 0xa1f   : > { %14623 = vmatmul.mubr.f32.vlgmr.msra.gmra.mrb[48].mxu0 %v21057_v58 }
 0xa20   : > { %14625 = vmatprep.mubr.f32.mxu0 %v21095_v63  ;;  %16401 = vmatpush3.bf16.msra.mxu0 %v20743_v36  ;;  %v22573_v63 = vand.u32 4294901760, %v21051_v55  ;;  %v22580_v55 = vld [vmem:[#allocation26_spill] sm:$0xff] }
 0xa21   : > { %16403 = vmatprep.subr.bf16.mxu0 %v20750_v25 }
 0xa22   : > { %v16442_v58 = vpack.c.bf16 %v22573_v63, %v22572_v60 }
 0xa23   : > { %14626 = vmatmul.mubr.f32.gmra.mrb[50].mxu0 %v21087_v31 }
 0xa24   : > { %14628 = vmatprep.mubr.f32.mxu0 %v21123_v15  ;;  %16405 = vmatpush3.bf16.msra.mxu0 %v20750_v25  ;;  %v22577_v15 = vand.u32 4294901760, %v21092_v48  ;;  %v22586_v48 = vld [vmem:[#allocation23_spill] sm:$0xff] }
 0xa25   : > { %16407 = vmatprep.subr.bf16.mxu0 %v20769_v11 }
 0xa26   : > { %v16446_v31 = vpack.c.bf16 %v22577_v15, %v22576_v35 }
 0xa27   : > { %14629 = vmatmul.mubr.f32.gmra.mrb[52].mxu0 %v21116_v53  ;;  %v22581_v53 = vand.u32 4294901760, %v22580_v55 }
 0xa28   : > { %14631 = vmatprep.mubr.f32.mxu0 %v21150_v17  ;;  %16409 = vmatpush3.bf16.msra.mxu0 %v20769_v11 }
 0xa29   : > { %16411 = vmatprep.subr.bf16.mxu0 %v20787_v3 }
 0xa2b   : > { %14632 = vmatmul.mubr.f32.gmra.mrb[54].mxu0 %v21141_v16  ;;  %v22587_v16 = vand.u32 4294901760, %v22586_v48 }
 0xa2c   : > { %14634 = vmatprep.mubr.f32.mxu0 %v21170_v26  ;;  %16413 = vmatpush3.bf16.msra.mxu0 %v20787_v3  ;;  %v22589_v26 = vand.u32 4294901760, %v22588_v27 }
 0xa2d   : > { %16415 = vmatprep.subr.bf16.mxu0 %v20801_v9 }
 0xa2f   : > { %14635 = vmatmul.mubr.f32.gmra.mrb[56].mxu0 %v21164_v12  ;;  %v22591_v12 = vld [vmem:[#allocation16_spill] sm:$0xff] }
 0xa30   : > { %14637 = vmatprep.mubr.f32.mxu0 %v21190_v43  ;;  %16417 = vmatpush3.bf16.msra.mxu0 %v20801_v9  ;;  %v22594_v43 = vand.u32 4294901760, %v22593_v38 }
 0xa31   : > { %16419 = vmatprep.subr.bf16.mxu0 %v20919_v13 }
 0xa33   : > { %14638 = vmatmul.mubr.f32.gmra.mrb[58].mxu0 %v21184_v34 }
 0xa34   : > { %14640 = vmatprep.mubr.f32.mxu0 %v21210_v0  ;;  %16421 = vmatpush3.bf16.msra.mxu0 %v20919_v13 }
 0xa35   : > { %16423 = vmatprep.subr.bf16.mxu0 %v22557_v50 }
 0xa37   : > { %14641 = vmatmul.mubr.f32.gmra.mrb[60].mxu0 %v21204_v23  ;;  %v9425_v23 = vld [vmem:[#allocation5 + $0x1a0] sm:$0xff] }
 0xa38   : > { %14643 = vmatprep.mubr.f32.mxu0 %v21231_v21  ;;  %16425 = vmatpush3.bf16.msra.mxu0 %v22557_v50 }
 0xa39   : > { %16427 = vmatprep.subr.bf16.mxu0 %v22558_v45 }
 0xa3b   : > { %14644 = vmatmul.mubr.f32.gmra.mrb[62].mxu0 %v21224_v8 }
 0xa3c   : > { %16429 = vmatpush3.bf16.msra.mxu0 %v22558_v45  ;;  %14678 = vmatprep.mubr.f32.mxu0 %v22563_v2 }
 0xa3d   : > { %16431 = vmatprep.subr.bf16.mxu0 %v16430_v52 }
 0xa3f   : > { %14679 = vmatmul.mubr.f32.vlgmr.msra.gmra.mrb[48].mxu0 %v22566_v29  ;;  %v22590_v29 = vand.u32 4294901760, %v21184_v34 }
 0xa40   : > { %14681 = vmatprep.mubr.f32.mxu0 %v22567_v18  ;;  %16433 = vmatpush3.bf16.msra.mxu0 %v16430_v52  ;;  %v22582_v52 = vld [vmem:[#allocation14_spill] sm:$0xff]  ;;  %v22592_v18 = vand.u32 4294901760, %v22591_v12 }
 0xa41   : > { %16435 = vmatprep.subr.bf16.mxu0 %v16434_v44  ;;  %v22583_v17 = vand.u32 4294901760, %v22582_v52 }
 0xa42   : > { %v16458_v46 = vpack.c.bf16 %v22594_v43, %v22592_v18 }
 0xa43   : > { %14682 = vmatmul.mubr.f32.gmra.mrb[50].mxu0 %v22570_v33  ;;  %v16450_v2 = vpack.c.bf16 %v22583_v17, %v22581_v53 }
 0xa44   : > { %14684 = vmatprep.mubr.f32.mxu0 %v22571_v37  ;;  %16437 = vmatpush3.bf16.msra.mxu0 %v16434_v44  ;;  %v16454_v44 = vpack.c.bf16 %v22589_v26, %v22587_v16 }
 0xa45   : > { %16439 = vmatprep.subr.bf16.mxu0 %v16438_v40 }
 0xa47   : > { %14685 = vmatmul.mubr.f32.gmra.mrb[52].mxu0 %v22574_v22 }
 0xa48   : > { %14687 = vmatprep.mubr.f32.mxu0 %v22575_v56  ;;  %16441 = vmatpush3.bf16.msra.mxu0 %v16438_v40  ;;  %v9426_v40 = vld [vmem:[#allocation5 + $0x1a8] sm:$0xff] }
 0xa49   : > { %16443 = vmatprep.subr.bf16.mxu0 %v16442_v58  ;;  %v21470_v52 = vand.u32 4294901760, %v9426_v40 }
 0xa4b   : > { %14688 = vmatmul.mubr.f32.gmra.mrb[54].mxu0 %v22578_v28 }
 0xa4c   : > { %14690 = vmatprep.mubr.f32.mxu0 %v22579_v14  ;;  %16445 = vmatpush3.bf16.msra.mxu0 %v16442_v58 }
 0xa4d   : > { %16447 = vmatprep.subr.bf16.mxu0 %v16446_v31 }
 0xa4f   : > { %14691 = vmatmul.mubr.f32.gmra.mrb[56].mxu0 %v22584_v20 }
 0xa50   : > { %14693 = vmatprep.mubr.f32.mxu0 %v22585_v57  ;;  %16449 = vmatpush3.bf16.msra.mxu0 %v16446_v31 }
 0xa51   : > { %16451 = vmatprep.subr.bf16.mxu0 %v16450_v2 }
 0xa53   : > { %14694 = vmatmul.mubr.f32.gmra.mrb[58].mxu0 %v22590_v29 }
 0xa54   : > { %14696 = vmatprep.mubr.f32.mxu0 %v8337_v6  ;;  %16453 = vmatpush3.bf16.msra.mxu0 %v16450_v2 }
 0xa55   : > { %16455 = vmatprep.subr.bf16.mxu0 %v16454_v44 }
 0xa57   : > { %14697 = vmatmul.mubr.f32.gmra.mrb[60].mxu0 %v8347_v54 }
 0xa58   : > { %14699 = vmatprep.mubr.f32.mxu0 %v8357_v49  ;;  %16457 = vmatpush3.bf16.msra.mxu0 %v16454_v44 }
 0xa59   : > { %16459 = vmatprep.subr.bf16.mxu0 %v16458_v46 }
 0xa5b   : > { %14700 = vmatmul.mubr.f32.gmra.mrb[62].mxu0 %v8367_v39 }
 0xa5c   : > { %16461 = vmatpush3.bf16.msra.mxu0 %v16458_v46  ;;  %14734 = vmatprep.mubr.f32.mxu0 %v21054_v59 }
 0xa5d   : > { %16463 = vmatprep.subr.bf16.mxu0 %v20743_v36 }
 0xa5f   : > { %14735 = vmatmul.mubr.f32.vlgmr.msra.gmra.mrb[48].mxu0 %v21041_v47 }
 0xa60   : > { %14737 = vmatprep.mubr.f32.mxu0 %v21075_v51  ;;  %16465 = vmatpush3.bf16.msra.mxu0 %v20743_v36  ;;  %v9421_v36 = vld [vmem:[#allocation5 + $0x180] sm:$0xff] }
 0xa61   : > { %16467 = vmatprep.subr.bf16.mxu0 %v20750_v25 }
 0xa63   : > { %14738 = vmatmul.mubr.f32.gmra.mrb[50].mxu0 %v21070_v5 }
 0xa64   : > { %14740 = vmatprep.mubr.f32.mxu0 %v21111_v7  ;;  %16469 = vmatpush3.bf16.msra.mxu0 %v20750_v25  ;;  %v21425_v25 = vand.u32 4294901760, %v9421_v36 }
 0xa65   : > { %16471 = vmatprep.subr.bf16.mxu0 %v20769_v11 }
 0xa67   : > { %14741 = vmatmul.mubr.f32.gmra.mrb[52].mxu0 %v21101_v32 }
 0xa68   : > { %14743 = vmatprep.mubr.f32.mxu0 %v21133_v4  ;;  %16473 = vmatpush3.bf16.msra.mxu0 %v20769_v11 }
 0xa69   : > { %16475 = vmatprep.subr.bf16.mxu0 %v20787_v3 }
 0xa6b   : > { %14744 = vmatmul.mubr.f32.gmra.mrb[54].mxu0 %v21129_v62 }
 0xa6c   : > { %14746 = vmatprep.mubr.f32.mxu0 %v21160_v41  ;;  %16477 = vmatpush3.bf16.msra.mxu0 %v20787_v3  ;;  %v21428_v3 = vsub.f32 %v9421_v36, %v21425_v25 }
 0xa6d   : > { %16479 = vmatprep.subr.bf16.mxu0 %v20801_v9 }
 0xa6e   : > { %v22182_v11 = vand.u32 4294901760, %v21428_v3 }
 0xa6f   : > { %14747 = vmatmul.mubr.f32.gmra.mrb[56].mxu0 %v21156_v42 }
 0xa70   : > { %14749 = vmatprep.mubr.f32.mxu0 %v21180_v30  ;;  %16481 = vmatpush3.bf16.msra.mxu0 %v20801_v9  ;;  %v9521_v9 = vsub.f32 %v21428_v3, %v22182_v11  ;;  %v9429_v11 = vld [vmem:[#allocation5 + $0x1c0] sm:$0xff] }
 0xa71   : > { %16483 = vmatprep.subr.bf16.mxu0 %v20919_v13 }
 0xa73   : > { %14750 = vmatmul.mubr.f32.gmra.mrb[58].mxu0 %v21176_v19 }
 0xa74   : > { %14752 = vmatprep.mubr.f32.mxu0 %v21200_v61  ;;  %16485 = vmatpush3.bf16.msra.mxu0 %v20919_v13  ;;  %v9522_v13 = vand.u32 4294901760, %v9521_v9 }
 0xa75   : > { %16487 = vmatprep.subr.bf16.mxu0 %v22557_v50 }
 0xa76   : > { %14846 = vmatprep.mubr.f32.mxu1 %v9522_v13 }
 0xa77   : > { %14753 = vmatmul.mubr.f32.gmra.mrb[60].mxu0 %v21196_v10 }
 0xa78   : > { %14755 = vmatprep.mubr.f32.mxu0 %v21220_v24  ;;  %16489 = vmatpush3.bf16.msra.mxu0 %v22557_v50 }
 0xa79   : > { %16491 = vmatprep.subr.bf16.mxu0 %v22558_v45 }
 0xa7b   : > { %14756 = vmatmul.mubr.f32.gmra.mrb[62].mxu0 %v21216_v1 }
 0xa7c   : > { %16493 = vmatpush3.bf16.msra.mxu0 %v22558_v45  ;;  %14790 = vmatprep.mubr.f32.mxu0 %v21054_v59  ;;  %v21459_v45 = vand.u32 4294901760, %v9425_v23 }
 0xa7e   : > { %v21482_v26 = vsub.f32 %v9425_v23, %v21459_v45 }
 0xa7f   : > { %14791 = vmatmul.mubr.f32.vlgmr.msra.gmra.mrb[48].mxu0 %v21041_v47 }
 0xa80   : > { %14793 = vmatprep.mubr.f32.mxu0 %v21075_v51 }
 0xa83   : > { %14794 = vmatmul.mubr.f32.gmra.mrb[50].mxu0 %v21070_v5  ;;  %v9424_v5 = vld [vmem:[#allocation5 + $0x198] sm:$0xff] }
 0xa84   : > { %14796 = vmatprep.mubr.f32.mxu0 %v21111_v7  ;;  %v21442_v7 = vand.u32 4294901760, %v9424_v5 }
 0xa87   : > { %14797 = vmatmul.mubr.f32.gmra.mrb[52].mxu0 %v21101_v32  ;;  %v9422_v32 = vld [vmem:[#allocation5 + $0x188] sm:$0xff] }
 0xa88   : > { %14799 = vmatprep.mubr.f32.mxu0 %v21133_v4  ;;  %v21434_v47 = vand.u32 4294901760, %v9422_v32 }
 0xa8a   : > { %v21437_v59 = vsub.f32 %v9422_v32, %v21434_v47 }
 0xa8b   : > { %14800 = vmatmul.mubr.f32.gmra.mrb[54].mxu0 %v21129_v62 }
 0xa8c   : > { %14802 = vmatprep.mubr.f32.mxu0 %v21160_v41  ;;  %v22181_v62 = vand.u32 4294901760, %v21437_v59 }
 0xa8e   : > { %v21450_v34 = vsub.f32 %v21437_v59, %v22181_v62 }
 0xa8f   : > { %14803 = vmatmul.mubr.f32.gmra.mrb[56].mxu0 %v21156_v42 }
 0xa90   : > { %14805 = vmatprep.mubr.f32.mxu0 %v21180_v30 }
 0xa93   : > { %14806 = vmatmul.mubr.f32.gmra.mrb[58].mxu0 %v21176_v19 }
 0xa94   : > { %14808 = vmatprep.mubr.f32.mxu0 %v21200_v61 }
 0xa97   : > { %14809 = vmatmul.mubr.f32.gmra.mrb[60].mxu0 %v21196_v10  ;;  %v21453_v10 = vsub.f32 %v9424_v5, %v21442_v7 }
 0xa98   : > { %14811 = vmatprep.mubr.f32.mxu0 %v21220_v24  ;;  %v9423_v24 = vld [vmem:[#allocation5 + $0x190] sm:$0xff] }
 0xa99   : > { %v21439_v51 = vand.u32 4294901760, %v9423_v24  ;;  %v22179_v58 = vand.u32 4294901760, %v21453_v10 }
 0xa9b   : > { %14812 = vmatmul.mubr.f32.gmra.mrb[62].mxu0 %v21216_v1  ;;  %v21445_v19 = vsub.f32 %v9423_v24, %v21439_v51 }
 0xa9d   : > { %v22180_v39 = vand.u32 4294901760, %v21445_v19 }
 0xa9f   : > { %v21479_v27 = vsub.f32 %v21445_v19, %v22180_v39 }
 0xb52   : > { %v14792_v4 = vpop.f32.mrb[48].mxu0 }
 0xb53   : > { %v9441_v42 = vand.u32 4294901760, %v14792_v4  ;;  %v9326_v41 = vpop.f32.mrb[49].mxu0 }
 0xb54   : > { %v9438_v61 = vand.u32 4294901760, %v9326_v41 }
 0xb55   : > { %v9687_v30 = vsub.f32 %v14792_v4, %v9441_v42 }
 0xb56   : > { %v21455_v0 = vpack.c.bf16 %v9441_v42, %v9438_v61  ;;  %v9680_v1 = vsub.f32 %v9326_v41, %v9438_v61  ;;  %v14795_v54 = vpop.f32.mrb[50].mxu0  ;;  %v21497_v61 = vsub.f32 %v21453_v10, %v22179_v58 }
 0xb57   : > { %v9688_v6 = vand.u32 4294901760, %v9687_v30  ;;  %v9447_v8 = vand.u32 4294901760, %v14795_v54  ;;  %v9338_v21 = vpop.f32.mrb[51].mxu0 }
 0xb58   : > { %v9681_v49 = vand.u32 4294901760, %v9680_v1  ;;  %v9444_v50 = vand.u32 4294901760, %v9338_v21  ;;  %16495 = vmatprep.subr.bf16.mxu1 %v21455_v0  ;;  %v21461_v33 = vpack.c.bf16 %v9687_v30, %v9680_v1 }
 0xb59   : > { %v9689_v37 = vsub.f32 %v9687_v30, %v9688_v6  ;;  %v9701_v60 = vsub.f32 %v14795_v54, %v9447_v8  ;;  %16497 = vmatpush3.bf16.msra.mxu1 %v21455_v0  ;;  %v21500_v30 = vsub.f32 %v9426_v40, %v21470_v52 }
 0xb5a   : > { %v9682_v22 = vsub.f32 %v9680_v1, %v9681_v49  ;;  %v21466_v56 = vpack.c.bf16 %v9447_v8, %v9444_v50  ;;  %v9694_v35 = vsub.f32 %v9338_v21, %v9444_v50  ;;  %v14798_v15 = vpop.f32.mrb[52].mxu0  ;;  %v21468_v31 = vpack.c.bf16 %v9688_v6, %v9681_v49 }
 0xb5b   : > { %v9702_v28 = vand.u32 4294901760, %v9701_v60  ;;  %v9453_v14 = vand.u32 4294901760, %v14798_v15  ;;  %v9350_v55 = vpop.f32.mrb[53].mxu0  ;;  %v9690_v53 = vand.u32 4294901760, %v9689_v37 }
 0xb5c   : > { %22595 = vst [vmem:[#allocation18_spill] sm:$0xff] %v21468_v31  ;;  %v9695_v17 = vand.u32 4294901760, %v9694_v35  ;;  %v9450_v2 = vand.u32 4294901760, %v9350_v55  ;;  %16499 = vmatprep.subr.bf16.mxu1 %v21466_v56  ;;  %v9683_v20 = vand.u32 4294901760, %v9682_v22  ;;  %v21473_v57 = vpack.c.bf16 %v9701_v60, %v9694_v35 }
 0xb5d   : > { %v9703_v48 = vsub.f32 %v9701_v60, %v9702_v28  ;;  %v9715_v16 = vsub.f32 %v14798_v15, %v9453_v14  ;;  %16501 = vmatpush3.bf16.msra.mxu1 %v21466_v56 }
 0xb5e   : > { %v9696_v44 = vsub.f32 %v9694_v35, %v9695_v17  ;;  %v21484_v29 = vpack.c.bf16 %v9453_v14, %v9450_v2  ;;  %v9708_v12 = vsub.f32 %v9350_v55, %v9450_v2  ;;  %v14801_v18 = vpop.f32.mrb[54].mxu0  ;;  %v21486_v38 = vpack.c.bf16 %v9690_v53, %v9683_v20 }
 0xb5f   : > { %v9716_v43 = vand.u32 4294901760, %v9715_v16  ;;  %v9459_v46 = vand.u32 4294901760, %v14801_v18  ;;  %v9362_v36 = vpop.f32.mrb[55].mxu0  ;;  %v9704_v9 = vand.u32 4294901760, %v9703_v48  ;;  %v21488_v13 = vpack.c.bf16 %v9702_v28, %v9695_v17 }
 0xb60   : > { %v9709_v32 = vand.u32 4294901760, %v9708_v12  ;;  %v9456_v24 = vand.u32 4294901760, %v9362_v36  ;;  %16503 = vmatprep.subr.bf16.mxu1 %v21484_v29  ;;  %v9697_v5 = vand.u32 4294901760, %v9696_v44  ;;  %v21491_v4 = vpack.c.bf16 %v9715_v16, %v9708_v12  ;;  %v9427_v44 = vld [vmem:[#allocation5 + $0x1b0] sm:$0xff] }
 0xb61   : > { %22596 = vst [vmem:[#allocation29_spill] sm:$0xff] %v21488_v13  ;;  %v9717_v42 = vsub.f32 %v9715_v16, %v9716_v43  ;;  %v9729_v41 = vsub.f32 %v14801_v18, %v9459_v46  ;;  %16505 = vmatpush3.bf16.msra.mxu1 %v21484_v29 }
 0xb62   : > { %v9710_v23 = vsub.f32 %v9708_v12, %v9709_v32  ;;  %v21502_v1 = vpack.c.bf16 %v9459_v46, %v9456_v24  ;;  %v9722_v54 = vsub.f32 %v9362_v36, %v9456_v24  ;;  %v14804_v6 = vpop.f32.mrb[56].mxu0  ;;  %v21504_v8 = vpack.c.bf16 %v9704_v9, %v9697_v5 }
 0xb63   : > { %v9730_v21 = vand.u32 4294901760, %v9729_v41  ;;  %v9465_v49 = vand.u32 4294901760, %v14804_v6  ;;  %v9374_v50 = vpop.f32.mrb[57].mxu0  ;;  %v9718_v37 = vand.u32 4294901760, %v9717_v42  ;;  %v21506_v60 = vpack.c.bf16 %v9716_v43, %v9709_v32 }
 0xb64   : > { %v9723_v22 = vand.u32 4294901760, %v9722_v54  ;;  %v9462_v35 = vand.u32 4294901760, %v9374_v50  ;;  %16507 = vmatprep.subr.bf16.mxu1 %v21502_v1  ;;  %v9711_v15 = vand.u32 4294901760, %v9710_v23  ;;  %v21509_v40 = vpack.c.bf16 %v9729_v41, %v9722_v54 }
 0xb65   : > { %22597 = vst [vmem:[#allocation30_spill] sm:$0xff] %v21506_v60  ;;  %v9731_v28 = vsub.f32 %v9729_v41, %v9730_v21  ;;  %v9743_v14 = vsub.f32 %v14804_v6, %v9465_v49  ;;  %16509 = vmatpush3.bf16.msra.mxu1 %v21502_v1 }
 0xb66   : > { %v9724_v17 = vsub.f32 %v9722_v54, %v9723_v22  ;;  %v21514_v2 = vpack.c.bf16 %v9465_v49, %v9462_v35  ;;  %v9736_v20 = vsub.f32 %v9374_v50, %v9462_v35  ;;  %v14807_v48 = vpop.f32.mrb[58].mxu0  ;;  %v21516_v16 = vpack.c.bf16 %v9718_v37, %v9711_v15 }
 0xb67   : > { %v9744_v12 = vand.u32 4294901760, %v9743_v14  ;;  %v9471_v18 = vand.u32 4294901760, %v14807_v48  ;;  %v9386_v43 = vpop.f32.mrb[59].mxu0  ;;  %v9732_v46 = vand.u32 4294901760, %v9731_v28  ;;  %v21518_v36 = vpack.c.bf16 %v9730_v21, %v9723_v22  ;;  %v9428_v22 = vld [vmem:[#allocation5 + $0x1b8] sm:$0xff] }
 0xb68   : > { %v9737_v9 = vand.u32 4294901760, %v9736_v20  ;;  %v9468_v32 = vand.u32 4294901760, %v9386_v43  ;;  %16511 = vmatprep.subr.bf16.mxu1 %v21514_v2  ;;  %v9725_v24 = vand.u32 4294901760, %v9724_v17  ;;  %v21521_v5 = vpack.c.bf16 %v9743_v14, %v9736_v20 }
 0xb69   : > { %22598 = vst [vmem:[#allocation32_spill] sm:$0xff] %v21518_v36  ;;  %v9745_v42 = vsub.f32 %v9743_v14, %v9744_v12  ;;  %v9757_v41 = vsub.f32 %v14807_v48, %v9471_v18  ;;  %16513 = vmatpush3.bf16.msra.mxu1 %v21514_v2  ;;  %v21525_v54 = vand.u32 4294901760, %v9427_v44  ;;  %v22606_v36 = vand.u32 4294901760, %v21500_v30 }
 0xb6a   : > { %v9738_v6 = vsub.f32 %v9736_v20, %v9737_v9  ;;  %v21527_v49 = vpack.c.bf16 %v9471_v18, %v9468_v32  ;;  %v9750_v21 = vsub.f32 %v9386_v43, %v9468_v32  ;;  %v14810_v50 = vpop.f32.mrb[60].mxu0  ;;  %v21529_v37 = vpack.c.bf16 %v9732_v46, %v9725_v24 }
 0xb6b   : > { %v9758_v35 = vand.u32 4294901760, %v9757_v41  ;;  %v9477_v15 = vand.u32 4294901760, %v14810_v50  ;;  %v9398_v28 = vpop.f32.mrb[61].mxu0  ;;  %v9746_v17 = vand.u32 4294901760, %v9745_v42  ;;  %v21531_v14 = vpack.c.bf16 %v9744_v12, %v9737_v9 }
 0xb6c   : > { %v9751_v48 = vand.u32 4294901760, %v9750_v21  ;;  %v9474_v58 = vand.u32 4294901760, %v9398_v28  ;;  %16515 = vmatprep.subr.bf16.mxu1 %v21527_v49  ;;  %v9739_v39 = vand.u32 4294901760, %v9738_v6  ;;  %v21534_v62 = vpack.c.bf16 %v9757_v41, %v9750_v21 }
 0xb6d   : > { %22599 = vst [vmem:[#allocation34_spill] sm:$0xff] %v21531_v14  ;;  %v9759_v20 = vsub.f32 %v9757_v41, %v9758_v35  ;;  %v9771_v18 = vsub.f32 %v14810_v50, %v9477_v15  ;;  %16517 = vmatpush3.bf16.msra.mxu1 %v21527_v49  ;;  %v21538_v43 = vsub.f32 %v9427_v44, %v21525_v54  ;;  %v21540_v46 = vand.u32 4294901760, %v9428_v22 }
 0xb6e   : > { %v9752_v32 = vsub.f32 %v9750_v21, %v9751_v48  ;;  %v21542_v24 = vpack.c.bf16 %v9477_v15, %v9474_v58  ;;  %v9764_v12 = vsub.f32 %v9398_v28, %v9474_v58  ;;  %v14813_v9 = vpop.f32.mrb[62].mxu0  ;;  %v21544_v42 = vpack.c.bf16 %v9746_v17, %v9739_v39  ;;  %v9430_v28 = vld [vmem:[#allocation5 + $0x1c8] sm:$0xff] }
 0xb6f   : > { %v9772_v6 = vand.u32 4294901760, %v9771_v18  ;;  %v9483_v55 = vand.u32 4294901760, %v14813_v9  ;;  %v9410_v63 = vpop.f32.mrb[63].mxu0  ;;  %v9760_v41 = vand.u32 4294901760, %v9759_v20  ;;  %v21546_v50 = vpack.c.bf16 %v9758_v35, %v9751_v48 }
 0xb70   : > { %22600 = vst [vmem:[#allocation21_spill] sm:$0xff] %v21542_v24  ;;  %v9765_v23 = vand.u32 4294901760, %v9764_v12  ;;  %v9480_v53 = vand.u32 4294901760, %v9410_v63  ;;  %16519 = vmatprep.subr.bf16.mxu1 %v21542_v24  ;;  %v9753_v44 = vand.u32 4294901760, %v9752_v32  ;;  %v21549_v14 = vpack.c.bf16 %v9771_v18, %v9764_v12 }
 0xb71   : > { %22601 = vst [vmem:[#allocation24_spill] sm:$0xff] %v21546_v50  ;;  %v9773_v21 = vsub.f32 %v9771_v18, %v9772_v6  ;;  %v9785_v15 = vsub.f32 %v14813_v9, %v9483_v55  ;;  %16521 = vmatpush3.bf16.msra.mxu1 %v21542_v24  ;;  %v21553_v39 = vsub.f32 %v9428_v22, %v21540_v46  ;;  %v21555_v58 = vand.u32 4294901760, %v9429_v11  ;;  %v9431_v50 = vld [vmem:[#allocation5 + $0x1d0] sm:$0xff] }
 0xb72   : > { %v9766_v17 = vsub.f32 %v9764_v12, %v9765_v23  ;;  %v21557_v35 = vpack.c.bf16 %v9483_v55, %v9480_v53  ;;  %v9778_v48 = vsub.f32 %v9410_v63, %v9480_v53  ;;  %v21559_v20 = vpack.c.bf16 %v9760_v41, %v9753_v44 }
 0xb73   : > { %v9786_v32 = vand.u32 4294901760, %v9785_v15  ;;  %v9774_v18 = vand.u32 4294901760, %v9773_v21  ;;  %v21562_v9 = vpack.c.bf16 %v9772_v6, %v9765_v23  ;;  %v21565_v22 = vand.u32 4294901760, %v9430_v28  ;;  %v9432_v6 = vld [vmem:[#allocation5 + $0x1d8] sm:$0xff]  ;;  %v9433_v21 = vld [vmem:[#allocation5 + $0x1e0] sm:$0xff] }
 0xb74   : > { %22602 = vst [vmem:[#allocation25_spill] sm:$0xff] %v21557_v35  ;;  %v9779_v60 = vand.u32 4294901760, %v9778_v48  ;;  %16523 = vmatprep.subr.bf16.mxu1 %v21557_v35  ;;  %v9767_v13 = vand.u32 4294901760, %v9766_v17  ;;  %v21567_v31 = vpack.c.bf16 %v9785_v15, %v9778_v48  ;;  %v22604_v63 = vand.u32 4294901760, %v21482_v26 }
 0xb75   : > { %22603 = vst [vmem:[#allocation31_spill] sm:$0xff] %v21562_v9  ;;  %v9787_v55 = vsub.f32 %v9785_v15, %v9786_v32  ;;  %16525 = vmatpush3.bf16.msra.mxu1 %v21557_v35  ;;  %v21574_v12 = vsub.f32 %v9429_v11, %v21555_v58  ;;  %v21576_v23 = vand.u32 4294901760, %v9431_v50  ;;  %v9552_v15 = vand.u32 4294901760, %v21497_v61 }
 0xb76   : > { %v9561_v53 = vsub.f32 %v21482_v26, %v22604_v63  ;;  %v9780_v41 = vsub.f32 %v9778_v48, %v9779_v60  ;;  %16527 = vmatprep.subr.bf16.mxu1 %v21486_v38  ;;  %v21579_v44 = vpack.c.bf16 %v9774_v18, %v9767_v13  ;;  %v21581_v17 = vpack.c.bf16 %v9786_v32, %v9779_v60 }
 0xb77   : > { %v9571_v63 = vsub.f32 %v21500_v30, %v22606_v36  ;;  %v22195_v11 = vand.u32 4294901760, %v21553_v39  ;;  %v9788_v9 = vand.u32 4294901760, %v9787_v55  ;;  %v22607_v24 = vand.u32 4294901760, %v21450_v34  ;;  %v9434_v55 = vld [vmem:[#allocation5 + $0x1e8] sm:$0xff] }
 0xb78   : > { %22605 = vst [vmem:[#allocation12_spill] sm:$0xff] %v21581_v17  ;;  %v9781_v35 = vand.u32 4294901760, %v9780_v41  ;;  %v22608_v48 = vand.u32 4294901760, %v21538_v43  ;;  %v21594_v60 = vsub.f32 %v9430_v28, %v21565_v22  ;;  %v21596_v32 = vand.u32 4294901760, %v9432_v6  ;;  %v9435_v41 = vld [vmem:[#allocation5 + $0x1f0] sm:$0xff] }
 0xb79   : > { %14847 = vmatmul.mubr.f32.vlgmr.msra.gmra.mrb[48].mxu1 %v22607_v24  ;;  %v22609_v61 = vand.u32 4294901760, %v21479_v27  ;;  %v9562_v36 = vand.u32 4294901760, %v9561_v53  ;;  %v22194_v18 = vand.u32 4294901760, %v21574_v12  ;;  %v21603_v34 = vsub.f32 %v9431_v50, %v21576_v23 }
 0xb7a   : > { %v9581_v13 = vsub.f32 %v21538_v43, %v22608_v48  ;;  %16529 = vmatpush3.bf16.msra.mxu1 %v21486_v38  ;;  %v21605_v24 = vand.u32 4294901760, %v9433_v21  ;;  %v16554_v28 = vpack.c.bf16 %v9788_v9, %v9781_v35  ;;  %v9572_v48 = vand.u32 4294901760, %v9571_v63 }
 0xb7b   : > { %14849 = vmatprep.mubr.f32.mxu1 %v22609_v61  ;;  %16531 = vmatprep.subr.bf16.mxu1 %v21504_v8  ;;  %v9591_v38 = vsub.f32 %v21553_v39, %v22195_v11  ;;  %v22197_v53 = vand.u32 4294901760, %v21594_v60  ;;  %v21613_v61 = vsub.f32 %v9432_v6, %v21596_v32  ;;  %v21615_v50 = vand.u32 4294901760, %v9434_v55 }
 0xb7c   : > { %v9582_v27 = vand.u32 4294901760, %v9581_v13  ;;  %v9601_v35 = vsub.f32 %v21574_v12, %v22194_v18  ;;  %v9620_v9 = vand.u32 4294901760, %v21603_v34  ;;  %v21623_v63 = vsub.f32 %v9433_v21, %v21605_v24  ;;  %v9436_v13 = vld [vmem:[#allocation5 + $0x1f8] sm:$0xff] }
 0xb7d   : > { %14850 = vmatmul.mubr.f32.gmra.mrb[50].mxu1 %v9552_v15  ;;  %v21625_v15 = vand.u32 4294901760, %v9435_v41  ;;  %v9592_v6 = vand.u32 4294901760, %v9591_v38  ;;  %v21633_v18 = vsub.f32 %v9434_v55, %v21615_v50  ;;  %v21635_v11 = vand.u32 4294901760, %v9436_v13 }
 0xb7e   : > { %16533 = vmatpush3.bf16.msra.mxu1 %v21504_v8  ;;  %14852 = vmatprep.mubr.f32.mxu1 %v9562_v36  ;;  %v9611_v8 = vsub.f32 %v21594_v60, %v22197_v53  ;;  %v22198_v36 = vand.u32 4294901760, %v21613_v61  ;;  %v9602_v21 = vand.u32 4294901760, %v9601_v35  ;;  %v9621_v38 = vsub.f32 %v21603_v34, %v9620_v9 }
 0xb7f   : > { %16535 = vmatprep.subr.bf16.mxu1 %v21516_v16  ;;  %v21643_v17 = vsub.f32 %v9435_v41, %v21625_v15 }
 0xb80   : > { %v9612_v55 = vand.u32 4294901760, %v9611_v8  ;;  %v9631_v53 = vsub.f32 %v21613_v61, %v22198_v36  ;;  %v9622_v35 = vand.u32 4294901760, %v9621_v38 }
 0xb81   : > { %14853 = vmatmul.mubr.f32.gmra.mrb[52].mxu1 %v9572_v48  ;;  %v9640_v48 = vand.u32 4294901760, %v21623_v63 }
 0xb82   : > { %16537 = vmatpush3.bf16.msra.mxu1 %v21516_v16  ;;  %14855 = vmatprep.mubr.f32.mxu1 %v9582_v27  ;;  %v9650_v16 = vand.u32 4294901760, %v21633_v18  ;;  %v21651_v27 = vsub.f32 %v9436_v13, %v21635_v11  ;;  %v9632_v8 = vand.u32 4294901760, %v9631_v53 }
 0xb83   : > { %16539 = vmatprep.subr.bf16.mxu1 %v21529_v37  ;;  %v9641_v41 = vsub.f32 %v21623_v63, %v9640_v48 }
 0xb84   : > { %v9651_v36 = vsub.f32 %v21633_v18, %v9650_v16  ;;  %v9670_v13 = vand.u32 4294901760, %v21651_v27 }
 0xb85   : > { %14856 = vmatmul.mubr.f32.gmra.mrb[54].mxu1 %v9592_v6  ;;  %v9660_v6 = vand.u32 4294901760, %v21643_v17 }
 0xb86   : > { %16541 = vmatpush3.bf16.msra.mxu1 %v21529_v37  ;;  %14858 = vmatprep.mubr.f32.mxu1 %v9602_v21  ;;  %v9642_v37 = vand.u32 4294901760, %v9641_v41  ;;  %v9652_v38 = vand.u32 4294901760, %v9651_v36  ;;  %v9671_v53 = vsub.f32 %v21651_v27, %v9670_v13 }
 0xb87   : > { %16543 = vmatprep.subr.bf16.mxu1 %v21544_v42  ;;  %v9661_v21 = vsub.f32 %v21643_v17, %v9660_v6 }
 0xb89   : > { %14859 = vmatmul.mubr.f32.gmra.mrb[56].mxu1 %v9612_v55  ;;  %v9662_v55 = vand.u32 4294901760, %v9661_v21 }
 0xb8a   : > { %16545 = vmatpush3.bf16.msra.mxu1 %v21544_v42  ;;  %14861 = vmatprep.mubr.f32.mxu1 %v9622_v35  ;;  %v9672_v42 = vand.u32 4294901760, %v9671_v53 }
 0xb8b   : > { %16547 = vmatprep.subr.bf16.mxu1 %v21559_v20 }
 0xb8d   : > { %14862 = vmatmul.mubr.f32.gmra.mrb[58].mxu1 %v9632_v8 }
 0xb8e   : > { %16549 = vmatpush3.bf16.msra.mxu1 %v21559_v20  ;;  %14864 = vmatprep.mubr.f32.mxu1 %v9642_v37  ;;  %v22619_v20 = vld [vmem:[#allocation30_spill] sm:$0xff] }
 0xb8f   : > { %16551 = vmatprep.subr.bf16.mxu1 %v21579_v44 }
 0xb91   : > { %14865 = vmatmul.mubr.f32.gmra.mrb[60].mxu1 %v9652_v38 }
 0xb92   : > { %16553 = vmatpush3.bf16.msra.mxu1 %v21579_v44  ;;  %14867 = vmatprep.mubr.f32.mxu1 %v9662_v55  ;;  %v22622_v44 = vld [vmem:[#allocation32_spill] sm:$0xff] }
 0xb93   : > { %16555 = vmatprep.subr.bf16.mxu1 %v16554_v28 }
 0xb95   : > { %14868 = vmatmul.mubr.f32.gmra.mrb[62].mxu1 %v9672_v42 }
 0xb96   : > { %16557 = vmatpush3.bf16.msra.mxu1 %v16554_v28  ;;  %14902 = vmatprep.mubr.f32.mxu1 %v21425_v25  ;;  %v22625_v28 = vld [vmem:[#allocation34_spill] sm:$0xff] }
 0xb97   : > { %16559 = vmatprep.subr.bf16.mxu1 %v21461_v33 }
 0xb99   : > { %14903 = vmatmul.mubr.f32.vlgmr.msra.gmra.mrb[48].mxu1 %v21434_v47 }
 0xb9a   : > { %16561 = vmatpush3.bf16.msra.mxu1 %v21461_v33  ;;  %14905 = vmatprep.mubr.f32.mxu1 %v21439_v51  ;;  %v22611_v33 = vld [vmem:[#allocation25_spill] sm:$0xff] }
 0xb9b   : > { %16563 = vmatprep.subr.bf16.mxu1 %v21473_v57 }
 0xb9d   : > { %14906 = vmatmul.mubr.f32.gmra.mrb[50].mxu1 %v21442_v7 }
 0xb9e   : > { %16565 = vmatpush3.bf16.msra.mxu1 %v21473_v57  ;;  %14908 = vmatprep.mubr.f32.mxu1 %v21459_v45  ;;  %v22613_v57 = vld [vmem:[#allocation18_spill] sm:$0xff] }
 0xb9f   : > { %16567 = vmatprep.subr.bf16.mxu1 %v21491_v4 }
 0xba1   : > { %14909 = vmatmul.mubr.f32.gmra.mrb[52].mxu1 %v21470_v52 }
 0xba2   : > { %16569 = vmatpush3.bf16.msra.mxu1 %v21491_v4  ;;  %14911 = vmatprep.mubr.f32.mxu1 %v21525_v54  ;;  %v22614_v4 = vand.u32 4294901760, %v21437_v59 }
 0xba3   : > { %16571 = vmatprep.subr.bf16.mxu1 %v21509_v40 }
 0xba5   : > { %14912 = vmatmul.mubr.f32.gmra.mrb[54].mxu1 %v21540_v46 }
 0xba6   : > { %16573 = vmatpush3.bf16.msra.mxu1 %v21509_v40  ;;  %14914 = vmatprep.mubr.f32.mxu1 %v21555_v58  ;;  %v22615_v40 = vand.u32 4294901760, %v21445_v19 }
 0xba7   : > { %16575 = vmatprep.subr.bf16.mxu1 %v21521_v5 }
 0xba9   : > { %14915 = vmatmul.mubr.f32.gmra.mrb[56].mxu1 %v21565_v22 }
 0xbaa   : > { %16577 = vmatpush3.bf16.msra.mxu1 %v21521_v5  ;;  %14917 = vmatprep.mubr.f32.mxu1 %v21576_v23  ;;  %v22616_v5 = vld [vmem:[#allocation29_spill] sm:$0xff] }
 0xbab   : > { %16579 = vmatprep.subr.bf16.mxu1 %v21534_v62 }
 0xbad   : > { %14918 = vmatmul.mubr.f32.gmra.mrb[58].mxu1 %v21596_v32 }
 0xbae   : > { %16581 = vmatpush3.bf16.msra.mxu1 %v21534_v62  ;;  %14920 = vmatprep.mubr.f32.mxu1 %v21605_v24  ;;  %v22610_v62 = vld [vmem:[#allocation21_spill] sm:$0xff] }
 0xbaf   : > { %16583 = vmatprep.subr.bf16.mxu1 %v21549_v14 }
 0xbb1   : > { %14921 = vmatmul.mubr.f32.gmra.mrb[60].mxu1 %v21615_v50 }
 0xbb2   : > { %16585 = vmatpush3.bf16.msra.mxu1 %v21549_v14  ;;  %14923 = vmatprep.mubr.f32.mxu1 %v21625_v15  ;;  %v22617_v14 = vand.u32 4294901760, %v21453_v10 }
 0xbb3   : > { %16587 = vmatprep.subr.bf16.mxu1 %v21567_v31 }
 0xbb5   : > { %14924 = vmatmul.mubr.f32.gmra.mrb[62].mxu1 %v21635_v11 }
 0xbb6   : > { %16589 = vmatpush3.bf16.msra.mxu1 %v21567_v31  ;;  %14958 = vmatprep.mubr.f32.mxu1 %v21428_v3  ;;  %v22612_v31 = vand.u32 4294901760, %v21428_v3  ;;  %v22618_v3 = vand.u32 4294901760, %v21482_v26 }
 0xbb7   : > { %16591 = vmatprep.subr.bf16.mxu1 %v21455_v0 }
 0xbb9   : > { %14959 = vmatmul.mubr.f32.vlgmr.msra.gmra.mrb[48].mxu1 %v21437_v59  ;;  %v22620_v59 = vand.u32 4294901760, %v21500_v30 }
 0xbba   : > { %16593 = vmatpush3.bf16.msra.mxu1 %v21455_v0  ;;  %14961 = vmatprep.mubr.f32.mxu1 %v21445_v19  ;;  %v22621_v19 = vand.u32 4294901760, %v21538_v43 }
 0xbbb   : > { %16595 = vmatprep.subr.bf16.mxu1 %v21466_v56 }
 0xbbd   : > { %14962 = vmatmul.mubr.f32.gmra.mrb[50].mxu1 %v21453_v10  ;;  %v22623_v10 = vand.u32 4294901760, %v21553_v39 }
 0xbbe   : > { %16597 = vmatpush3.bf16.msra.mxu1 %v21466_v56  ;;  %14964 = vmatprep.mubr.f32.mxu1 %v21482_v26  ;;  %v22624_v26 = vand.u32 4294901760, %v21574_v12 }
 0xbbf   : > { %16599 = vmatprep.subr.bf16.mxu1 %v21484_v29 }
 0xbc1   : > { %14965 = vmatmul.mubr.f32.gmra.mrb[52].mxu1 %v21500_v30  ;;  %v22626_v30 = vand.u32 4294901760, %v21594_v60 }
 0xbc2   : > { %16601 = vmatpush3.bf16.msra.mxu1 %v21484_v29  ;;  %14967 = vmatprep.mubr.f32.mxu1 %v21538_v43  ;;  %v22627_v43 = vld [vmem:[#allocation24_spill] sm:$0xff] }
 0xbc3   : > { %16603 = vmatprep.subr.bf16.mxu1 %v21502_v1 }
 0xbc5   : > { %14968 = vmatmul.mubr.f32.gmra.mrb[54].mxu1 %v21553_v39  ;;  %v22628_v39 = vand.u32 4294901760, %v21613_v61 }
 0xbc6   : > { %16605 = vmatpush3.bf16.msra.mxu1 %v21502_v1  ;;  %14970 = vmatprep.mubr.f32.mxu1 %v21574_v12  ;;  %v22629_v12 = vld [vmem:[#allocation31_spill] sm:$0xff] }
 0xbc7   : > { %16607 = vmatprep.subr.bf16.mxu1 %v21514_v2 }
 0xbc9   : > { %14971 = vmatmul.mubr.f32.gmra.mrb[56].mxu1 %v21594_v60  ;;  %v22630_v60 = vld [vmem:[#allocation12_spill] sm:$0xff] }
 0xbca   : > { %16609 = vmatpush3.bf16.msra.mxu1 %v21514_v2  ;;  %14973 = vmatprep.mubr.f32.mxu1 %v21603_v34 }
 0xbcb   : > { %16611 = vmatprep.subr.bf16.mxu1 %v21527_v49 }
 0xbcd   : > { %14974 = vmatmul.mubr.f32.gmra.mrb[58].mxu1 %v21613_v61 }
 0xbce   : > { %16613 = vmatpush3.bf16.msra.mxu1 %v21527_v49  ;;  %14976 = vmatprep.mubr.f32.mxu1 %v21623_v63 }
 0xbcf   : > { %16615 = vmatprep.subr.bf16.mxu1 %v22610_v62 }
 0xbd1   : > { %14977 = vmatmul.mubr.f32.gmra.mrb[60].mxu1 %v21633_v18 }
 0xbd2   : > { %16617 = vmatpush3.bf16.msra.mxu1 %v22610_v62  ;;  %14979 = vmatprep.mubr.f32.mxu1 %v21643_v17 }
 0xbd3   : > { %16619 = vmatprep.subr.bf16.mxu1 %v22611_v33 }
 0xbd5   : > { %14980 = vmatmul.mubr.f32.gmra.mrb[62].mxu1 %v21651_v27 }
 0xbd6   : > { %16621 = vmatpush3.bf16.msra.mxu1 %v22611_v33  ;;  %15014 = vmatprep.mubr.f32.mxu1 %v22612_v31 }
 0xbd7   : > { %16623 = vmatprep.subr.bf16.mxu1 %v22613_v57 }
 0xbd9   : > { %15015 = vmatmul.mubr.f32.vlgmr.msra.gmra.mrb[48].mxu1 %v22614_v4 }
 0xbda   : > { %16625 = vmatpush3.bf16.msra.mxu1 %v22613_v57  ;;  %15017 = vmatprep.mubr.f32.mxu1 %v22615_v40 }
 0xbdb   : > { %16627 = vmatprep.subr.bf16.mxu1 %v22616_v5 }
 0xbdd   : > { %15018 = vmatmul.mubr.f32.gmra.mrb[50].mxu1 %v22617_v14 }
 0xbde   : > { %16629 = vmatpush3.bf16.msra.mxu1 %v22616_v5  ;;  %15020 = vmatprep.mubr.f32.mxu1 %v22618_v3 }
 0xbdf   : > { %16631 = vmatprep.subr.bf16.mxu1 %v22619_v20 }
 0xbe1   : > { %15021 = vmatmul.mubr.f32.gmra.mrb[52].mxu1 %v22620_v59 }
 0xbe2   : > { %16633 = vmatpush3.bf16.msra.mxu1 %v22619_v20  ;;  %15023 = vmatprep.mubr.f32.mxu1 %v22621_v19 }
 0xbe3   : > { %16635 = vmatprep.subr.bf16.mxu1 %v22622_v44 }
 0xbe5   : > { %15024 = vmatmul.mubr.f32.gmra.mrb[54].mxu1 %v22623_v10 }
 0xbe6   : > { %16637 = vmatpush3.bf16.msra.mxu1 %v22622_v44  ;;  %15026 = vmatprep.mubr.f32.mxu1 %v22624_v26 }
 0xbe7   : > { %16639 = vmatprep.subr.bf16.mxu1 %v22625_v28 }
 0xbe9   : > { %15027 = vmatmul.mubr.f32.gmra.mrb[56].mxu1 %v22626_v30 }
 0xbea   : > { %16641 = vmatpush3.bf16.msra.mxu1 %v22625_v28  ;;  %15029 = vmatprep.mubr.f32.mxu1 %v9620_v9 }
 0xbeb   : > { %16643 = vmatprep.subr.bf16.mxu1 %v22627_v43 }
 0xbed   : > { %15030 = vmatmul.mubr.f32.gmra.mrb[58].mxu1 %v22628_v39 }
 0xbee   : > { %16645 = vmatpush3.bf16.msra.mxu1 %v22627_v43  ;;  %15032 = vmatprep.mubr.f32.mxu1 %v9640_v48 }
 0xbef   : > { %16647 = vmatprep.subr.bf16.mxu1 %v22629_v12 }
 0xbf1   : > { %15033 = vmatmul.mubr.f32.gmra.mrb[60].mxu1 %v9650_v16 }
 0xbf2   : > { %16649 = vmatpush3.bf16.msra.mxu1 %v22629_v12  ;;  %15035 = vmatprep.mubr.f32.mxu1 %v9660_v6 }
 0xbf3   : > { %16651 = vmatprep.subr.bf16.mxu1 %v22630_v60 }
 0xbf5   : > { %15036 = vmatmul.mubr.f32.gmra.mrb[62].mxu1 %v9670_v13 }
 0xbf6   : > { %16653 = vmatpush3.bf16.msra.mxu1 %v22630_v60  ;;  %15070 = vmatprep.mubr.f32.mxu1 %v21425_v25 }
 0xbf7   : > { %16655 = vmatprep.subr.bf16.mxu1 %v21455_v0 }
 0xbf9   : > { %15071 = vmatmul.mubr.f32.vlgmr.msra.gmra.mrb[48].mxu1 %v21434_v47 }
 0xbfa   : > { %16657 = vmatpush3.bf16.msra.mxu1 %v21455_v0  ;;  %15073 = vmatprep.mubr.f32.mxu1 %v21439_v51 }
 0xbfb   : > { %16659 = vmatprep.subr.bf16.mxu1 %v21466_v56 }
 0xbfd   : > { %15074 = vmatmul.mubr.f32.gmra.mrb[50].mxu1 %v21442_v7 }
 0xbfe   : > { %16661 = vmatpush3.bf16.msra.mxu1 %v21466_v56  ;;  %15076 = vmatprep.mubr.f32.mxu1 %v21459_v45 }
 0xbff   : > { %16663 = vmatprep.subr.bf16.mxu1 %v21484_v29 }
 0xc01   : > { %15077 = vmatmul.mubr.f32.gmra.mrb[52].mxu1 %v21470_v52 }
 0xc02   : > { %16665 = vmatpush3.bf16.msra.mxu1 %v21484_v29  ;;  %15079 = vmatprep.mubr.f32.mxu1 %v21525_v54 }
 0xc03   : > { %16667 = vmatprep.subr.bf16.mxu1 %v21502_v1 }
 0xc05   : > { %15080 = vmatmul.mubr.f32.gmra.mrb[54].mxu1 %v21540_v46 }
 0xc06   : > { %16669 = vmatpush3.bf16.msra.mxu1 %v21502_v1  ;;  %15082 = vmatprep.mubr.f32.mxu1 %v21555_v58 }
 0xc07   : > { %16671 = vmatprep.subr.bf16.mxu1 %v21514_v2 }
 0xc09   : > { %15083 = vmatmul.mubr.f32.gmra.mrb[56].mxu1 %v21565_v22 }
 0xc0a   : > { %16673 = vmatpush3.bf16.msra.mxu1 %v21514_v2  ;;  %15085 = vmatprep.mubr.f32.mxu1 %v21576_v23 }
 0xc0b   : > { %16675 = vmatprep.subr.bf16.mxu1 %v21527_v49 }
 0xc0d   : > { %15086 = vmatmul.mubr.f32.gmra.mrb[58].mxu1 %v21596_v32 }
 0xc0e   : > { %16677 = vmatpush3.bf16.msra.mxu1 %v21527_v49  ;;  %15088 = vmatprep.mubr.f32.mxu1 %v21605_v24 }
 0xc0f   : > { %16679 = vmatprep.subr.bf16.mxu1 %v22610_v62 }
 0xc11   : > { %15089 = vmatmul.mubr.f32.gmra.mrb[60].mxu1 %v21615_v50 }
 0xc12   : > { %16681 = vmatpush3.bf16.msra.mxu1 %v22610_v62  ;;  %15091 = vmatprep.mubr.f32.mxu1 %v21625_v15 }
 0xc13   : > { %16683 = vmatprep.subr.bf16.mxu1 %v22611_v33 }
 0xc15   : > { %15092 = vmatmul.mubr.f32.gmra.mrb[62].mxu1 %v21635_v11 }
 0xc16   : > { %16685 = vmatpush3.bf16.msra.mxu1 %v22611_v33  ;;  %15126 = vmatprep.mubr.f32.mxu1 %v21425_v25 }
 0xc19   : > { %15127 = vmatmul.mubr.f32.vlgmr.msra.gmra.mrb[48].mxu1 %v21434_v47 }
 0xc1a   : > { %15129 = vmatprep.mubr.f32.mxu1 %v21439_v51 }
 0xc1d   : > { %15130 = vmatmul.mubr.f32.gmra.mrb[50].mxu1 %v21442_v7 }
 0xc1e   : > { %15132 = vmatprep.mubr.f32.mxu1 %v21459_v45 }
 0xc21   : > { %15133 = vmatmul.mubr.f32.gmra.mrb[52].mxu1 %v21470_v52 }
 0xc22   : > { %15135 = vmatprep.mubr.f32.mxu1 %v21525_v54 }
 0xc25   : > { %15136 = vmatmul.mubr.f32.gmra.mrb[54].mxu1 %v21540_v46 }
 0xc26   : > { %15138 = vmatprep.mubr.f32.mxu1 %v21555_v58 }
 0xc29   : > { %15139 = vmatmul.mubr.f32.gmra.mrb[56].mxu1 %v21565_v22 }
 0xc2a   : > { %15141 = vmatprep.mubr.f32.mxu1 %v21576_v23 }
 0xc2d   : > { %15142 = vmatmul.mubr.f32.gmra.mrb[58].mxu1 %v21596_v32 }
 0xc2e   : > { %15144 = vmatprep.mubr.f32.mxu1 %v21605_v24 }
 0xc31   : > { %15145 = vmatmul.mubr.f32.gmra.mrb[60].mxu1 %v21615_v50 }
 0xc32   : > { %15147 = vmatprep.mubr.f32.mxu1 %v21625_v15 }
 0xc35   : > { %15148 = vmatmul.mubr.f32.gmra.mrb[62].mxu1 %v21635_v11 }
 0xcec   : > { %v15128_v25 = vpop.f32.mrb[48].mxu1 }
 0xced   : > { %10907 = vst [vmem:[%s17819_s18 + $0x208] sm:$0xff] %v15128_v25  ;;  %v10629_v47 = vpop.f32.mrb[49].mxu1 }
 0xcee   : > { %10906 = vst [vmem:[%s17819_s18 + $0x200] sm:$0xff] %v10629_v47 }
 0xcf0   : > { %v15131_v51 = vpop.f32.mrb[50].mxu1 }
 0xcf1   : > { %10909 = vst [vmem:[%s17819_s18 + $0x218] sm:$0xff] %v15131_v51  ;;  %v10641_v7 = vpop.f32.mrb[51].mxu1 }
 0xcf2   : > { %10908 = vst [vmem:[%s17819_s18 + $0x210] sm:$0xff] %v10641_v7 }
 0xcf4   : > { %v15134_v0 = vpop.f32.mrb[52].mxu1 }
 0xcf5   : > { %10911 = vst [vmem:[%s17819_s18 + $0x228] sm:$0xff] %v15134_v0  ;;  %v10653_v45 = vpop.f32.mrb[53].mxu1 }
 0xcf6   : > { %10910 = vst [vmem:[%s17819_s18 + $0x220] sm:$0xff] %v10653_v45 }
 0xcf8   : > { %v15137_v56 = vpop.f32.mrb[54].mxu1 }
 0xcf9   : > { %10913 = vst [vmem:[%s17819_s18 + $0x238] sm:$0xff] %v15137_v56  ;;  %v10665_v52 = vpop.f32.mrb[55].mxu1 }
 0xcfa   : > { %10912 = vst [vmem:[%s17819_s18 + $0x230] sm:$0xff] %v10665_v52 }
 0xcfc   : > { %v15140_v29 = vpop.f32.mrb[56].mxu1 }
 0xcfd   : > { %10915 = vst [vmem:[%s17819_s18 + $0x248] sm:$0xff] %v15140_v29  ;;  %v10677_v1 = vpop.f32.mrb[57].mxu1 }
 0xcfe   : > { %10914 = vst [vmem:[%s17819_s18 + $0x240] sm:$0xff] %v10677_v1 }
 0xd00   : > { %v15143_v2 = vpop.f32.mrb[58].mxu1 }
 0xd01   : > { %10917 = vst [vmem:[%s17819_s18 + $0x258] sm:$0xff] %v15143_v2  ;;  %v10689_v54 = vpop.f32.mrb[59].mxu1 }
 0xd02   : > { %10916 = vst [vmem:[%s17819_s18 + $0x250] sm:$0xff] %v10689_v54 }
 0xd04   : > { %v15146_v49 = vpop.f32.mrb[60].mxu1 }
 0xd05   : > { %10919 = vst [vmem:[%s17819_s18 + $0x268] sm:$0xff] %v15146_v49  ;;  %v10701_v46 = vpop.f32.mrb[61].mxu1 }
 0xd06   : > { %10918 = vst [vmem:[%s17819_s18 + $0x260] sm:$0xff] %v10701_v46 }
 0xd08   : > { %v15149_v58 = vpop.f32.mrb[62].mxu1 }
 0xd09   : > { %10921 = vst [vmem:[%s17819_s18 + $0x278] sm:$0xff] %v15149_v58  ;;  %v10713_v22 = vpop.f32.mrb[63].mxu1 }
 0xd0a   : > { %10920 = vst [vmem:[%s17819_s18 + $0x270] sm:$0xff] %v10713_v22 }
 0xd0b   : > { %17498 = shalt.err (!%p17495_p1)
}
 0xd0c   : > { %s17499_s17 = scalar_lea.hbm %s21853_s28, 10240  ;;  %s17503_s30 = scalar_lea.hbm %s21904_s3, 20480 }
 0xd0d   : > { %p17500_p13 = scmp.ne.s32.totalorder %s21853_s28, %s17499_s17  ;;  %p17504_p4 = scmp.lt.u32.totalorder %s21853_s28, %s21904_s3 }
 0xd0e   : > { %p17505_p5 = scmp.lt.u32.totalorder %s17503_s30, %s17499_s17  ;;  %p17507_p11 = scmp.lt.u32.totalorder %s17499_s17, %s21853_s28 }
 0xd0f   : > { %p17501_p6 = pnand %p17500_p13, %p22631_p0 }
 0xd10   : > { %p17506_p8 = por %p17505_p5, %p17504_p4 }
 0xd11   : > { %p17502_p10 = pneg %p17501_p6 }
 0xd12   : > { %p17508_p2 = por %p17507_p11, %p17506_p8 }
 0xd14   : > { %p17509_p3 = pnand %p17508_p2, %p17502_p10 }
 0xd16   : > { %17512 = shalt.err (!%p17509_p3)
}
 0xd17   : > { %s17563_s20 = smov 128   ;;  %s17564_s18 = smov 8  }
 0xd18   : > { %17338 = dma.vmem_to_hbm [thread:$0]  (%p22631_p0), %s21855_s8, 10240, %s21853_s28, %s10741_s16, %s17563_s20, %s17563_s20, %s17564_s18  }
 0xd19 PF: > { %s10769_s7 = sand.u32 1, %s17543_s12   ;;  %p22632_p7 = scmp.ne.s32.totalorder %s22200_s19, 0 }
 0xd1a   : > { %p22633_p9 = scmp.ge.s32.totalorder %s17555_s15, 2  ;;  %s10770_s24 = scalar_lea.sflag [#allocation4], %s10769_s7 }
 0xd1c   : > { %p17352_p12 = pnand %p22633_p9, %p22632_p7 }
 0xd1e   : > { %17538 = dma.done.wait (!%p17352_p12), %s10770_s24, 10240  }
 0xd1f   : > { %17540 = vsyncadd (!%p17352_p12), %s10770_s24, 4294957056  ;;  %p17_p1 = scmp.ge.s32.totalorder %s17701_s23, 4   ;;  %s22634_s12 = smov %s17547_s13 }
 0xd20   : > { %s22635_s13 = smov %s17551_s14  ;;  %s22636_s14 = smov %s17717_s9 }
 0xd21   : > { %s22637_s15 = smov %s17701_s23  ;;  %19 = sbr.rel (!%p17_p1) target bundleno = 6 (0x6), region = 95 }
 0xd28   :  { %10775 = vsyncpa [#allocation3], 1 }
 0xd29   :  { %10777 = vsyncpa [#allocation3 + $0x1], 1 }
 0xd2a   :  { %10778 = vsyncpa [#allocation6], 1 }
 0xd2b   :  { %10779 = vsyncpa [#allocation4], 1 }
 0xd2c   :  { %10781 = vsyncpa [#allocation4 + $0x1], 1 }

</bundles_post_ra>
